<compile_context>
chip_gen: v7x
topology: tpu7x:2x2x1
jax: 0.10.0
libtpu: 0.0.40
codegen_flags: <defaults>
</compile_context>

<pallas_src>
import jax
import jax.numpy as jnp
from jax.experimental import pallas as pl
from jax.experimental.pallas import tpu as pltpu


HIDDEN_RAW = 1000     # PyTorch module's hidden width
HIDDEN_PAD = 1024     # zero-padded to a lane-friendly multiple of 128
OUT_RAW = 2
OUT_PAD = 128         # lane-dense output head (sliced back to 2 in the wrapper)
BN_EPS = 1e-5


def _mlp_kernel(x_ref, w1_ref, c1_ref, w2_ref, c2_ref, w3_ref, b3_ref, o_ref):
    # Layer 1: (Linear + BN) folded -> ReLU   (Dropout = identity, eval mode)
    x = x_ref[...].astype(jnp.bfloat16)
    h1 = jnp.dot(x, w1_ref[...], preferred_element_type=jnp.float32) + c1_ref[...]
    h1 = jnp.maximum(h1, 0.0).astype(jnp.bfloat16)

    # Layer 2: (Linear + BN) folded -> ReLU
    h2 = jnp.dot(h1, w2_ref[...], preferred_element_type=jnp.float32) + c2_ref[...]
    h2 = jnp.maximum(h2, 0.0).astype(jnp.bfloat16)

    # Layer 3: Linear head (padded to 128 lanes; true logits live in cols 0..1)
    out = jnp.dot(h2, w3_ref[...], preferred_element_type=jnp.float32) + b3_ref[...]
    o_ref[...] = out.astype(o_ref.dtype)


def sex_classify_forward(x, prepared_params, *, batch_tile=256):
    """x: (B, input_size) float32.  Returns (B, 2) float32 logits."""
    w1, c1, w2, c2, w3, b3 = prepared_params
    B, D = x.shape
    H = w1.shape[1]
    Np = w3.shape[1]

    # Pad batch to a multiple of 8 (sublane) and pick the batch tile.
    B8 = ((B + 7) // 8) * 8
    if B8 <= batch_tile:
        TB, Bp = B8, B8
    else:
        TB = batch_tile
        Bp = ((B8 + TB - 1) // TB) * TB
    if Bp != B:
        x = jnp.pad(x, ((0, Bp - B), (0, 0)))

    grid = (Bp // TB,)

    def resident(shape):
        # Weight / bias arrays: single block, same index every grid step
        # -> loaded into VMEM once, stay resident across batch tiles.
        return pl.BlockSpec(shape, lambda i: tuple(0 for _ in shape))

    weight_bytes = sum(int(a.size) * a.dtype.itemsize
                       for a in (w1, c1, w2, c2, w3, b3))
    cost = pl.CostEstimate(
        flops=2 * Bp * (D * H + H * H + H * Np),
        transcendentals=0,
        bytes_accessed=weight_bytes
        + int(x.size) * x.dtype.itemsize
        + Bp * Np * 4,
    )

    out = pl.pallas_call(
        _mlp_kernel,
        grid=grid,
        in_specs=[
            pl.BlockSpec((TB, D), lambda i: (i, 0)),   # x: tiled over batch
            resident(w1.shape), resident(c1.shape),
            resident(w2.shape), resident(c2.shape),
            resident(w3.shape), resident(b3.shape),
        ],
        out_specs=pl.BlockSpec((TB, Np), lambda i: (i, 0)),
        out_shape=jax.ShapeDtypeStruct((Bp, Np), jnp.float32),
        compiler_params=pltpu.CompilerParams(
            dimension_semantics=("parallel",),
            vmem_limit_bytes=32 * 1024 * 1024,   # fits v7x's 64 MiB VMEM
        ),
        cost_estimate=cost,
    )(x, w1, c1, w2, c2, w3, b3)

    return out[:B, :OUT_RAW]


# ----------------------------------------------------------------------------
# Parameter construction (synthetic, PyTorch-equivalent shapes) and prep.
# ----------------------------------------------------------------------------

def init_raw_params(key, input_size, hidden=HIDDEN_RAW, n_classes=OUT_RAW):
    """Synthetic parameters with the original module's structure.

    Linear weights are stored transposed as (in, out); BatchNorm1d is kept as
    (gamma, beta, running_mean, running_var).
    """
    keys = jax.random.split(key, 16)

    def linear(kw, kb, fan_in, fan_out):
        w = jax.random.normal(kw, (fan_in, fan_out), jnp.float32) / jnp.sqrt(fan_in)
        b = 0.01 * jax.random.normal(kb, (fan_out,), jnp.float32)
        return w, b

    def bn(kg, kb, km, kv, feat):
        gamma = 1.0 + 0.1 * jax.random.normal(kg, (feat,), jnp.float32)
        beta = 0.1 * jax.random.normal(kb, (feat,), jnp.float32)
        mean = 0.1 * jax.random.normal(km, (feat,), jnp.float32)
        var = 1.0 + 0.1 * jax.random.uniform(kv, (feat,), jnp.float32)
        return gamma, beta, mean, var

    w1, b1 = linear(keys[0], keys[1], input_size, hidden)
    bn1 = bn(keys[2], keys[3], keys[4], keys[5], hidden)
    w2, b2 = linear(keys[6], keys[7], hidden, hidden)
    bn2 = bn(keys[8], keys[9], keys[10], keys[11], hidden)
    w3, b3 = linear(keys[12], keys[13], hidden, n_classes)
    return (w1, b1, bn1, w2, b2, bn2, w3, b3)


def prepare_params(raw):
    """Fold Linear bias + eval-mode BN into the weights, zero-pad the hidden
    dim to 1024 and the 2-class head to 128 lanes, cast weights to bf16.

    Zero padding is exact: padded hidden features are relu(0) = 0 and the
    padded rows/cols of downstream weights are 0, so they never contribute.
    """
    (w1, b1, (g1, be1, m1, v1), w2, b2, (g2, be2, m2, v2), w3, b3) = raw

    def fold(w, b, gamma, beta, mean, var):
        scale = gamma * jax.lax.rsqrt(var + BN_EPS)          # (feat,)
        return w * scale[None, :], (b - mean) * scale + beta

    w1f, c1f = fold(w1, b1, g1, be1, m1, v1)
    w2f, c2f = fold(w2, b2, g2, be2, m2, v2)

    ph = HIDDEN_PAD - w1f.shape[1]
    pn = OUT_PAD - w3.shape[1]

    w1p = jnp.pad(w1f, ((0, 0), (0, ph)))
    c1p = jnp.pad(c1f, ((0, ph),))[None, :]
    w2p = jnp.pad(w2f, ((0, ph), (0, ph)))
    c2p = jnp.pad(c2f, ((0, ph),))[None, :]
    w3p = jnp.pad(w3, ((0, ph), (0, pn)))
    b3p = jnp.pad(b3, ((0, pn),))[None, :]

    return (w1p.astype(jnp.bfloat16), c1p.astype(jnp.float32),
            w2p.astype(jnp.bfloat16), c2p.astype(jnp.float32),
            w3p.astype(jnp.bfloat16), b3p.astype(jnp.float32))


# ----------------------------------------------------------------------------
# Pure-JAX references for correctness checks.
# ----------------------------------------------------------------------------

def reference_forward_f32(x, raw):
    """Original module semantics (eval mode), full f32."""
    (w1, b1, (g1, be1, m1, v1), w2, b2, (g2, be2, m2, v2), w3, b3) = raw

    def bn(z, g, be, m, v):
        return (z - m) * (g * jax.lax.rsqrt(v + BN_EPS)) + be

    h1 = jnp.maximum(bn(x @ w1 + b1, g1, be1, m1, v1), 0.0)
    h2 = jnp.maximum(bn(h1 @ w2 + b2, g2, be2, m2, v2), 0.0)
    return h2 @ w3 + b3


def reference_forward_prepared(x, prepared):
    """Mirrors the kernel's bf16/f32 dataflow exactly (for a tight check)."""
    w1, c1, w2, c2, w3, b3 = prepared
    xb = x.astype(jnp.bfloat16)
    h1 = jnp.maximum(jnp.dot(xb, w1, preferred_element_type=jnp.float32) + c1,
                     0.0).astype(jnp.bfloat16)
    h2 = jnp.maximum(jnp.dot(h1, w2, preferred_element_type=jnp.float32) + c2,
                     0.0).astype(jnp.bfloat16)
    out = jnp.dot(h2, w3, preferred_element_type=jnp.float32) + b3
    return out[:, :OUT_RAW]


if __name__ == "__main__":
    key = jax.random.PRNGKey(0)
    k_x, k_p = jax.random.split(key)

    batch = 8
    input_size = 32

    x = jax.random.normal(k_x, (batch, input_size), jnp.float32)
    raw = init_raw_params(k_p, input_size)
    prepared = prepare_params(raw)

    out = sex_classify_forward(x, prepared)
    out = jax.block_until_ready(out)
    assert out.shape == (batch, OUT_RAW)

    # Tight check against a reference that mirrors the kernel's bf16 dataflow.
    ref_bf16 = reference_forward_prepared(x, prepared)
    assert jnp.allclose(out, ref_bf16, atol=2e-2, rtol=2e-2), \
        "mismatch vs. bf16-mirrored JAX reference"

    # Looser check against the original f32 module semantics (bf16 quantization).
    ref_f32 = reference_forward_f32(x, raw)
    assert jnp.allclose(out, ref_f32, atol=1.5e-1, rtol=5e-2), \
        "mismatch vs. f32 module reference"

    print("KERNEL_OK")
</pallas_src>

<mosaic_0001>
module attributes {stable_mosaic.version = 11 : i64} {
  func.func @_mlp_kernel(%arg0: i32, %arg1: memref<8x32xf32, #tpu.memory_space<vmem>>, %arg2: memref<32x1024xbf16, #tpu.memory_space<vmem>>, %arg3: memref<1x1024xf32, #tpu.memory_space<vmem>>, %arg4: memref<1024x1024xbf16, #tpu.memory_space<vmem>>, %arg5: memref<1x1024xf32, #tpu.memory_space<vmem>>, %arg6: memref<1024x128xbf16, #tpu.memory_space<vmem>>, %arg7: memref<1x128xf32, #tpu.memory_space<vmem>>, %arg8: memref<8x128xf32, #tpu.memory_space<vmem>>) attributes {dimension_semantics = [#tpu.dimension_semantics<parallel>], iteration_bounds = array<i64: 1>, scalar_prefetch = 0 : i64, scratch_operands = 0 : i64, tpu.core_type = #tpu.core_type<tc>, window_params = [{transform_indices = @transform_0, window_bounds = array<i64: 8, 32>}, {pipeline_mode = #tpu.pipeline_mode<synchronous>, transform_indices = @transform_1, window_bounds = array<i64: 32, 1024>}, {pipeline_mode = #tpu.pipeline_mode<synchronous>, transform_indices = @transform_2, window_bounds = array<i64: 1, 1024>}, {pipeline_mode = #tpu.pipeline_mode<synchronous>, transform_indices = @transform_3, window_bounds = array<i64: 1024, 1024>}, {pipeline_mode = #tpu.pipeline_mode<synchronous>, transform_indices = @transform_4, window_bounds = array<i64: 1, 1024>}, {pipeline_mode = #tpu.pipeline_mode<synchronous>, transform_indices = @transform_5, window_bounds = array<i64: 1024, 128>}, {pipeline_mode = #tpu.pipeline_mode<synchronous>, transform_indices = @transform_6, window_bounds = array<i64: 1, 128>}, {transform_indices = @transform_7, window_bounds = array<i64: 8, 128>}]} {
    %c0 = arith.constant 0 : index
    %c0_0 = arith.constant 0 : index
    %0 = vector.load %arg1[%c0, %c0_0] : memref<8x32xf32, #tpu.memory_space<vmem>>, vector<8x32xf32>
    %1 = arith.truncf %0 : vector<8x32xf32> to vector<8x32xbf16>
    %c0_1 = arith.constant 0 : index
    %c0_2 = arith.constant 0 : index
    %2 = vector.load %arg2[%c0_1, %c0_2] : memref<32x1024xbf16, #tpu.memory_space<vmem>>, vector<32x1024xbf16>
    %cst = arith.constant dense<0.000000e+00> : vector<8x1024xf32>
    %3 = tpu.matmul %1, %2, %cst {dimension_numbers = #tpu.dot_dimension_numbers<[1], [0], [0], [1], [0, 0, 1, 1], [], []>} : vector<8x32xbf16>, vector<32x1024xbf16>, vector<8x1024xf32> -> vector<8x1024xf32>
    %c0_3 = arith.constant 0 : index
    %c0_4 = arith.constant 0 : index
    %4 = vector.load %arg3[%c0_3, %c0_4] : memref<1x1024xf32, #tpu.memory_space<vmem>>, vector<1x1024xf32>
    %5 = vector.broadcast %4 : vector<1x1024xf32> to vector<8x1024xf32>
    %6 = arith.addf %3, %5 : vector<8x1024xf32>
    %cst_5 = arith.constant 0.000000e+00 : f32
    %7 = vector.broadcast %cst_5 : f32 to vector<8x1024xf32>
    %8 = arith.maximumf %6, %7 : vector<8x1024xf32>
    %9 = arith.truncf %8 : vector<8x1024xf32> to vector<8x1024xbf16>
    %c0_6 = arith.constant 0 : index
    %c0_7 = arith.constant 0 : index
    %10 = vector.load %arg4[%c0_6, %c0_7] : memref<1024x1024xbf16, #tpu.memory_space<vmem>>, vector<1024x1024xbf16>
    %cst_8 = arith.constant dense<0.000000e+00> : vector<8x1024xf32>
    %11 = tpu.matmul %9, %10, %cst_8 {dimension_numbers = #tpu.dot_dimension_numbers<[1], [0], [0], [1], [0, 0, 1, 1], [], []>} : vector<8x1024xbf16>, vector<1024x1024xbf16>, vector<8x1024xf32> -> vector<8x1024xf32>
    %c0_9 = arith.constant 0 : index
    %c0_10 = arith.constant 0 : index
    %12 = vector.load %arg5[%c0_9, %c0_10] : memref<1x1024xf32, #tpu.memory_space<vmem>>, vector<1x1024xf32>
    %13 = vector.broadcast %12 : vector<1x1024xf32> to vector<8x1024xf32>
    %14 = arith.addf %11, %13 : vector<8x1024xf32>
    %cst_11 = arith.constant 0.000000e+00 : f32
    %15 = vector.broadcast %cst_11 : f32 to vector<8x1024xf32>
    %16 = arith.maximumf %14, %15 : vector<8x1024xf32>
    %17 = arith.truncf %16 : vector<8x1024xf32> to vector<8x1024xbf16>
    %c0_12 = arith.constant 0 : index
    %c0_13 = arith.constant 0 : index
    %18 = vector.load %arg6[%c0_12, %c0_13] : memref<1024x128xbf16, #tpu.memory_space<vmem>>, vector<1024x128xbf16>
    %cst_14 = arith.constant dense<0.000000e+00> : vector<8x128xf32>
    %19 = tpu.matmul %17, %18, %cst_14 {dimension_numbers = #tpu.dot_dimension_numbers<[1], [0], [0], [1], [0, 0, 1, 1], [], []>} : vector<8x1024xbf16>, vector<1024x128xbf16>, vector<8x128xf32> -> vector<8x128xf32>
    %c0_15 = arith.constant 0 : index
    %c0_16 = arith.constant 0 : index
    %20 = vector.load %arg7[%c0_15, %c0_16] : memref<1x128xf32, #tpu.memory_space<vmem>>, vector<1x128xf32>
    %21 = vector.broadcast %20 : vector<1x128xf32> to vector<8x128xf32>
    %22 = arith.addf %19, %21 : vector<8x128xf32>
    %c0_17 = arith.constant 0 : index
    %c0_18 = arith.constant 0 : index
    %23 = vector.load %arg8[%c0_17, %c0_18] : memref<8x128xf32, #tpu.memory_space<vmem>>, vector<8x128xf32>
    tpu.vector_store %arg8[%c0_17, %c0_18], %22 {strides = array<i32>} : memref<8x128xf32, #tpu.memory_space<vmem>>, vector<8x128xf32>,
    return
  }
  func.func @transform_0(%arg0: i32) -> (i32, i32) {
    %c0_i32 = arith.constant 0 : i32
    %c0_i32_0 = arith.constant 0 : i32
    return %arg0, %c0_i32 : i32, i32
  }
  func.func @transform_1(%arg0: i32) -> (i32, i32) {
    %c0_i32 = arith.constant 0 : i32
    %c0_i32_0 = arith.constant 0 : i32
    %c0_i32_1 = arith.constant 0 : i32
    return %c0_i32, %c0_i32_0 : i32, i32
  }
  func.func @transform_2(%arg0: i32) -> (i32, i32) {
    %c0_i32 = arith.constant 0 : i32
    %c0_i32_0 = arith.constant 0 : i32
    %c0_i32_1 = arith.constant 0 : i32
    return %c0_i32, %c0_i32_0 : i32, i32
  }
  func.func @transform_3(%arg0: i32) -> (i32, i32) {
    %c0_i32 = arith.constant 0 : i32
    %c0_i32_0 = arith.constant 0 : i32
    %c0_i32_1 = arith.constant 0 : i32
    return %c0_i32, %c0_i32_0 : i32, i32
  }
  func.func @transform_4(%arg0: i32) -> (i32, i32) {
    %c0_i32 = arith.constant 0 : i32
    %c0_i32_0 = arith.constant 0 : i32
    %c0_i32_1 = arith.constant 0 : i32
    return %c0_i32, %c0_i32_0 : i32, i32
  }
  func.func @transform_5(%arg0: i32) -> (i32, i32) {
    %c0_i32 = arith.constant 0 : i32
    %c0_i32_0 = arith.constant 0 : i32
    %c0_i32_1 = arith.constant 0 : i32
    return %c0_i32, %c0_i32_0 : i32, i32
  }
  func.func @transform_6(%arg0: i32) -> (i32, i32) {
    %c0_i32 = arith.constant 0 : i32
    %c0_i32_0 = arith.constant 0 : i32
    %c0_i32_1 = arith.constant 0 : i32
    return %c0_i32, %c0_i32_0 : i32, i32
  }
  func.func @transform_7(%arg0: i32) -> (i32, i32) {
    %c0_i32 = arith.constant 0 : i32
    %c0_i32_0 = arith.constant 0 : i32
    return %arg0, %c0_i32 : i32, i32
  }
}

</mosaic_0001>

<bundles_post_ra>
// kernel: tpu_custom_call.1
= control target key start
LH: loop header
LB: loop body
LE: loop exit
PB: predicated region body
PF: predicated region fallthrough
CT: control target
= control target key end

     0   :  { %12 = vsyncpa [#allocation3], 0  ;;  %s6217_s0 = inlined_call_operand.hbm [shape: f32[8,32], index: 0, kind: input, shape index: {}]   ;;  %s6218_s1 = inlined_call_operand.hbm [shape: bf16[32,1024], index: 1, kind: input, shape index: {}]   ;;  %s6219_s2 = inlined_call_operand.hbm [shape: f32[1,1024], index: 2, kind: input, shape index: {}]   ;;  %s6220_s3 = inlined_call_operand.hbm [shape: bf16[1024,1024], index: 3, kind: input, shape index: {}]   ;;  %s6221_s4 = inlined_call_operand.hbm [shape: f32[1,1024], index: 4, kind: input, shape index: {}]   ;;  %s6222_s5 = inlined_call_operand.hbm [shape: bf16[1024,128], index: 5, kind: input, shape index: {}]   ;;  %s6223_s6 = inlined_call_operand.hbm [shape: f32[1,128], index: 6, kind: input, shape index: {}]   ;;  %s6224_s7 = inlined_call_operand.hbm [shape: f32[8,128], index: 7, kind: output, shape index: {}]  }
   0x1   :  { %13 = vsyncpa [#allocation6], 0 }
   0x2   :  { %14 = vsyncpa [#allocation9], 0 }
   0x3   :  { %15 = vsyncpa [#allocation12], 0 }
   0x4   :  { %16 = vsyncpa [#allocation4], 0  ;;  %s5928_s24 = smov [#allocation5]   ;;  %s5742_s28 = scalar_lea.hbm %s6218_s1, 2048 }
   0x5   :  { %s32_s25 = sshll.u32 %s5928_s24, 4  ;;  %p5743_p0 = scmp.ne.s32.totalorder %s6218_s1, %s5742_s28  ;;  %s33_s25 = int_to_ptr.vmem [resolvable:$true] %s32_s25 }
   0x6   :  { %p5746_p1 = scmp.lt.u32.totalorder %s5742_s28, %s6218_s1 }
   0x8   :  { %p5748_p2 = pnand %p5746_p1, %p5743_p0 }
   0xa   :  { %5751 = shalt.err (!%p5748_p2)
}
   0xb   :  { %s5752_s10 = scalar_lea.vmem %s33_s25, 2048  ;;  %p5757_p4 = scmp.lt.s32.totalorder %s33_s25, %s33_s25 }
   0xc   :  { %p5753_p3 = scmp.ne.s32.totalorder %s33_s25, %s5752_s10  ;;  %p5758_p5 = scmp.lt.s32.totalorder %s5752_s10, %s5752_s10 }
   0xe   :  { %p5759_p6 = por %p5758_p5, %p5757_p4 }
  0x10   :  { %p5760_p7 = pnand %p5759_p6, %p5753_p3 }
  0x12   :  { %5763 = shalt.err (!%p5760_p7)
}
  0x13   :  { %s5929_s11 = smov 512   ;;  %s5930_s12 = smov 32  }
  0x14   :  { %38 = dma.hbm_to_vmem [thread:$0]  %s6218_s1, 2048, %s33_s25, [#allocation6], %s5929_s11, %s5929_s11, %s5930_s12  }
  0x15   :  { %s5931_s15 = smov [#allocation8]   ;;  %s5932_s17 = smov [#allocation11]  }
  0x16   :  { %s54_s16 = sshll.u32 %s5931_s15, 4  ;;  %s76_s18 = sshll.u32 %s5932_s17, 4  ;;  %s55_s16 = int_to_ptr.vmem [resolvable:$true] %s54_s16  ;;  %s77_s18 = int_to_ptr.vmem [resolvable:$true] %s76_s18 }
  0x17   :  { %s5764_s21 = scalar_lea.hbm %s6220_s3, 65536 }
  0x18   :  { %p5765_p8 = scmp.ne.s32.totalorder %s6220_s3, %s5764_s21  ;;  %p5768_p9 = scmp.lt.u32.totalorder %s5764_s21, %s6220_s3 }
  0x1a   :  { %p5770_p10 = pnand %p5768_p9, %p5765_p8 }
  0x1c   :  { %5773 = shalt.err (!%p5770_p10)
}
  0x1d   :  { %s5774_s1 = scalar_lea.vmem %s55_s16, 65536  ;;  %p5779_p12 = scmp.lt.s32.totalorder %s55_s16, %s55_s16 }
  0x1e   :  { %p5775_p11 = scmp.ne.s32.totalorder %s55_s16, %s5774_s1  ;;  %p5780_p13 = scmp.lt.s32.totalorder %s5774_s1, %s5774_s1 }
  0x20   :  { %p5781_p0 = por %p5780_p13, %p5779_p12 }
  0x22   :  { %p5782_p1 = pnand %p5781_p0, %p5775_p11 }
  0x24   :  { %5785 = shalt.err (!%p5782_p1)
}
  0x25   :  { %60 = dma.hbm_to_vmem [thread:$0]  %s6220_s3, 65536, %s55_s16, [#allocation9], %s5929_s11, %s5929_s11, %s5930_s12  }
  0x26   :  { %s5786_s30 = scalar_lea.hbm %s6222_s5, 8192 }
  0x27   :  { %p5787_p2 = scmp.ne.s32.totalorder %s6222_s5, %s5786_s30  ;;  %p5790_p3 = scmp.lt.u32.totalorder %s5786_s30, %s6222_s5 }
  0x29   :  { %p5792_p4 = pnand %p5790_p3, %p5787_p2 }
  0x2b   :  { %5795 = shalt.err (!%p5792_p4)
}
  0x2c   :  { %s5796_s14 = scalar_lea.vmem %s77_s18, 8192  ;;  %p5801_p6 = scmp.lt.s32.totalorder %s77_s18, %s77_s18 }
  0x2d   :  { %p5797_p5 = scmp.ne.s32.totalorder %s77_s18, %s5796_s14  ;;  %p5802_p7 = scmp.lt.s32.totalorder %s5796_s14, %s5796_s14 }
  0x2f   :  { %p5803_p8 = por %p5802_p7, %p5801_p6 }
  0x31   :  { %p5804_p9 = pnand %p5803_p8, %p5797_p5 }
  0x33   :  { %5807 = shalt.err (!%p5804_p9)
}
  0x34   :  { %s5933_s3 = smov 64   ;;  %s5934_s11 = smov 4  }
  0x35   :  { %82 = dma.hbm_to_vmem [thread:$0]  %s6222_s5, 8192, %s77_s18, [#allocation12], %s5933_s3, %s5933_s3, %s5934_s11  }
  0x36   :  { %s5935_s16 = smov [#allocation2]   ;;  %s5936_s19 = smov [#allocation7]  }
  0x37   :  { %s23_s17 = sshll.u32 %s5935_s16, 4  ;;  %s45_s20 = sshll.u32 %s5936_s19, 4  ;;  %s24_s17 = int_to_ptr.vmem [resolvable:$true] %s23_s17  ;;  %s46_s20 = int_to_ptr.vmem [resolvable:$true] %s45_s20 }
  0x38   :  { %s5808_s23 = scalar_lea.hbm %s6217_s0, 128 }
  0x39   :  { %p5809_p10 = scmp.ne.s32.totalorder %s6217_s0, %s5808_s23  ;;  %p5812_p11 = scmp.lt.u32.totalorder %s5808_s23, %s6217_s0 }
  0x3b   :  { %p5814_p12 = pnand %p5812_p11, %p5809_p10 }
  0x3d   :  { %5817 = shalt.err (!%p5814_p12)
}
  0x3e   :  { %s5818_s5 = scalar_lea.vmem %s24_s17, 128  ;;  %p5823_p0 = scmp.lt.s32.totalorder %s24_s17, %s24_s17 }
  0x3f   :  { %p5819_p13 = scmp.ne.s32.totalorder %s24_s17, %s5818_s5  ;;  %p5824_p1 = scmp.lt.s32.totalorder %s5818_s5, %s5818_s5 }
  0x41   :  { %p5825_p2 = por %p5824_p1, %p5823_p0 }
  0x43   :  { %p5826_p3 = pnand %p5825_p2, %p5819_p13 }
  0x45   :  { %5829 = shalt.err (!%p5826_p3)
}
  0x46   :  { %26 = dma.hbm_to_vmem [thread:$0]  %s6217_s0, 128, %s24_s17, [#allocation3]  }
  0x47   :  { %s5830_s30 = scalar_lea.hbm %s6219_s2, 128 }
  0x48   :  { %p5831_p4 = scmp.ne.s32.totalorder %s6219_s2, %s5830_s30  ;;  %p5834_p5 = scmp.lt.u32.totalorder %s5830_s30, %s6219_s2 }
  0x4a   :  { %p5836_p6 = pnand %p5834_p5, %p5831_p4 }
  0x4c   :  { %5839 = shalt.err (!%p5836_p6)
}
  0x4d   :  { %s5840_s14 = scalar_lea.vmem %s46_s20, 128  ;;  %p5845_p8 = scmp.lt.s32.totalorder %s46_s20, %s46_s20 }
  0x4e   :  { %p5841_p7 = scmp.ne.s32.totalorder %s46_s20, %s5840_s14  ;;  %p5846_p9 = scmp.lt.s32.totalorder %s5840_s14, %s5840_s14 }
  0x50   :  { %p5847_p10 = por %p5846_p9, %p5845_p8 }
  0x52   :  { %p5848_p11 = pnand %p5847_p10, %p5841_p7 }
  0x54   :  { %5851 = shalt.err (!%p5848_p11)
}
  0x55   :  { %48 = dma.hbm_to_vmem [thread:$0]  %s6219_s2, 128, %s46_s20, [#allocation6]  }
  0x56   :  { %s5937_s11 = smov [#allocation10]   ;;  %s5938_s15 = smov [#allocation13]  }
  0x57   :  { %s67_s12 = sshll.u32 %s5937_s11, 4  ;;  %s89_s16 = sshll.u32 %s5938_s15, 4  ;;  %s68_s12 = int_to_ptr.vmem [resolvable:$true] %s67_s12  ;;  %s90_s16 = int_to_ptr.vmem [resolvable:$true] %s89_s16 }
  0x58   :  { %s5852_s21 = scalar_lea.hbm %s6221_s4, 128 }
  0x59   :  { %p5853_p12 = scmp.ne.s32.totalorder %s6221_s4, %s5852_s21  ;;  %p5856_p13 = scmp.lt.u32.totalorder %s5852_s21, %s6221_s4 }
  0x5b   :  { %p5858_p0 = pnand %p5856_p13, %p5853_p12 }
  0x5d   :  { %5861 = shalt.err (!%p5858_p0)
}
  0x5e   :  { %s5862_s2 = scalar_lea.vmem %s68_s12, 128  ;;  %p5867_p2 = scmp.lt.s32.totalorder %s68_s12, %s68_s12 }
  0x5f   :  { %p5863_p1 = scmp.ne.s32.totalorder %s68_s12, %s5862_s2  ;;  %p5868_p3 = scmp.lt.s32.totalorder %s5862_s2, %s5862_s2 }
  0x61   :  { %p5869_p4 = por %p5868_p3, %p5867_p2 }
  0x63   :  { %p5870_p5 = pnand %p5869_p4, %p5863_p1 }
  0x65   :  { %5873 = shalt.err (!%p5870_p5)
}
  0x66   :  { %70 = dma.hbm_to_vmem [thread:$0]  %s6221_s4, 128, %s68_s12, [#allocation9]  }
  0x67   :  { %s5874_s18 = scalar_lea.hbm %s6223_s6, 16 }
  0x68   :  { %p5875_p6 = scmp.ne.s32.totalorder %s6223_s6, %s5874_s18  ;;  %p5878_p7 = scmp.lt.u32.totalorder %s5874_s18, %s6223_s6 }
  0x6a   :  { %p5880_p8 = pnand %p5878_p7, %p5875_p6 }
  0x6c   :  { %5883 = shalt.err (!%p5880_p8)
}
  0x6d   :  { %s5884_s8 = scalar_lea.vmem %s90_s16, 16  ;;  %s5888_s9 = scalar_lea.vmem %s90_s16, 32 }
  0x6e   :  { %p5885_p9 = scmp.ne.s32.totalorder %s90_s16, %s5884_s8  ;;  %p5889_p10 = scmp.lt.s32.totalorder %s90_s16, %s90_s16 }
  0x6f   :  { %p5890_p11 = scmp.lt.s32.totalorder %s5888_s9, %s5884_s8 }
  0x71   :  { %p5891_p12 = por %p5890_p11, %p5889_p10 }
  0x73   :  { %p5892_p13 = pnand %p5891_p12, %p5885_p9 }
  0x75   :  { %5895 = shalt.err (!%p5892_p13)
}
  0x76   :  { %92 = dma.hbm_to_vmem [thread:$0]  %s6223_s6, 16, %s90_s16, [#allocation12]  }
  0x77   :  { %5918 = dma.done.wait [#allocation3], 128  }
  0x78   :  { %5919 = vsyncadd [#allocation3], 4294967168 }
  0x79   :  { %5920 = dma.done.wait [#allocation6], 2176  }
  0x7a   :  { %5921 = vsyncadd [#allocation6], 4294965120 }
  0x7b   :  { %5922 = dma.done.wait [#allocation9], 65664  }
  0x7c   :  { %5923 = vsyncadd [#allocation9], 4294901632 }
  0x7d   :  { %5924 = dma.done.wait [#allocation12], 8208  }
  0x7e   :  { %5925 = vsyncadd [#allocation12], 4294959088  ;;  %v5939_v0 = vmov 0   ;;  %v117_v1 = vld [vmem:[#allocation5] sm:$0xff]  ;;  %v118_v7 = vld [vmem:[#allocation5 + $0x8] sm:$0xff]  ;;  %vm255_vm0 = vcmask 261120  }
  0x7f   :  { %291 = vmatprep.mubr.bf16.mxu0 %v5939_v0  ;;  %332 = vmatprep.mubr.bf16.mxu1 %v5939_v0  ;;  %v121_v2 = vld [vmem:[#allocation5 + $0x20] sm:$0xff]  ;;  %v122_v9 = vld [vmem:[#allocation5 + $0x28] sm:$0xff]  ;;  %v119_v15 = vld [vmem:[#allocation5 + $0x10] sm:$0xff]  ;;  %s5940_s6 = smov [#allocation14]  }
  0x80   :  { %v125_v3 = vld [vmem:[#allocation5 + $0x40] sm:$0xff]  ;;  %v4924_v4 = vcombine.high %v117_v1, %v121_v2  ;;  %v4923_v5 = vcombine.low %v117_v1, %v121_v2  ;;  %v126_v10 = vld [vmem:[#allocation5 + $0x48] sm:$0xff]  ;;  %v4926_v12 = vcombine.high %v118_v7, %v122_v9  ;;  %v4925_v13 = vcombine.low %v118_v7, %v122_v9  ;;  %v123_v16 = vld [vmem:[#allocation5 + $0x30] sm:$0xff]  ;;  %s4911_s13 = sshll.u32 %s5940_s6, 4  ;;  %s4912_s13 = int_to_ptr.vmem [resolvable:$true] %s4911_s13 }
  0x81   :  { %v129_v6 = vld [vmem:[#allocation5 + $0x60] sm:$0xff]  ;;  %v130_v11 = vld [vmem:[#allocation5 + $0x68] sm:$0xff]  ;;  %v115_v18 = vld [vmem:[#allocation2] sm:$0xff]  ;;  %v4928_v21 = vcombine.high %v119_v15, %v123_v16  ;;  %v4927_v27 = vcombine.low %v119_v15, %v123_v16  ;;  %s5896_s14 = scalar_lea.vmem %s4912_s13, 128  ;;  %p5901_p1 = scmp.lt.s32.totalorder %s4912_s13, %s4912_s13 }
  0x82   :  { %v4932_v8 = vcombine.high %v125_v3, %v129_v6  ;;  %259 = vmatprep.subr.bf16.mxu0 %v4924_v4  ;;  %v4934_v14 = vcombine.high %v126_v10, %v130_v11  ;;  %v4931_v17 = vcombine.low %v125_v3, %v129_v6  ;;  %v120_v19 = vld [vmem:[#allocation5 + $0x18] sm:$0xff]  ;;  %300 = vmatprep.subr.bf16.mxu1 %v4926_v12  ;;  %v127_v23 = vld [vmem:[#allocation5 + $0x50] sm:$0xff]  ;;  %v439_v32 = vld [vmem:[#allocation8] sm:$0xff]  ;;  %p5897_p0 = scmp.ne.s32.totalorder %s4912_s13, %s5896_s14  ;;  %p5902_p2 = scmp.lt.s32.totalorder %s5896_s14, %s5896_s14 }
  0x83   :  { %260 = vmatpush1.bf16.msra.mxu0 %v4923_v5  ;;  %v124_v20 = vld [vmem:[#allocation5 + $0x38] sm:$0xff]  ;;  %301 = vmatpush1.bf16.msra.mxu1 %v4925_v13  ;;  %v4933_v22 = vcombine.low %v126_v10, %v130_v11  ;;  %v131_v24 = vld [vmem:[#allocation5 + $0x70] sm:$0xff]  ;;  %v116_v25 = vpack.c.bf16 %v115_v18, %v115_v18  ;;  %v443_v33 = vld [vmem:[#allocation8 + $0x20] sm:$0xff] }
  0x84   :  { %261 = vmatprep.subr.bf16.mxu0 %v4932_v8  ;;  %302 = vmatprep.subr.bf16.mxu1 %v4934_v14  ;;  %v4930_v26 = vcombine.high %v120_v19, %v124_v20  ;;  %v128_v28 = vld [vmem:[#allocation5 + $0x58] sm:$0xff]  ;;  %v4936_v30 = vcombine.high %v127_v23, %v131_v24  ;;  %v4929_v31 = vcombine.low %v120_v19, %v124_v20  ;;  %v440_v36 = vld [vmem:[#allocation8 + $0x8] sm:$0xff]  ;;  %v447_v40 = vld [vmem:[#allocation8 + $0x40] sm:$0xff]  ;;  %p5903_p3 = por %p5902_p2, %p5901_p1 }
  0x85   :  { %v132_v29 = vld [vmem:[#allocation5 + $0x78] sm:$0xff]  ;;  %v4935_v35 = vcombine.low %v127_v23, %v131_v24  ;;  %v444_v37 = vld [vmem:[#allocation8 + $0x28] sm:$0xff]  ;;  %v4944_v38 = vcombine.high %v439_v32, %v443_v33  ;;  %v451_v41 = vld [vmem:[#allocation8 + $0x60] sm:$0xff]  ;;  %v4943_v43 = vcombine.low %v439_v32, %v443_v33 }
  0x86   :  { %v4938_v34 = vcombine.high %v128_v28, %v132_v29  ;;  %v4937_v39 = vcombine.low %v128_v28, %v132_v29  ;;  %v4946_v42 = vcombine.high %v440_v36, %v444_v37  ;;  %v448_v44 = vld [vmem:[#allocation8 + $0x48] sm:$0xff]  ;;  %v4952_v46 = vcombine.high %v447_v40, %v451_v41  ;;  %v455_v48 = vld [vmem:[#allocation8 + $0x80] sm:$0xff]  ;;  %p5904_p4 = pnand %p5903_p3, %p5897_p0 }
  0x87   :  { %262 = vmatpush1.bf16.msra.mxu0 %v4931_v17  ;;  %303 = vmatpush1.bf16.msra.mxu1 %v4933_v22  ;;  %v452_v45 = vld [vmem:[#allocation8 + $0x68] sm:$0xff]  ;;  %v4945_v47 = vcombine.low %v440_v36, %v444_v37  ;;  %v459_v49 = vld [vmem:[#allocation8 + $0xa0] sm:$0xff]  ;;  %v4951_v51 = vcombine.low %v447_v40, %v451_v41 }
  0x88   :  { %341 = vmatprep.subr.bf16.mxu0 %v4928_v21  ;;  %382 = vmatprep.subr.bf16.mxu1 %v4930_v26  ;;  %v4954_v50 = vcombine.high %v448_v44, %v452_v45  ;;  %v456_v52 = vld [vmem:[#allocation8 + $0x88] sm:$0xff]  ;;  %v4960_v54 = vcombine.high %v455_v48, %v459_v49  ;;  %v4953_v55 = vcombine.low %v448_v44, %v452_v45  ;;  %v463_v56 = vld [vmem:[#allocation8 + $0xc0] sm:$0xff] }
  0x89   :  { %v460_v53 = vld [vmem:[#allocation8 + $0xa8] sm:$0xff]  ;;  %v467_v57 = vld [vmem:[#allocation8 + $0xe0] sm:$0xff]  ;;  %v4959_v61 = vcombine.low %v455_v48, %v459_v49 }
  0x8a   :  { %4939 = vmatmul.mubr.msk.bf16.vlgmr.msra.gmra.mrb[0].mxu0 %vm255_vm0, %v116_v25  ;;  %4940 = vmatmul.mubr.msk.bf16.vlgmr.msra.gmra.mrb[0].mxu1 %vm255_vm0, %v116_v25  ;;  %v4962_v58 = vcombine.high %v456_v52, %v460_v53  ;;  %v464_v59 = vld [vmem:[#allocation8 + $0xc8] sm:$0xff]  ;;  %v471_v62 = vld [vmem:[#allocation8 + $0x100] sm:$0xff]  ;;  %v4961_v1 = vcombine.low %v456_v52, %v460_v53  ;;  %v4967_v5 = vcombine.low %v463_v56, %v467_v57 }
  0x8b   :  { %342 = vmatpush1.bf16.msra.mxu0 %v4927_v27  ;;  %373 = vmatprep.mubr.bf16.mxu0 %v5939_v0  ;;  %v468_v60 = vld [vmem:[#allocation8 + $0xe8] sm:$0xff]  ;;  %v475_v63 = vld [vmem:[#allocation8 + $0x120] sm:$0xff] }
  0x8c   :  { %343 = vmatprep.subr.bf16.mxu0 %v4936_v30  ;;  %383 = vmatpush1.bf16.msra.mxu1 %v4929_v31  ;;  %v472_v2 = vld [vmem:[#allocation8 + $0x108] sm:$0xff]  ;;  %v4970_v4 = vcombine.high %v464_v59, %v468_v60  ;;  %v479_v6 = vld [vmem:[#allocation8 + $0x140] sm:$0xff]  ;;  %v4976_v8 = vcombine.high %v471_v62, %v475_v63  ;;  %v4969_v9 = vcombine.low %v464_v59, %v468_v60 }
  0x8d   :  { %414 = vmatprep.mubr.bf16.mxu1 %v5939_v0  ;;  %384 = vmatprep.subr.bf16.mxu1 %v4938_v34  ;;  %v4968_v0 = vcombine.high %v463_v56, %v467_v57  ;;  %v476_v3 = vld [vmem:[#allocation8 + $0x128] sm:$0xff]  ;;  %v483_v7 = vld [vmem:[#allocation8 + $0x160] sm:$0xff]  ;;  %v4975_v13 = vcombine.low %v471_v62, %v475_v63 }
  0x8e   :  { %v480_v10 = vld [vmem:[#allocation8 + $0x148] sm:$0xff]  ;;  %v4978_v12 = vcombine.high %v472_v2, %v476_v3  ;;  %v487_v14 = vld [vmem:[#allocation8 + $0x180] sm:$0xff]  ;;  %v4984_v16 = vcombine.high %v479_v6, %v483_v7  ;;  %v4977_v17 = vcombine.low %v472_v2, %v476_v3  ;;  %v4983_v21 = vcombine.low %v479_v6, %v483_v7 }
  0x8f   :  { %344 = vmatpush1.bf16.msra.mxu0 %v4935_v35  ;;  %v484_v11 = vld [vmem:[#allocation8 + $0x168] sm:$0xff]  ;;  %v491_v15 = vld [vmem:[#allocation8 + $0x1a0] sm:$0xff] }
  0x90   :  { %3553 = vmatprep.subr.bf16.mxu0 %v4944_v38  ;;  %385 = vmatpush1.bf16.msra.mxu1 %v4937_v39  ;;  %v488_v18 = vld [vmem:[#allocation8 + $0x188] sm:$0xff]  ;;  %v4986_v20 = vcombine.high %v480_v10, %v484_v11  ;;  %v495_v22 = vld [vmem:[#allocation8 + $0x1c0] sm:$0xff]  ;;  %v4992_v24 = vcombine.high %v487_v14, %v491_v15  ;;  %v4991_v29 = vcombine.low %v487_v14, %v491_v15 }
  0x91   :  { %3717 = vmatprep.subr.bf16.mxu1 %v4946_v42  ;;  %v492_v19 = vld [vmem:[#allocation8 + $0x1a8] sm:$0xff]  ;;  %v499_v23 = vld [vmem:[#allocation8 + $0x1e0] sm:$0xff] }
  0x92   :  { %4941 = vmatmul.mubr.msk.bf16.vlgmr.msra.gmra.mrb[4].mxu0 %vm255_vm0, %v116_v25  ;;  %v496_v26 = vld [vmem:[#allocation8 + $0x1c8] sm:$0xff]  ;;  %v4994_v28 = vcombine.high %v488_v18, %v492_v19  ;;  %v503_v30 = vld [vmem:[#allocation8 + $0x200] sm:$0xff]  ;;  %v5000_v32 = vcombine.high %v495_v22, %v499_v23  ;;  %v4993_v33 = vcombine.low %v488_v18, %v492_v19  ;;  %v4999_v37 = vcombine.low %v495_v22, %v499_v23 }
  0x93   :  { %3554 = vmatpush1.bf16.msra.mxu0 %v4943_v43  ;;  %4942 = vmatmul.mubr.msk.bf16.vlgmr.msra.gmra.mrb[4].mxu1 %vm255_vm0, %v116_v25  ;;  %v4985_v25 = vcombine.low %v480_v10, %v484_v11  ;;  %v500_v27 = vld [vmem:[#allocation8 + $0x1e8] sm:$0xff]  ;;  %v507_v31 = vld [vmem:[#allocation8 + $0x220] sm:$0xff] }
  0x94   :  { %3555 = vmatprep.subr.bf16.mxu0 %v4952_v46  ;;  %3718 = vmatpush1.bf16.msra.mxu1 %v4945_v47  ;;  %v504_v34 = vld [vmem:[#allocation8 + $0x208] sm:$0xff]  ;;  %v5002_v36 = vcombine.high %v496_v26, %v500_v27  ;;  %v511_v38 = vld [vmem:[#allocation8 + $0x240] sm:$0xff]  ;;  %v5008_v40 = vcombine.high %v503_v30, %v507_v31  ;;  %v5001_v41 = vcombine.low %v496_v26, %v500_v27 }
  0x95   :  { %3719 = vmatprep.subr.bf16.mxu1 %v4954_v50  ;;  %v508_v35 = vld [vmem:[#allocation8 + $0x228] sm:$0xff]  ;;  %v515_v39 = vld [vmem:[#allocation8 + $0x260] sm:$0xff]  ;;  %v5007_v45 = vcombine.low %v503_v30, %v507_v31 }
  0x96   :  { %v512_v42 = vld [vmem:[#allocation8 + $0x248] sm:$0xff]  ;;  %v5010_v44 = vcombine.high %v504_v34, %v508_v35  ;;  %v519_v46 = vld [vmem:[#allocation8 + $0x280] sm:$0xff]  ;;  %v5016_v48 = vcombine.high %v511_v38, %v515_v39  ;;  %v5009_v49 = vcombine.low %v504_v34, %v508_v35  ;;  %v5015_v53 = vcombine.low %v511_v38, %v515_v39 }
  0x97   :  { %3556 = vmatpush1.bf16.msra.mxu0 %v4951_v51  ;;  %v516_v43 = vld [vmem:[#allocation8 + $0x268] sm:$0xff]  ;;  %v523_v47 = vld [vmem:[#allocation8 + $0x2a0] sm:$0xff] }
  0x98   :  { %3557 = vmatprep.subr.bf16.mxu0 %v4960_v54  ;;  %3720 = vmatpush1.bf16.msra.mxu1 %v4953_v55  ;;  %v520_v50 = vld [vmem:[#allocation8 + $0x288] sm:$0xff]  ;;  %v5018_v52 = vcombine.high %v512_v42, %v516_v43  ;;  %v527_v54 = vld [vmem:[#allocation8 + $0x2c0] sm:$0xff]  ;;  %v5024_v56 = vcombine.high %v519_v46, %v523_v47  ;;  %v5017_v57 = vcombine.low %v512_v42, %v516_v43  ;;  %v135_v43 = vlaneseq }
  0x99   :  { %3721 = vmatprep.subr.bf16.mxu1 %v4962_v58  ;;  %v524_v51 = vld [vmem:[#allocation8 + $0x2a8] sm:$0xff]  ;;  %v531_v55 = vld [vmem:[#allocation8 + $0x2e0] sm:$0xff] }
  0x9a   :  { %v528_v58 = vld [vmem:[#allocation8 + $0x2c8] sm:$0xff]  ;;  %v5026_v60 = vcombine.high %v520_v50, %v524_v51  ;;  %v535_v62 = vld [vmem:[#allocation8 + $0x300] sm:$0xff] }
  0x9b   :  { %3558 = vmatpush1.bf16.msra.mxu0 %v4959_v61  ;;  %v532_v59 = vld [vmem:[#allocation8 + $0x2e8] sm:$0xff]  ;;  %v5023_v61 = vcombine.low %v519_v46, %v523_v47  ;;  %v539_v63 = vld [vmem:[#allocation8 + $0x320] sm:$0xff]  ;;  %v6072_v46 = vld [vmem:[#allocation7] sm:$0xff] }
  0x9c   :  { %3559 = vmatprep.subr.bf16.mxu0 %v4968_v0  ;;  %3722 = vmatpush1.bf16.msra.mxu1 %v4961_v1  ;;  %v5032_v0 = vcombine.high %v527_v54, %v531_v55  ;;  %v5025_v1 = vcombine.low %v520_v50, %v524_v51  ;;  %v536_v2 = vld [vmem:[#allocation8 + $0x308] sm:$0xff]  ;;  %v543_v6 = vld [vmem:[#allocation8 + $0x340] sm:$0xff] }
  0x9d   :  { %3723 = vmatprep.subr.bf16.mxu1 %v4970_v4  ;;  %v540_v3 = vld [vmem:[#allocation8 + $0x328] sm:$0xff]  ;;  %v5034_v4 = vcombine.high %v528_v58, %v532_v59  ;;  %v547_v7 = vld [vmem:[#allocation8 + $0x360] sm:$0xff] }
  0x9e   :  { %v544_v10 = vld [vmem:[#allocation8 + $0x348] sm:$0xff]  ;;  %v5048_v14 = vcombine.high %v543_v6, %v547_v7  ;;  %v5041_v15 = vcombine.low %v536_v2, %v540_v3  ;;  %v551_v19 = vld [vmem:[#allocation8 + $0x380] sm:$0xff] }
  0x9f   :  { %3560 = vmatpush1.bf16.msra.mxu0 %v4967_v5  ;;  %v5031_v5 = vcombine.low %v527_v54, %v531_v55  ;;  %v548_v11 = vld [vmem:[#allocation8 + $0x368] sm:$0xff]  ;;  %v559_v27 = vld [vmem:[#allocation8 + $0x3c0] sm:$0xff] }
  0xa0   :  { %3561 = vmatprep.subr.bf16.mxu0 %v4976_v8  ;;  %3724 = vmatpush1.bf16.msra.mxu1 %v4969_v9  ;;  %v5040_v8 = vcombine.high %v535_v62, %v539_v63  ;;  %v5033_v9 = vcombine.low %v528_v58, %v532_v59  ;;  %v5049_v18 = vcombine.low %v544_v10, %v548_v11  ;;  %v556_v23 = vld [vmem:[#allocation8 + $0x3a8] sm:$0xff]  ;;  %v567_v35 = vld [vmem:[#allocation8 + $0x400] sm:$0xff] }
  0xa1   :  { %3725 = vmatprep.subr.bf16.mxu1 %v4978_v12  ;;  %v5042_v12 = vcombine.high %v536_v2, %v540_v3  ;;  %v564_v31 = vld [vmem:[#allocation8 + $0x3e8] sm:$0xff] }
  0xa2   :  { %v572_v39 = vld [vmem:[#allocation8 + $0x428] sm:$0xff] }
  0xa3   :  { %3562 = vmatpush1.bf16.msra.mxu0 %v4975_v13  ;;  %v5039_v13 = vcombine.low %v535_v62, %v539_v63  ;;  %v579_v63 = vld [vmem:[#allocation8 + $0x460] sm:$0xff] }
  0xa4   :  { %3563 = vmatprep.subr.bf16.mxu0 %v4984_v16  ;;  %3726 = vmatpush1.bf16.msra.mxu1 %v4977_v17  ;;  %v5050_v16 = vcombine.high %v544_v10, %v548_v11  ;;  %v5047_v17 = vcombine.low %v543_v6, %v547_v7  ;;  %v583_v10 = vld [vmem:[#allocation8 + $0x480] sm:$0xff] }
  0xa5   :  { %3727 = vmatprep.subr.bf16.mxu1 %v4986_v20  ;;  %v555_v20 = vld [vmem:[#allocation8 + $0x3a0] sm:$0xff] }
  0xa6   :  { %v5056_v22 = vcombine.high %v551_v19, %v555_v20  ;;  %v587_v11 = vld [vmem:[#allocation8 + $0x4a0] sm:$0xff] }
  0xa7   :  { %3564 = vmatpush1.bf16.msra.mxu0 %v4983_v21  ;;  %v552_v21 = vld [vmem:[#allocation8 + $0x388] sm:$0xff] }
  0xa8   :  { %3565 = vmatprep.subr.bf16.mxu0 %v4992_v24  ;;  %3728 = vmatpush1.bf16.msra.mxu1 %v4985_v25  ;;  %v5055_v24 = vcombine.low %v551_v19, %v555_v20  ;;  %v5057_v25 = vcombine.low %v552_v21, %v556_v23  ;;  %v5058_v26 = vcombine.high %v552_v21, %v556_v23 }
  0xa9   :  { %3729 = vmatprep.subr.bf16.mxu1 %v4994_v28  ;;  %v563_v28 = vld [vmem:[#allocation8 + $0x3e0] sm:$0xff]  ;;  %v5088_v20 = vcombine.high %v583_v10, %v587_v11 }
  0xaa   :  { %v5064_v30 = vcombine.high %v559_v27, %v563_v28 }
  0xab   :  { %3566 = vmatpush1.bf16.msra.mxu0 %v4991_v29  ;;  %v560_v29 = vld [vmem:[#allocation8 + $0x3c8] sm:$0xff] }
  0xac   :  { %3567 = vmatprep.subr.bf16.mxu0 %v5000_v32  ;;  %3730 = vmatpush1.bf16.msra.mxu1 %v4993_v33  ;;  %v5063_v32 = vcombine.low %v559_v27, %v563_v28  ;;  %v5065_v33 = vcombine.low %v560_v29, %v564_v31  ;;  %v5066_v34 = vcombine.high %v560_v29, %v564_v31  ;;  %v599_v31 = vld [vmem:[#allocation8 + $0x500] sm:$0xff] }
  0xad   :  { %3731 = vmatprep.subr.bf16.mxu1 %v5002_v36  ;;  %v571_v36 = vld [vmem:[#allocation8 + $0x420] sm:$0xff]  ;;  %v5087_v27 = vcombine.low %v583_v10, %v587_v11 }
  0xae   :  { %v5072_v38 = vcombine.high %v567_v35, %v571_v36  ;;  %v631_v11 = vld [vmem:[#allocation8 + $0x600] sm:$0xff] }
  0xaf   :  { %3568 = vmatpush1.bf16.msra.mxu0 %v4999_v37  ;;  %v568_v37 = vld [vmem:[#allocation8 + $0x408] sm:$0xff] }
  0xb0   :  { %3569 = vmatprep.subr.bf16.mxu0 %v5008_v40  ;;  %3732 = vmatpush1.bf16.msra.mxu1 %v5001_v41  ;;  %v5071_v40 = vcombine.low %v567_v35, %v571_v36  ;;  %v5073_v41 = vcombine.low %v568_v37, %v572_v39  ;;  %v5074_v42 = vcombine.high %v568_v37, %v572_v39  ;;  %v607_v39 = vld [vmem:[#allocation8 + $0x540] sm:$0xff] }
  0xb1   :  { %3733 = vmatprep.subr.bf16.mxu1 %v5010_v44  ;;  %v6069_v44 = vshrl.u32 %v135_v43, 7 }
  0xb3   :  { %3570 = vmatpush1.bf16.msra.mxu0 %v5007_v45  ;;  %v137_v45 = vsub.s32 0, %v6069_v44  ;;  %v141_v47 = vsub.s32 1, %v6069_v44 }
  0xb4   :  { %3571 = vmatprep.subr.bf16.mxu0 %v5016_v48  ;;  %3734 = vmatpush1.bf16.msra.mxu1 %v5009_v49  ;;  %v149_v48 = vsub.s32 3, %v6069_v44 }
  0xb5   :  { %3735 = vmatprep.subr.bf16.mxu1 %v5018_v52  ;;  %v138_v49 = vrot.slane %v6072_v46, %v137_v45  ;;  %v142_v50 = vrot.slane %v6072_v46, %v141_v47 }
  0xb6   :  { %v150_v52 = vrot.slane %v6072_v46, %v149_v48 }
  0xb7   :  { %3572 = vmatpush1.bf16.msra.mxu0 %v5015_v53 }
  0xb8   :  { %3573 = vmatprep.subr.bf16.mxu0 %v5024_v56  ;;  %3736 = vmatpush1.bf16.msra.mxu1 %v5017_v57 }
  0xb9   :  { %3737 = vmatprep.subr.bf16.mxu1 %v5026_v60  ;;  %v575_v60 = vld [vmem:[#allocation8 + $0x440] sm:$0xff] }
  0xbb   :  { %3574 = vmatpush1.bf16.msra.mxu0 %v5023_v61 }
  0xbc   :  { %3575 = vmatprep.subr.bf16.mxu0 %v5032_v0  ;;  %3738 = vmatpush1.bf16.msra.mxu1 %v5025_v1  ;;  %v576_v0 = vld [vmem:[#allocation8 + $0x448] sm:$0xff] }
  0xbd   :  { %3739 = vmatprep.subr.bf16.mxu1 %v5034_v4  ;;  %v580_v1 = vld [vmem:[#allocation8 + $0x468] sm:$0xff] }
  0xbf   :  { %3576 = vmatpush1.bf16.msra.mxu0 %v5031_v5 }
  0xc0   :  { %3577 = vmatprep.subr.bf16.mxu0 %v5040_v8  ;;  %3740 = vmatpush1.bf16.msra.mxu1 %v5033_v9  ;;  %v5080_v8 = vcombine.high %v575_v60, %v579_v63  ;;  %v5082_v9 = vcombine.high %v576_v0, %v580_v1 }
  0xc1   :  { %3741 = vmatprep.subr.bf16.mxu1 %v5042_v12  ;;  %v584_v12 = vld [vmem:[#allocation8 + $0x488] sm:$0xff] }
  0xc3   :  { %3578 = vmatpush1.bf16.msra.mxu0 %v5039_v13  ;;  %v588_v13 = vld [vmem:[#allocation8 + $0x4a8] sm:$0xff] }
  0xc4   :  { %3579 = vmatprep.subr.bf16.mxu0 %v5048_v14  ;;  %3742 = vmatpush1.bf16.msra.mxu1 %v5041_v15  ;;  %v5090_v21 = vcombine.high %v584_v12, %v588_v13  ;;  %v5089_v28 = vcombine.low %v584_v12, %v588_v13  ;;  %v635_v12 = vld [vmem:[#allocation8 + $0x620] sm:$0xff]  ;;  %v632_v13 = vld [vmem:[#allocation8 + $0x608] sm:$0xff] }
  0xc5   :  { %3743 = vmatprep.subr.bf16.mxu1 %v5050_v16 }
  0xc7   :  { %3580 = vmatpush1.bf16.msra.mxu0 %v5047_v17  ;;  %v5079_v17 = vcombine.low %v575_v60, %v579_v63 }
  0xc8   :  { %3744 = vmatpush1.bf16.msra.mxu1 %v5049_v18  ;;  %3581 = vmatprep.subr.bf16.mxu0 %v5056_v22  ;;  %v5081_v18 = vcombine.low %v576_v0, %v580_v1  ;;  %v591_v22 = vld [vmem:[#allocation8 + $0x4c0] sm:$0xff]  ;;  %v624_v1 = vld [vmem:[#allocation8 + $0x5c8] sm:$0xff] }
  0xc9   :  { %3745 = vmatprep.subr.bf16.mxu1 %v5058_v26  ;;  %v596_v26 = vld [vmem:[#allocation8 + $0x4e8] sm:$0xff]  ;;  %v627_v0 = vld [vmem:[#allocation8 + $0x5e0] sm:$0xff] }
  0xcb   :  { %3582 = vmatpush1.bf16.msra.mxu0 %v5055_v24  ;;  %v595_v24 = vld [vmem:[#allocation8 + $0x4e0] sm:$0xff] }
  0xcc   :  { %3746 = vmatpush1.bf16.msra.mxu1 %v5057_v25  ;;  %3583 = vmatprep.subr.bf16.mxu0 %v5064_v30  ;;  %v592_v25 = vld [vmem:[#allocation8 + $0x4c8] sm:$0xff]  ;;  %v5096_v29 = vcombine.high %v591_v22, %v595_v24  ;;  %v5095_v35 = vcombine.low %v591_v22, %v595_v24  ;;  %v639_v22 = vld [vmem:[#allocation8 + $0x640] sm:$0xff] }
  0xcd   :  { %3747 = vmatprep.subr.bf16.mxu1 %v5066_v34  ;;  %v5098_v30 = vcombine.high %v592_v25, %v596_v26  ;;  %v604_v34 = vld [vmem:[#allocation8 + $0x528] sm:$0xff]  ;;  %v5097_v36 = vcombine.low %v592_v25, %v596_v26  ;;  %v5135_v26 = vcombine.low %v631_v11, %v635_v12 }
  0xce   :  { %v640_v24 = vld [vmem:[#allocation8 + $0x648] sm:$0xff] }
  0xcf   :  { %3584 = vmatpush1.bf16.msra.mxu0 %v5063_v32  ;;  %v603_v32 = vld [vmem:[#allocation8 + $0x520] sm:$0xff]  ;;  %v644_v25 = vld [vmem:[#allocation8 + $0x668] sm:$0xff] }
  0xd0   :  { %3748 = vmatpush1.bf16.msra.mxu1 %v5065_v33  ;;  %3594 = vmatprep.subr.bf16.mxu0 %v5072_v38  ;;  %v600_v33 = vld [vmem:[#allocation8 + $0x508] sm:$0xff]  ;;  %v5104_v37 = vcombine.high %v599_v31, %v603_v32  ;;  %v5103_v43 = vcombine.low %v599_v31, %v603_v32  ;;  %v651_v31 = vld [vmem:[#allocation8 + $0x6a0] sm:$0xff] }
  0xd1   :  { %3758 = vmatprep.subr.bf16.mxu1 %v5074_v42  ;;  %v5106_v38 = vcombine.high %v600_v33, %v604_v34  ;;  %v612_v42 = vld [vmem:[#allocation8 + $0x568] sm:$0xff] }
  0xd2   :  { %v648_v32 = vld [vmem:[#allocation8 + $0x688] sm:$0xff] }
 0x15d   :  { %v293_v51 = vpop.f32.mrb[0].mxu0  ;;  %v6085_v57 = vpop.f32.mrb[0].mxu1 }
 0x15e   :  { %v294_v53 = vadd.f32 %v293_v51, %v138_v49  ;;  %v295_v54 = vpop.f32.mrb[1].mxu0  ;;  %v336_v61 = vpop.f32.mrb[1].mxu1  ;;  %v5105_v49 = vcombine.low %v600_v33, %v604_v34  ;;  %v652_v33 = vld [vmem:[#allocation8 + $0x6a8] sm:$0xff] }
 0x15f   :  { %v296_v55 = vadd.f32 %v295_v54, %v142_v50  ;;  %v297_v56 = vpop.f32.mrb[2].mxu0  ;;  %v337_v2 = vadd.f32 %v336_v61, %v150_v52  ;;  %v338_v3 = vpop.f32.mrb[2].mxu1  ;;  %v615_v52 = vld [vmem:[#allocation8 + $0x580] sm:$0xff]  ;;  %v616_v54 = vld [vmem:[#allocation8 + $0x588] sm:$0xff] }
 0x160   :  { %v423_v58 = vmax.f32 %v294_v53, 0.0  ;;  %v298_v59 = vpop.f32.mrb[3].mxu0  ;;  %v339_v4 = vpop.f32.mrb[3].mxu1  ;;  %v619_v53 = vld [vmem:[#allocation8 + $0x5a0] sm:$0xff] }
 0x161   :  { %v424_v62 = vmax.f32 %v296_v55, 0.0  ;;  %v426_v6 = vmax.f32 %v337_v2, 0.0  ;;  %v620_v55 = vld [vmem:[#allocation8 + $0x5a8] sm:$0xff]  ;;  %v5120_v60 = vcombine.high %v615_v52, %v619_v53 }
 0x162   :  { %v6089_v7 = vpack.c.bf16 %v423_v58, %v423_v58  ;;  %v5122_v61 = vcombine.high %v616_v54, %v620_v55  ;;  %v628_v2 = vld [vmem:[#allocation8 + $0x5e8] sm:$0xff] }
 0x163   :  { %v6087_v5 = vpack.c.bf16 %v424_v62, %v424_v62  ;;  %v6093_v14 = vpack.c.bf16 %v426_v6, %v426_v6  ;;  %v623_v62 = vld [vmem:[#allocation8 + $0x5c0] sm:$0xff]  ;;  %v5119_v6 = vcombine.low %v615_v52, %v619_v53  ;;  %v5130_v10 = vcombine.high %v624_v1, %v628_v2  ;;  %v664_v53 = vld [vmem:[#allocation8 + $0x708] sm:$0xff] }
 0x164   :  { %v667_v52 = vld [vmem:[#allocation8 + $0x720] sm:$0xff] }
 0x165   :  { %3585 = vmatprep.mubr.bf16.mxu0 %v6087_v5  ;;  %3749 = vmatprep.mubr.bf16.mxu1 %v6087_v5  ;;  %v6095_v15 = vpop.f32.mrb[4].mxu0 }
 0x166   :  { %3586 = vmatmul.mubr.bf16.vlgmr.msra.gmra.mrb[8].mxu0 %v6089_v7  ;;  %3750 = vmatmul.mubr.bf16.vlgmr.msra.gmra.mrb[8].mxu1 %v6089_v7  ;;  %v6099_v16 = vpop.f32.mrb[5].mxu0  ;;  %v6103_v59 = vpop.f32.mrb[4].mxu1 }
 0x167   :  { %3595 = vmatpush1.bf16.msra.mxu0 %v5071_v40  ;;  %3759 = vmatpush1.bf16.msra.mxu1 %v5073_v41  ;;  %v379_v19 = vpop.f32.mrb[6].mxu0  ;;  %v611_v40 = vld [vmem:[#allocation8 + $0x560] sm:$0xff]  ;;  %v608_v41 = vld [vmem:[#allocation8 + $0x548] sm:$0xff]  ;;  %v6105_v63 = vpop.f32.mrb[5].mxu1 }
 0x168   :  { %3596 = vmatprep.subr.bf16.mxu0 %v5080_v8  ;;  %3760 = vmatprep.subr.bf16.mxu1 %v5082_v9  ;;  %v380_v23 = vpop.f32.mrb[7].mxu0  ;;  %v5112_v50 = vcombine.high %v607_v39, %v611_v40  ;;  %v5114_v51 = vcombine.high %v608_v41, %v612_v42  ;;  %v5111_v56 = vcombine.low %v607_v39, %v611_v40  ;;  %v420_v3 = vpop.f32.mrb[6].mxu1  ;;  %v659_v39 = vld [vmem:[#allocation8 + $0x6e0] sm:$0xff]  ;;  %v656_v40 = vld [vmem:[#allocation8 + $0x6c8] sm:$0xff] }
 0x169   :  { %3626 = vmatprep.mubr.bf16.mxu0 %v6093_v14  ;;  %3790 = vmatprep.mubr.bf16.mxu1 %v6093_v14  ;;  %v5113_v58 = vcombine.low %v608_v41, %v612_v42  ;;  %v421_v4 = vpop.f32.mrb[7].mxu1  ;;  %v5121_v8 = vcombine.low %v616_v54, %v620_v55  ;;  %v5128_v9 = vcombine.high %v623_v62, %v627_v0  ;;  %v643_v23 = vld [vmem:[#allocation8 + $0x660] sm:$0xff]  ;;  %v660_v41 = vld [vmem:[#allocation8 + $0x6e8] sm:$0xff] }
 0x16a   :  { %v5129_v19 = vcombine.low %v624_v1, %v628_v2  ;;  %v5143_v34 = vcombine.low %v639_v22, %v643_v23  ;;  %v668_v54 = vld [vmem:[#allocation8 + $0x728] sm:$0xff]  ;;  %v145_v2 = vsub.s32 2, %v6069_v44 }
 0x16b   :  { %3597 = vmatpush1.bf16.msra.mxu0 %v5079_v17  ;;  %3761 = vmatpush1.bf16.msra.mxu1 %v5081_v18  ;;  %v636_v17 = vld [vmem:[#allocation8 + $0x628] sm:$0xff]  ;;  %v5127_v18 = vcombine.low %v623_v62, %v627_v0  ;;  %v675_v62 = vld [vmem:[#allocation8 + $0x760] sm:$0xff]  ;;  %v5169_v4 = vcombine.low %v664_v53, %v668_v54 }
 0x16c   :  { %3598 = vmatprep.subr.bf16.mxu0 %v5088_v20  ;;  %3762 = vmatprep.subr.bf16.mxu1 %v5090_v21  ;;  %v5136_v20 = vcombine.high %v631_v11, %v635_v12  ;;  %v5138_v21 = vcombine.high %v632_v13, %v636_v17  ;;  %v672_v0 = vld [vmem:[#allocation8 + $0x748] sm:$0xff] }
 0x16d   :  { %v676_v1 = vld [vmem:[#allocation8 + $0x768] sm:$0xff] }
 0x16e   :  { %v680_v11 = vld [vmem:[#allocation8 + $0x788] sm:$0xff] }
 0x16f   :  { %3599 = vmatpush1.bf16.msra.mxu0 %v5087_v27  ;;  %3763 = vmatpush1.bf16.msra.mxu1 %v5089_v28  ;;  %v5137_v27 = vcombine.low %v632_v13, %v636_v17  ;;  %v5144_v28 = vcombine.high %v639_v22, %v643_v23  ;;  %v684_v12 = vld [vmem:[#allocation8 + $0x7a8] sm:$0xff]  ;;  %v157_v13 = vsub.s32 5, %v6069_v44  ;;  %v146_v17 = vrot.slane %v6072_v46, %v145_v2  ;;  %v687_v22 = vld [vmem:[#allocation8 + $0x7c0] sm:$0xff] }
 0x170   :  { %3600 = vmatprep.subr.bf16.mxu0 %v5096_v29  ;;  %3764 = vmatprep.subr.bf16.mxu1 %v5098_v30  ;;  %v5146_v29 = vcombine.high %v640_v24, %v644_v25  ;;  %v647_v30 = vld [vmem:[#allocation8 + $0x680] sm:$0xff] }
 0x171   :  { %v5151_v42 = vcombine.low %v647_v30, %v651_v31  ;;  %v691_v23 = vld [vmem:[#allocation8 + $0x7e0] sm:$0xff] }
 0x173   :  { %3601 = vmatpush1.bf16.msra.mxu0 %v5095_v35  ;;  %3765 = vmatpush1.bf16.msra.mxu1 %v5097_v36  ;;  %v5145_v35 = vcombine.low %v640_v24, %v644_v25  ;;  %v5152_v36 = vcombine.high %v647_v30, %v651_v31  ;;  %v688_v24 = vld [vmem:[#allocation8 + $0x7c8] sm:$0xff]  ;;  %v5192_v30 = vcombine.high %v687_v22, %v691_v23 }
 0x174   :  { %3602 = vmatprep.subr.bf16.mxu0 %v5104_v37  ;;  %3766 = vmatprep.subr.bf16.mxu1 %v5106_v38  ;;  %v5154_v37 = vcombine.high %v648_v32, %v652_v33  ;;  %v655_v38 = vld [vmem:[#allocation8 + $0x6c0] sm:$0xff]  ;;  %v692_v25 = vld [vmem:[#allocation8 + $0x7e8] sm:$0xff] }
 0x175   :  { %v5159_v55 = vcombine.low %v655_v38, %v659_v39  ;;  %v5194_v31 = vcombine.high %v688_v24, %v692_v25 }
 0x177   :  { %3603 = vmatpush1.bf16.msra.mxu0 %v5103_v43  ;;  %3767 = vmatpush1.bf16.msra.mxu1 %v5105_v49  ;;  %v5153_v43 = vcombine.low %v648_v32, %v652_v33  ;;  %v5160_v49 = vcombine.high %v655_v38, %v659_v39  ;;  %v695_v32 = vld [vmem:[#allocation8 + $0x800] sm:$0xff]  ;;  %v5191_v38 = vcombine.low %v687_v22, %v691_v23 }
 0x178   :  { %3604 = vmatprep.subr.bf16.mxu0 %v5112_v50  ;;  %3768 = vmatprep.subr.bf16.mxu1 %v5114_v51  ;;  %v5162_v50 = vcombine.high %v656_v40, %v660_v41  ;;  %v663_v51 = vld [vmem:[#allocation8 + $0x700] sm:$0xff]  ;;  %v5193_v39 = vcombine.low %v688_v24, %v692_v25 }
 0x179   :  { %v5167_v3 = vcombine.low %v663_v51, %v667_v52  ;;  %v699_v33 = vld [vmem:[#allocation8 + $0x820] sm:$0xff] }
 0x17b   :  { %3605 = vmatpush1.bf16.msra.mxu0 %v5111_v56  ;;  %3769 = vmatpush1.bf16.msra.mxu1 %v5113_v58  ;;  %v5161_v56 = vcombine.low %v656_v40, %v660_v41  ;;  %v5168_v58 = vcombine.high %v663_v51, %v667_v52  ;;  %v703_v41 = vld [vmem:[#allocation8 + $0x840] sm:$0xff]  ;;  %v5199_v52 = vcombine.low %v695_v32, %v699_v33 }
 0x17c   :  { %3606 = vmatprep.subr.bf16.mxu0 %v5120_v60  ;;  %3770 = vmatprep.subr.bf16.mxu1 %v5122_v61  ;;  %v5170_v60 = vcombine.high %v664_v53, %v668_v54  ;;  %v671_v61 = vld [vmem:[#allocation8 + $0x740] sm:$0xff] }
 0x17f   :  { %3607 = vmatpush1.bf16.msra.mxu0 %v5119_v6  ;;  %3771 = vmatpush1.bf16.msra.mxu1 %v5121_v8  ;;  %v5176_v6 = vcombine.high %v671_v61, %v675_v62  ;;  %v5178_v8 = vcombine.high %v672_v0, %v676_v1 }
 0x180   :  { %3608 = vmatprep.subr.bf16.mxu0 %v5128_v9  ;;  %3772 = vmatprep.subr.bf16.mxu1 %v5130_v10  ;;  %v679_v9 = vld [vmem:[#allocation8 + $0x780] sm:$0xff] }
 0x181   :  { %v683_v10 = vld [vmem:[#allocation8 + $0x7a0] sm:$0xff] }
 0x183   :  { %3609 = vmatpush1.bf16.msra.mxu0 %v5127_v18  ;;  %3773 = vmatpush1.bf16.msra.mxu1 %v5129_v19  ;;  %v5175_v18 = vcombine.low %v671_v61, %v675_v62  ;;  %v5177_v19 = vcombine.low %v672_v0, %v676_v1 }
 0x184   :  { %3610 = vmatprep.subr.bf16.mxu0 %v5136_v20  ;;  %3774 = vmatprep.subr.bf16.mxu1 %v5138_v21  ;;  %v5184_v20 = vcombine.high %v679_v9, %v683_v10  ;;  %v5186_v21 = vcombine.high %v680_v11, %v684_v12 }
 0x187   :  { %3611 = vmatpush1.bf16.msra.mxu0 %v5135_v26  ;;  %3775 = vmatpush1.bf16.msra.mxu1 %v5137_v27  ;;  %v158_v26 = vrot.slane %v6072_v46, %v157_v13  ;;  %v335_v27 = vadd.f32 %v6085_v57, %v146_v17  ;;  %v5200_v57 = vcombine.high %v695_v32, %v699_v33 }
 0x188   :  { %3612 = vmatprep.subr.bf16.mxu0 %v5144_v28  ;;  %3776 = vmatprep.subr.bf16.mxu1 %v5146_v29  ;;  %v5183_v28 = vcombine.low %v679_v9, %v683_v10  ;;  %v5185_v29 = vcombine.low %v680_v11, %v684_v12  ;;  %v724_v9 = vld [vmem:[#allocation8 + $0x8e8] sm:$0xff] }
 0x18b   :  { %3613 = vmatpush1.bf16.msra.mxu0 %v5143_v34  ;;  %3777 = vmatpush1.bf16.msra.mxu1 %v5145_v35  ;;  %v696_v34 = vld [vmem:[#allocation8 + $0x808] sm:$0xff] }
 0x18c   :  { %3614 = vmatprep.subr.bf16.mxu0 %v5152_v36  ;;  %3778 = vmatprep.subr.bf16.mxu1 %v5154_v37  ;;  %v700_v35 = vld [vmem:[#allocation8 + $0x828] sm:$0xff]  ;;  %v378_v36 = vadd.f32 %v6099_v16, %v158_v26  ;;  %v425_v37 = vmax.f32 %v335_v27, 0.0  ;;  %v735_v26 = vld [vmem:[#allocation8 + $0x940] sm:$0xff] }
 0x18d   :  { %v5202_v40 = vcombine.high %v696_v34, %v700_v35  ;;  %v5201_v16 = vcombine.low %v696_v34, %v700_v35  ;;  %v739_v27 = vld [vmem:[#allocation8 + $0x960] sm:$0xff] }
 0x18e   :  { %v6117_v51 = vpack.c.bf16 %v425_v37, %v425_v37  ;;  %v5240_v32 = vcombine.high %v735_v26, %v739_v27  ;;  %v743_v34 = vld [vmem:[#allocation8 + $0x980] sm:$0xff]  ;;  %v748_v37 = vld [vmem:[#allocation8 + $0x9a8] sm:$0xff] }
 0x18f   :  { %3615 = vmatpush1.bf16.msra.mxu0 %v5151_v42  ;;  %3779 = vmatpush1.bf16.msra.mxu1 %v5153_v43  ;;  %v707_v42 = vld [vmem:[#allocation8 + $0x860] sm:$0xff]  ;;  %v704_v43 = vld [vmem:[#allocation8 + $0x848] sm:$0xff] }
 0x190   :  { %3616 = vmatprep.subr.bf16.mxu0 %v5160_v49  ;;  %3780 = vmatprep.subr.bf16.mxu1 %v5162_v50  ;;  %v708_v49 = vld [vmem:[#allocation8 + $0x868] sm:$0xff]  ;;  %v428_v50 = vmax.f32 %v378_v36, 0.0  ;;  %v5208_v53 = vcombine.high %v703_v41, %v707_v42  ;;  %v5207_v62 = vcombine.low %v703_v41, %v707_v42  ;;  %v747_v35 = vld [vmem:[#allocation8 + $0x9a0] sm:$0xff] }
 0x191   :  { %v5210_v54 = vcombine.high %v704_v43, %v708_v49  ;;  %v5209_v0 = vcombine.low %v704_v43, %v708_v49  ;;  %v744_v36 = vld [vmem:[#allocation8 + $0x988] sm:$0xff]  ;;  %v751_v41 = vld [vmem:[#allocation8 + $0x9c0] sm:$0xff] }
 0x192   :  { %v6119_v61 = vpack.c.bf16 %v428_v50, %v428_v50  ;;  %v755_v42 = vld [vmem:[#allocation8 + $0x9e0] sm:$0xff]  ;;  %v752_v43 = vld [vmem:[#allocation8 + $0x9c8] sm:$0xff]  ;;  %v5247_v50 = vcombine.low %v743_v34, %v747_v35 }
 0x193   :  { %3617 = vmatpush1.bf16.msra.mxu0 %v5159_v55  ;;  %3781 = vmatpush1.bf16.msra.mxu1 %v5161_v56  ;;  %v711_v55 = vld [vmem:[#allocation8 + $0x880] sm:$0xff]  ;;  %v756_v49 = vld [vmem:[#allocation8 + $0x9e8] sm:$0xff] }
 0x194   :  { %3618 = vmatprep.subr.bf16.mxu0 %v5168_v58  ;;  %3782 = vmatprep.subr.bf16.mxu1 %v5170_v60  ;;  %v715_v56 = vld [vmem:[#allocation8 + $0x8a0] sm:$0xff]  ;;  %v712_v58 = vld [vmem:[#allocation8 + $0x888] sm:$0xff] }
 0x195   :  { %v716_v60 = vld [vmem:[#allocation8 + $0x8a8] sm:$0xff]  ;;  %v5216_v1 = vcombine.high %v711_v55, %v715_v56  ;;  %v5215_v10 = vcombine.low %v711_v55, %v715_v56  ;;  %v763_v55 = vld [vmem:[#allocation8 + $0xa20] sm:$0xff] }
 0x196   :  { %v5217_v11 = vcombine.low %v712_v58, %v716_v60  ;;  %v760_v56 = vld [vmem:[#allocation8 + $0xa08] sm:$0xff] }
 0x197   :  { %3619 = vmatpush1.bf16.msra.mxu0 %v5167_v3  ;;  %3783 = vmatpush1.bf16.msra.mxu1 %v5169_v4  ;;  %v5218_v3 = vcombine.high %v712_v58, %v716_v60  ;;  %v719_v4 = vld [vmem:[#allocation8 + $0x8c0] sm:$0xff]  ;;  %v764_v58 = vld [vmem:[#allocation8 + $0xa28] sm:$0xff]  ;;  %v5255_v60 = vcombine.low %v751_v41, %v755_v42 }
 0x198   :  { %3620 = vmatprep.subr.bf16.mxu0 %v5176_v6  ;;  %3784 = vmatprep.subr.bf16.mxu1 %v5178_v8  ;;  %v723_v6 = vld [vmem:[#allocation8 + $0x8e0] sm:$0xff]  ;;  %v720_v8 = vld [vmem:[#allocation8 + $0x8c8] sm:$0xff] }
 0x199   :  { %v5224_v12 = vcombine.high %v719_v4, %v723_v6  ;;  %v5226_v17 = vcombine.high %v720_v8, %v724_v9  ;;  %v5223_v22 = vcombine.low %v719_v4, %v723_v6  ;;  %v5225_v23 = vcombine.low %v720_v8, %v724_v9  ;;  %v771_v4 = vld [vmem:[#allocation8 + $0xa60] sm:$0xff]  ;;  %v768_v6 = vld [vmem:[#allocation8 + $0xa48] sm:$0xff] }
 0x19a   :  { %v772_v8 = vld [vmem:[#allocation8 + $0xa68] sm:$0xff] }
 0x19b   :  { %3621 = vmatpush1.bf16.msra.mxu0 %v5175_v18  ;;  %3785 = vmatpush1.bf16.msra.mxu1 %v5177_v19  ;;  %v727_v18 = vld [vmem:[#allocation8 + $0x900] sm:$0xff] }
 0x19c   :  { %3622 = vmatprep.subr.bf16.mxu0 %v5184_v20  ;;  %3786 = vmatprep.subr.bf16.mxu1 %v5186_v21  ;;  %v731_v19 = vld [vmem:[#allocation8 + $0x920] sm:$0xff]  ;;  %v728_v20 = vld [vmem:[#allocation8 + $0x908] sm:$0xff] }
 0x19d   :  { %v732_v21 = vld [vmem:[#allocation8 + $0x928] sm:$0xff]  ;;  %v5232_v24 = vcombine.high %v727_v18, %v731_v19 }
 0x19e   :  { %v5234_v25 = vcombine.high %v728_v20, %v732_v21 }
 0x19f   :  { %3623 = vmatpush1.bf16.msra.mxu0 %v5183_v28  ;;  %3787 = vmatpush1.bf16.msra.mxu1 %v5185_v29  ;;  %v736_v28 = vld [vmem:[#allocation8 + $0x948] sm:$0xff] }
 0x1a0   :  { %3624 = vmatprep.subr.bf16.mxu0 %v5192_v30  ;;  %3788 = vmatprep.subr.bf16.mxu1 %v5194_v31  ;;  %v740_v29 = vld [vmem:[#allocation8 + $0x968] sm:$0xff]  ;;  %v5231_v30 = vcombine.low %v727_v18, %v731_v19  ;;  %v5233_v31 = vcombine.low %v728_v20, %v732_v21  ;;  %v779_v18 = vld [vmem:[#allocation8 + $0xaa0] sm:$0xff] }
 0x1a1   :  { %v5242_v33 = vcombine.high %v736_v28, %v740_v29  ;;  %v776_v19 = vld [vmem:[#allocation8 + $0xa88] sm:$0xff] }
 0x1a2   :  { %v780_v20 = vld [vmem:[#allocation8 + $0xaa8] sm:$0xff] }
 0x1a3   :  { %3625 = vmatpush1.bf16.msra.mxu0 %v5191_v38  ;;  %3789 = vmatpush1.bf16.msra.mxu1 %v5193_v39  ;;  %v5239_v38 = vcombine.low %v735_v26, %v739_v27  ;;  %v5241_v39 = vcombine.low %v736_v28, %v740_v29  ;;  %v787_v26 = vld [vmem:[#allocation8 + $0xae0] sm:$0xff]  ;;  %v784_v27 = vld [vmem:[#allocation8 + $0xac8] sm:$0xff] }
 0x1a4   :  { %3635 = vmatprep.subr.bf16.mxu0 %v5200_v57  ;;  %3799 = vmatprep.subr.bf16.mxu1 %v5202_v40  ;;  %v5248_v57 = vcombine.high %v743_v34, %v747_v35  ;;  %v5250_v40 = vcombine.high %v744_v36, %v748_v37  ;;  %v788_v28 = vld [vmem:[#allocation8 + $0xae8] sm:$0xff]  ;;  %v795_v34 = vld [vmem:[#allocation8 + $0xb20] sm:$0xff] }
 0x1a5   :  { %v792_v35 = vld [vmem:[#allocation8 + $0xb08] sm:$0xff] }
 0x1a6   :  { %3627 = vmatmul.mubr.bf16.vlgmr.msra.gmra.mrb[8].mxu0 %v6117_v51  ;;  %3791 = vmatmul.mubr.bf16.vlgmr.msra.gmra.mrb[8].mxu1 %v6117_v51 }
 0x1a7   :  { %3636 = vmatpush1.bf16.msra.mxu0 %v5199_v52  ;;  %3800 = vmatpush1.bf16.msra.mxu1 %v5201_v16  ;;  %v5249_v52 = vcombine.low %v744_v36, %v748_v37  ;;  %v5256_v16 = vcombine.high %v751_v41, %v755_v42  ;;  %v796_v36 = vld [vmem:[#allocation8 + $0xb28] sm:$0xff]  ;;  %v803_v41 = vld [vmem:[#allocation8 + $0xb60] sm:$0xff] }
 0x1a8   :  { %3637 = vmatprep.subr.bf16.mxu0 %v5208_v53  ;;  %3801 = vmatprep.subr.bf16.mxu1 %v5210_v54  ;;  %v5258_v53 = vcombine.high %v752_v43, %v756_v49  ;;  %v759_v54 = vld [vmem:[#allocation8 + $0xa00] sm:$0xff]  ;;  %v800_v42 = vld [vmem:[#allocation8 + $0xb48] sm:$0xff] }
 0x1a9   :  { %3667 = vmatprep.mubr.bf16.mxu0 %v6119_v61  ;;  %3831 = vmatprep.mubr.bf16.mxu1 %v6119_v61  ;;  %v5263_v9 = vcombine.low %v759_v54, %v763_v55 }
 0x1ab   :  { %3638 = vmatpush1.bf16.msra.mxu0 %v5207_v62  ;;  %3802 = vmatpush1.bf16.msra.mxu1 %v5209_v0  ;;  %v5257_v62 = vcombine.low %v752_v43, %v756_v49  ;;  %v5264_v0 = vcombine.high %v759_v54, %v763_v55  ;;  %v804_v43 = vld [vmem:[#allocation8 + $0xb68] sm:$0xff]  ;;  %v153_v49 = vsub.s32 4, %v6069_v44  ;;  %v807_v54 = vld [vmem:[#allocation8 + $0xb80] sm:$0xff] }
 0x1ac   :  { %3639 = vmatprep.subr.bf16.mxu0 %v5216_v1  ;;  %3803 = vmatprep.subr.bf16.mxu1 %v5218_v3  ;;  %v5266_v1 = vcombine.high %v760_v56, %v764_v58  ;;  %v767_v3 = vld [vmem:[#allocation8 + $0xa40] sm:$0xff] }
 0x1ad   :  { %v5271_v21 = vcombine.low %v767_v3, %v771_v4  ;;  %v811_v55 = vld [vmem:[#allocation8 + $0xba0] sm:$0xff] }
 0x1af   :  { %3640 = vmatpush1.bf16.msra.mxu0 %v5215_v10  ;;  %3804 = vmatpush1.bf16.msra.mxu1 %v5217_v11  ;;  %v5265_v10 = vcombine.low %v760_v56, %v764_v58  ;;  %v5272_v11 = vcombine.high %v767_v3, %v771_v4  ;;  %v808_v56 = vld [vmem:[#allocation8 + $0xb88] sm:$0xff]  ;;  %v5312_v3 = vcombine.high %v807_v54, %v811_v55 }
 0x1b0   :  { %3641 = vmatprep.subr.bf16.mxu0 %v5224_v12  ;;  %3805 = vmatprep.subr.bf16.mxu1 %v5226_v17  ;;  %v5274_v12 = vcombine.high %v768_v6, %v772_v8  ;;  %v775_v17 = vld [vmem:[#allocation8 + $0xa80] sm:$0xff]  ;;  %v812_v58 = vld [vmem:[#allocation8 + $0xba8] sm:$0xff] }
 0x1b1   :  { %v5279_v29 = vcombine.low %v775_v17, %v779_v18  ;;  %v5314_v4 = vcombine.high %v808_v56, %v812_v58 }
 0x1b3   :  { %3642 = vmatpush1.bf16.msra.mxu0 %v5223_v22  ;;  %3806 = vmatpush1.bf16.msra.mxu1 %v5225_v23  ;;  %v5273_v22 = vcombine.low %v768_v6, %v772_v8  ;;  %v5280_v23 = vcombine.high %v775_v17, %v779_v18  ;;  %v815_v6 = vld [vmem:[#allocation8 + $0xbc0] sm:$0xff]  ;;  %v5311_v17 = vcombine.low %v807_v54, %v811_v55  ;;  %v848_v54 = vld [vmem:[#allocation8 + $0xcc8] sm:$0xff] }
 0x1b4   :  { %3643 = vmatprep.subr.bf16.mxu0 %v5232_v24  ;;  %3807 = vmatprep.subr.bf16.mxu1 %v5234_v25  ;;  %v5282_v24 = vcombine.high %v776_v19, %v780_v20  ;;  %v783_v25 = vld [vmem:[#allocation8 + $0xac0] sm:$0xff]  ;;  %v5313_v18 = vcombine.low %v808_v56, %v812_v58  ;;  %v852_v55 = vld [vmem:[#allocation8 + $0xce8] sm:$0xff] }
 0x1b5   :  { %v5287_v37 = vcombine.low %v783_v25, %v787_v26  ;;  %v819_v8 = vld [vmem:[#allocation8 + $0xbe0] sm:$0xff] }
 0x1b7   :  { %3644 = vmatpush1.bf16.msra.mxu0 %v5231_v30  ;;  %3808 = vmatpush1.bf16.msra.mxu1 %v5233_v31  ;;  %v5281_v30 = vcombine.low %v776_v19, %v780_v20  ;;  %v5288_v31 = vcombine.high %v783_v25, %v787_v26  ;;  %v5320_v19 = vcombine.high %v815_v6, %v819_v8 }
 0x1b8   :  { %3645 = vmatprep.subr.bf16.mxu0 %v5240_v32  ;;  %3809 = vmatprep.subr.bf16.mxu1 %v5242_v33  ;;  %v5290_v32 = vcombine.high %v784_v27, %v788_v28  ;;  %v791_v33 = vld [vmem:[#allocation8 + $0xb00] sm:$0xff] }
 0x1bb   :  { %3646 = vmatpush1.bf16.msra.mxu0 %v5239_v38  ;;  %3810 = vmatpush1.bf16.msra.mxu1 %v5241_v39  ;;  %v5289_v38 = vcombine.low %v784_v27, %v788_v28  ;;  %v5296_v39 = vcombine.high %v791_v33, %v795_v34 }
 0x1bc   :  { %3647 = vmatprep.subr.bf16.mxu0 %v5248_v57  ;;  %3811 = vmatprep.subr.bf16.mxu1 %v5250_v40  ;;  %v5298_v57 = vcombine.high %v792_v35, %v796_v36  ;;  %v799_v40 = vld [vmem:[#allocation8 + $0xb40] sm:$0xff] }
 0x1bf   :  { %3648 = vmatpush1.bf16.msra.mxu0 %v5247_v50  ;;  %3812 = vmatpush1.bf16.msra.mxu1 %v5249_v52  ;;  %v5295_v50 = vcombine.low %v791_v33, %v795_v34  ;;  %v5297_v52 = vcombine.low %v792_v35, %v796_v36 }
 0x1c0   :  { %3649 = vmatprep.subr.bf16.mxu0 %v5256_v16  ;;  %3813 = vmatprep.subr.bf16.mxu1 %v5258_v53  ;;  %v5304_v16 = vcombine.high %v799_v40, %v803_v41  ;;  %v5306_v53 = vcombine.high %v800_v42, %v804_v43 }
 0x1c3   :  { %3650 = vmatpush1.bf16.msra.mxu0 %v5255_v60  ;;  %3814 = vmatpush1.bf16.msra.mxu1 %v5257_v62  ;;  %v165_v60 = vsub.s32 7, %v6069_v44  ;;  %v154_v62 = vrot.slane %v6072_v46, %v153_v49 }
 0x1c4   :  { %3651 = vmatprep.subr.bf16.mxu0 %v5264_v0  ;;  %3815 = vmatprep.subr.bf16.mxu1 %v5266_v1  ;;  %v5303_v0 = vcombine.low %v799_v40, %v803_v41  ;;  %v5305_v1 = vcombine.low %v800_v42, %v804_v43  ;;  %v844_v40 = vld [vmem:[#allocation8 + $0xca8] sm:$0xff] }
 0x1c7   :  { %3652 = vmatpush1.bf16.msra.mxu0 %v5263_v9  ;;  %3816 = vmatpush1.bf16.msra.mxu1 %v5265_v10  ;;  %v816_v9 = vld [vmem:[#allocation8 + $0xbc8] sm:$0xff] }
 0x1c8   :  { %3653 = vmatprep.subr.bf16.mxu0 %v5272_v11  ;;  %3817 = vmatprep.subr.bf16.mxu1 %v5274_v12  ;;  %v820_v10 = vld [vmem:[#allocation8 + $0xbe8] sm:$0xff]  ;;  %v166_v11 = vrot.slane %v6072_v46, %v165_v60  ;;  %v376_v12 = vadd.f32 %v6095_v15, %v154_v62  ;;  %v5319_v46 = vcombine.low %v815_v6, %v819_v8 }
 0x1c9   :  { %v5322_v20 = vcombine.high %v816_v9, %v820_v10  ;;  %v5321_v27 = vcombine.low %v816_v9, %v820_v10  ;;  %v860_v6 = vld [vmem:[#allocation8 + $0xd28] sm:$0xff]  ;;  %v5353_v9 = vcombine.low %v848_v54, %v852_v55 }
 0x1ca   :  { %v419_v25 = vadd.f32 %v6105_v63, %v166_v11  ;;  %v427_v26 = vmax.f32 %v376_v12, 0.0  ;;  %v863_v12 = vld [vmem:[#allocation8 + $0xd40] sm:$0xff] }
 0x1cb   :  { %3654 = vmatpush1.bf16.msra.mxu0 %v5271_v21  ;;  %3818 = vmatpush1.bf16.msra.mxu1 %v5273_v22  ;;  %v823_v21 = vld [vmem:[#allocation8 + $0xc00] sm:$0xff] }
 0x1cc   :  { %3655 = vmatprep.subr.bf16.mxu0 %v5280_v23  ;;  %3819 = vmatprep.subr.bf16.mxu1 %v5282_v24  ;;  %v827_v22 = vld [vmem:[#allocation8 + $0xc20] sm:$0xff]  ;;  %v824_v23 = vld [vmem:[#allocation8 + $0xc08] sm:$0xff]  ;;  %v430_v33 = vmax.f32 %v419_v25, 0.0  ;;  %v6135_v34 = vpack.c.bf16 %v427_v26, %v427_v26 }
 0x1cd   :  { %v828_v24 = vld [vmem:[#allocation8 + $0xc28] sm:$0xff]  ;;  %v5328_v15 = vcombine.high %v823_v21, %v827_v22  ;;  %v5327_v35 = vcombine.low %v823_v21, %v827_v22  ;;  %v875_v25 = vld [vmem:[#allocation8 + $0xda0] sm:$0xff] }
 0x1ce   :  { %v5330_v28 = vcombine.high %v824_v23, %v828_v24  ;;  %v5329_v63 = vcombine.low %v824_v23, %v828_v24  ;;  %v6137_v41 = vpack.c.bf16 %v430_v33, %v430_v33  ;;  %v871_v24 = vld [vmem:[#allocation8 + $0xd80] sm:$0xff]  ;;  %v872_v26 = vld [vmem:[#allocation8 + $0xd88] sm:$0xff] }
 0x1cf   :  { %3656 = vmatpush1.bf16.msra.mxu0 %v5279_v29  ;;  %3820 = vmatpush1.bf16.msra.mxu1 %v5281_v30  ;;  %v831_v29 = vld [vmem:[#allocation8 + $0xc40] sm:$0xff]  ;;  %v884_v33 = vld [vmem:[#allocation8 + $0xde8] sm:$0xff] }
 0x1d0   :  { %3657 = vmatprep.subr.bf16.mxu0 %v5288_v31  ;;  %3821 = vmatprep.subr.bf16.mxu1 %v5290_v32  ;;  %v835_v30 = vld [vmem:[#allocation8 + $0xc60] sm:$0xff]  ;;  %v832_v31 = vld [vmem:[#allocation8 + $0xc48] sm:$0xff] }
 0x1d1   :  { %v836_v32 = vld [vmem:[#allocation8 + $0xc68] sm:$0xff]  ;;  %v5336_v36 = vcombine.high %v831_v29, %v835_v30  ;;  %v5335_v42 = vcombine.low %v831_v29, %v835_v30  ;;  %v879_v30 = vld [vmem:[#allocation8 + $0xdc0] sm:$0xff] }
 0x1d2   :  { %v5337_v43 = vcombine.low %v832_v31, %v836_v32 }
 0x1d3   :  { %3658 = vmatpush1.bf16.msra.mxu0 %v5287_v37  ;;  %3822 = vmatpush1.bf16.msra.mxu1 %v5289_v38  ;;  %v5338_v37 = vcombine.high %v832_v31, %v836_v32  ;;  %v839_v38 = vld [vmem:[#allocation8 + $0xc80] sm:$0xff]  ;;  %v880_v32 = vld [vmem:[#allocation8 + $0xdc8] sm:$0xff] }
 0x1d4   :  { %3659 = vmatprep.subr.bf16.mxu0 %v5296_v39  ;;  %3823 = vmatprep.subr.bf16.mxu1 %v5298_v57  ;;  %v843_v39 = vld [vmem:[#allocation8 + $0xca0] sm:$0xff]  ;;  %v840_v57 = vld [vmem:[#allocation8 + $0xc88] sm:$0xff] }
 0x1d5   :  { %v5343_v56 = vcombine.low %v839_v38, %v843_v39  ;;  %v5345_v58 = vcombine.low %v840_v57, %v844_v40  ;;  %v883_v31 = vld [vmem:[#allocation8 + $0xde0] sm:$0xff] }
 0x1d7   :  { %3660 = vmatpush1.bf16.msra.mxu0 %v5295_v50  ;;  %3824 = vmatpush1.bf16.msra.mxu1 %v5297_v52  ;;  %v5344_v50 = vcombine.high %v839_v38, %v843_v39  ;;  %v5346_v52 = vcombine.high %v840_v57, %v844_v40  ;;  %v887_v38 = vld [vmem:[#allocation8 + $0xe00] sm:$0xff]  ;;  %v888_v57 = vld [vmem:[#allocation8 + $0xe08] sm:$0xff] }
 0x1d8   :  { %3661 = vmatprep.subr.bf16.mxu0 %v5304_v16  ;;  %3825 = vmatprep.subr.bf16.mxu1 %v5306_v53  ;;  %v847_v16 = vld [vmem:[#allocation8 + $0xcc0] sm:$0xff]  ;;  %v892_v40 = vld [vmem:[#allocation8 + $0xe28] sm:$0xff] }
 0x1d9   :  { %v851_v53 = vld [vmem:[#allocation8 + $0xce0] sm:$0xff] }
 0x1da   :  { %v5352_v62 = vcombine.high %v847_v16, %v851_v53  ;;  %v5351_v8 = vcombine.low %v847_v16, %v851_v53  ;;  %v891_v39 = vld [vmem:[#allocation8 + $0xe20] sm:$0xff] }
 0x1db   :  { %3662 = vmatpush1.bf16.msra.mxu0 %v5303_v0  ;;  %3826 = vmatpush1.bf16.msra.mxu1 %v5305_v1  ;;  %v5354_v0 = vcombine.high %v848_v54, %v852_v55  ;;  %v855_v1 = vld [vmem:[#allocation8 + $0xd00] sm:$0xff]  ;;  %v896_v54 = vld [vmem:[#allocation8 + $0xe48] sm:$0xff] }
 0x1dc   :  { %3663 = vmatprep.subr.bf16.mxu0 %v5312_v3  ;;  %3827 = vmatprep.subr.bf16.mxu1 %v5314_v4  ;;  %v859_v3 = vld [vmem:[#allocation8 + $0xd20] sm:$0xff]  ;;  %v856_v4 = vld [vmem:[#allocation8 + $0xd08] sm:$0xff] }
 0x1dd   :  { %v5360_v10 = vcombine.high %v855_v1, %v859_v3  ;;  %v5362_v11 = vcombine.high %v856_v4, %v860_v6  ;;  %v5361_v21 = vcombine.low %v856_v4, %v860_v6  ;;  %v895_v16 = vld [vmem:[#allocation8 + $0xe40] sm:$0xff]  ;;  %v900_v55 = vld [vmem:[#allocation8 + $0xe68] sm:$0xff] }
 0x1de   :  { %v899_v53 = vld [vmem:[#allocation8 + $0xe60] sm:$0xff]  ;;  %v904_v4 = vld [vmem:[#allocation8 + $0xe88] sm:$0xff] }
 0x1df   :  { %3664 = vmatpush1.bf16.msra.mxu0 %v5311_v17  ;;  %3828 = vmatpush1.bf16.msra.mxu1 %v5313_v18  ;;  %v867_v17 = vld [vmem:[#allocation8 + $0xd60] sm:$0xff]  ;;  %v864_v18 = vld [vmem:[#allocation8 + $0xd48] sm:$0xff] }
 0x1e0   :  { %3665 = vmatprep.subr.bf16.mxu0 %v5320_v19  ;;  %3829 = vmatprep.subr.bf16.mxu1 %v5322_v20  ;;  %v868_v19 = vld [vmem:[#allocation8 + $0xd68] sm:$0xff]  ;;  %v5359_v20 = vcombine.low %v855_v1, %v859_v3  ;;  %v5368_v22 = vcombine.high %v863_v12, %v867_v17  ;;  %v903_v1 = vld [vmem:[#allocation8 + $0xe80] sm:$0xff] }
 0x1e1   :  { %v5370_v23 = vcombine.high %v864_v18, %v868_v19  ;;  %v907_v3 = vld [vmem:[#allocation8 + $0xea0] sm:$0xff]  ;;  %v908_v6 = vld [vmem:[#allocation8 + $0xea8] sm:$0xff] }
 0x1e3   :  { %3666 = vmatpush1.bf16.msra.mxu0 %v5319_v46  ;;  %3830 = vmatpush1.bf16.msra.mxu1 %v5321_v27  ;;  %v876_v46 = vld [vmem:[#allocation8 + $0xda8] sm:$0xff]  ;;  %v5367_v27 = vcombine.low %v863_v12, %v867_v17  ;;  %v911_v12 = vld [vmem:[#allocation8 + $0xec0] sm:$0xff] }
 0x1e4   :  { %3676 = vmatprep.subr.bf16.mxu0 %v5328_v15  ;;  %3840 = vmatprep.subr.bf16.mxu1 %v5330_v28  ;;  %v5369_v15 = vcombine.low %v864_v18, %v868_v19  ;;  %v5376_v28 = vcombine.high %v871_v24, %v875_v25  ;;  %v5378_v29 = vcombine.high %v872_v26, %v876_v46  ;;  %v915_v17 = vld [vmem:[#allocation8 + $0xee0] sm:$0xff]  ;;  %v912_v18 = vld [vmem:[#allocation8 + $0xec8] sm:$0xff] }
 0x1e5   :  { %v916_v19 = vld [vmem:[#allocation8 + $0xee8] sm:$0xff] }
 0x1e6   :  { %3668 = vmatmul.mubr.bf16.vlgmr.msra.gmra.mrb[8].mxu0 %v6135_v34  ;;  %3832 = vmatmul.mubr.bf16.vlgmr.msra.gmra.mrb[8].mxu1 %v6135_v34 }
 0x1e7   :  { %3677 = vmatpush1.bf16.msra.mxu0 %v5327_v35  ;;  %3841 = vmatpush1.bf16.msra.mxu1 %v5329_v63  ;;  %v5375_v35 = vcombine.low %v871_v24, %v875_v25  ;;  %v5377_v63 = vcombine.low %v872_v26, %v876_v46  ;;  %v919_v24 = vld [vmem:[#allocation8 + $0xf00] sm:$0xff]  ;;  %v920_v26 = vld [vmem:[#allocation8 + $0xf08] sm:$0xff] }
 0x1e8   :  { %3678 = vmatprep.subr.bf16.mxu0 %v5336_v36  ;;  %3842 = vmatprep.subr.bf16.mxu1 %v5338_v37  ;;  %v5384_v36 = vcombine.high %v879_v30, %v883_v31  ;;  %v5386_v37 = vcombine.high %v880_v32, %v884_v33  ;;  %v923_v25 = vld [vmem:[#allocation8 + $0xf20] sm:$0xff]  ;;  %v924_v46 = vld [vmem:[#allocation8 + $0xf28] sm:$0xff] }
 0x1e9   :  { %3708 = vmatprep.mubr.bf16.mxu0 %v6137_v41  ;;  %3872 = vmatprep.mubr.bf16.mxu1 %v6137_v41 }
 0x1eb   :  { %3679 = vmatpush1.bf16.msra.mxu0 %v5335_v42  ;;  %3843 = vmatpush1.bf16.msra.mxu1 %v5337_v43  ;;  %v5383_v42 = vcombine.low %v879_v30, %v883_v31  ;;  %v5385_v43 = vcombine.low %v880_v32, %v884_v33  ;;  %v927_v30 = vld [vmem:[#allocation8 + $0xf40] sm:$0xff]  ;;  %v928_v32 = vld [vmem:[#allocation8 + $0xf48] sm:$0xff] }
 0x1ec   :  { %3680 = vmatprep.subr.bf16.mxu0 %v5344_v50  ;;  %3844 = vmatprep.subr.bf16.mxu1 %v5346_v52  ;;  %v5392_v50 = vcombine.high %v887_v38, %v891_v39  ;;  %v5394_v52 = vcombine.high %v888_v57, %v892_v40  ;;  %v931_v31 = vld [vmem:[#allocation8 + $0xf60] sm:$0xff]  ;;  %v932_v33 = vld [vmem:[#allocation8 + $0xf68] sm:$0xff] }
 0x1ef   :  { %3681 = vmatpush1.bf16.msra.mxu0 %v5343_v56  ;;  %3845 = vmatpush1.bf16.msra.mxu1 %v5345_v58  ;;  %v5391_v56 = vcombine.low %v887_v38, %v891_v39  ;;  %v5393_v58 = vcombine.low %v888_v57, %v892_v40  ;;  %v5434_v38 = vcombine.high %v928_v32, %v932_v33  ;;  %v935_v39 = vld [vmem:[#allocation8 + $0xf80] sm:$0xff]  ;;  %v936_v40 = vld [vmem:[#allocation8 + $0xf88] sm:$0xff] }
 0x1f0   :  { %3682 = vmatprep.subr.bf16.mxu0 %v5352_v62  ;;  %3846 = vmatprep.subr.bf16.mxu1 %v5354_v0  ;;  %v5400_v62 = vcombine.high %v895_v16, %v899_v53  ;;  %v5402_v0 = vcombine.high %v896_v54, %v900_v55  ;;  %v939_v57 = vld [vmem:[#allocation8 + $0xfa0] sm:$0xff] }
 0x1f3   :  { %3683 = vmatpush1.bf16.msra.mxu0 %v5351_v8  ;;  %3847 = vmatpush1.bf16.msra.mxu1 %v5353_v9  ;;  %v5399_v8 = vcombine.low %v895_v16, %v899_v53  ;;  %v5401_v9 = vcombine.low %v896_v54, %v900_v55  ;;  %v5440_v53 = vcombine.high %v935_v39, %v939_v57  ;;  %v943_v55 = vld [vmem:[#allocation8 + $0xfc0] sm:$0xff] }
 0x1f4   :  { %3684 = vmatprep.subr.bf16.mxu0 %v5360_v10  ;;  %3848 = vmatprep.subr.bf16.mxu1 %v5362_v11  ;;  %v5408_v10 = vcombine.high %v903_v1, %v907_v3  ;;  %v5410_v11 = vcombine.high %v904_v4, %v908_v6 }
 0x1f7   :  { %3685 = vmatpush1.bf16.msra.mxu0 %v5359_v20  ;;  %3849 = vmatpush1.bf16.msra.mxu1 %v5361_v21  ;;  %v5407_v20 = vcombine.low %v903_v1, %v907_v3  ;;  %v5409_v21 = vcombine.low %v904_v4, %v908_v6 }
 0x1f8   :  { %3686 = vmatprep.subr.bf16.mxu0 %v5368_v22  ;;  %3850 = vmatprep.subr.bf16.mxu1 %v5370_v23  ;;  %v5416_v22 = vcombine.high %v911_v12, %v915_v17  ;;  %v5418_v23 = vcombine.high %v912_v18, %v916_v19 }
 0x1fb   :  { %3687 = vmatpush1.bf16.msra.mxu0 %v5367_v27  ;;  %3851 = vmatpush1.bf16.msra.mxu1 %v5369_v15  ;;  %v5415_v27 = vcombine.low %v911_v12, %v915_v17  ;;  %v5417_v15 = vcombine.low %v912_v18, %v916_v19 }
 0x1fc   :  { %3688 = vmatprep.subr.bf16.mxu0 %v5376_v28  ;;  %3852 = vmatprep.subr.bf16.mxu1 %v5378_v29  ;;  %v5424_v28 = vcombine.high %v919_v24, %v923_v25  ;;  %v5426_v29 = vcombine.high %v920_v26, %v924_v46 }
 0x1ff   :  { %3689 = vmatpush1.bf16.msra.mxu0 %v5375_v35  ;;  %3853 = vmatpush1.bf16.msra.mxu1 %v5377_v63  ;;  %v5423_v35 = vcombine.low %v919_v24, %v923_v25  ;;  %v5425_v63 = vcombine.low %v920_v26, %v924_v46 }
 0x200   :  { %3690 = vmatprep.subr.bf16.mxu0 %v5384_v36  ;;  %3854 = vmatprep.subr.bf16.mxu1 %v5386_v37  ;;  %v161_v36 = vsub.s32 6, %v6069_v44  ;;  %v5432_v37 = vcombine.high %v927_v30, %v931_v31 }
 0x203   :  { %3691 = vmatpush1.bf16.msra.mxu0 %v5383_v42  ;;  %3855 = vmatpush1.bf16.msra.mxu1 %v5385_v43  ;;  %v940_v42 = vld [vmem:[#allocation8 + $0xfa8] sm:$0xff]  ;;  %v5431_v43 = vcombine.low %v927_v30, %v931_v31  ;;  %v462_v30 = vld [vmem:[#allocation8 + $0xb8] sm:$0xff] }
 0x204   :  { %3692 = vmatprep.subr.bf16.mxu0 %v5392_v50  ;;  %3856 = vmatprep.subr.bf16.mxu1 %v5394_v52  ;;  %v5433_v50 = vcombine.low %v928_v32, %v932_v33  ;;  %v5741_v52 = vld [vmem:[#allocation7] sm:$0xff]  ;;  %v5442_v54 = vcombine.high %v936_v40, %v940_v42  ;;  %v5441_v1 = vcombine.low %v936_v40, %v940_v42 }
 0x205   :  { %v162_v16 = vrot.slane %v5741_v52, %v161_v36  ;;  %v477_v52 = vld [vmem:[#allocation8 + $0x130] sm:$0xff] }
 0x207   :  { %3693 = vmatpush1.bf16.msra.mxu0 %v5391_v56  ;;  %3857 = vmatpush1.bf16.msra.mxu1 %v5393_v58  ;;  %v947_v56 = vld [vmem:[#allocation8 + $0xfe0] sm:$0xff]  ;;  %v944_v58 = vld [vmem:[#allocation8 + $0xfc8] sm:$0xff]  ;;  %v417_v3 = vadd.f32 %v6103_v59, %v162_v16  ;;  %v450_v59 = vld [vmem:[#allocation8 + $0x58] sm:$0xff] }
 0x208   :  { %3694 = vmatprep.subr.bf16.mxu0 %v5400_v62  ;;  %3858 = vmatprep.subr.bf16.mxu1 %v5402_v0  ;;  %v948_v62 = vld [vmem:[#allocation8 + $0xfe8] sm:$0xff]  ;;  %v5439_v0 = vcombine.low %v935_v39, %v939_v57  ;;  %v5448_v4 = vcombine.high %v943_v55, %v947_v56  ;;  %v5447_v12 = vcombine.low %v943_v55, %v947_v56  ;;  %v470_v39 = vld [vmem:[#allocation8 + $0xf8] sm:$0xff] }
 0x209   :  { %v5450_v6 = vcombine.high %v944_v58, %v948_v62  ;;  %v5449_v17 = vcombine.low %v944_v58, %v948_v62  ;;  %v429_v18 = vmax.f32 %v417_v3, 0.0  ;;  %v478_v16 = vld [vmem:[#allocation8 + $0x138] sm:$0xff]  ;;  %v481_v58 = vld [vmem:[#allocation8 + $0x150] sm:$0xff] }
 0x20a   :  { %v485_v62 = vld [vmem:[#allocation8 + $0x170] sm:$0xff] }
 0x20b   :  { %3695 = vmatpush1.bf16.msra.mxu0 %v5399_v8  ;;  %3859 = vmatpush1.bf16.msra.mxu1 %v5401_v9  ;;  %v441_v8 = vld [vmem:[#allocation8 + $0x10] sm:$0xff]  ;;  %v6147_v25 = vpack.c.bf16 %v429_v18, %v429_v18 }
 0x20c   :  { %3696 = vmatprep.subr.bf16.mxu0 %v5408_v10  ;;  %3860 = vmatprep.subr.bf16.mxu1 %v5410_v11  ;;  %v445_v9 = vld [vmem:[#allocation8 + $0x30] sm:$0xff]  ;;  %v442_v10 = vld [vmem:[#allocation8 + $0x18] sm:$0xff] }
 0x20d   :  { %v446_v11 = vld [vmem:[#allocation8 + $0x38] sm:$0xff]  ;;  %v4948_v19 = vcombine.high %v441_v8, %v445_v9  ;;  %v4947_v24 = vcombine.low %v441_v8, %v445_v9  ;;  %v489_v9 = vld [vmem:[#allocation8 + $0x190] sm:$0xff] }
 0x20e   :  { %v4949_v26 = vcombine.low %v442_v10, %v446_v11 }
 0x20f   :  { %3697 = vmatpush1.bf16.msra.mxu0 %v5407_v20  ;;  %3861 = vmatpush1.bf16.msra.mxu1 %v5409_v21  ;;  %v4950_v20 = vcombine.high %v442_v10, %v446_v11  ;;  %v449_v21 = vld [vmem:[#allocation8 + $0x50] sm:$0xff]  ;;  %v490_v11 = vld [vmem:[#allocation8 + $0x198] sm:$0xff] }
 0x210   :  { %3698 = vmatprep.subr.bf16.mxu0 %v5416_v22  ;;  %3862 = vmatprep.subr.bf16.mxu1 %v5418_v23  ;;  %v453_v22 = vld [vmem:[#allocation8 + $0x70] sm:$0xff]  ;;  %v454_v23 = vld [vmem:[#allocation8 + $0x78] sm:$0xff] }
 0x211   :  { %v4956_v46 = vcombine.high %v449_v21, %v453_v22  ;;  %v4955_v31 = vcombine.low %v449_v21, %v453_v22  ;;  %v4957_v32 = vcombine.low %v450_v59, %v454_v23  ;;  %v493_v10 = vld [vmem:[#allocation8 + $0x1b0] sm:$0xff] }
 0x212   :  { %v497_v21 = vld [vmem:[#allocation8 + $0x1d0] sm:$0xff] }
 0x213   :  { %3699 = vmatpush1.bf16.msra.mxu0 %v5415_v27  ;;  %3863 = vmatpush1.bf16.msra.mxu1 %v5417_v15  ;;  %v4958_v27 = vcombine.high %v450_v59, %v454_v23  ;;  %v457_v15 = vld [vmem:[#allocation8 + $0x90] sm:$0xff]  ;;  %v498_v59 = vld [vmem:[#allocation8 + $0x1d8] sm:$0xff] }
 0x214   :  { %3700 = vmatprep.subr.bf16.mxu0 %v5424_v28  ;;  %3864 = vmatprep.subr.bf16.mxu1 %v5426_v29  ;;  %v461_v28 = vld [vmem:[#allocation8 + $0xb0] sm:$0xff]  ;;  %v458_v29 = vld [vmem:[#allocation8 + $0x98] sm:$0xff] }
 0x215   :  { %v4964_v33 = vcombine.high %v457_v15, %v461_v28  ;;  %v4963_v57 = vcombine.low %v457_v15, %v461_v28  ;;  %v4965_v40 = vcombine.low %v458_v29, %v462_v30  ;;  %v501_v22 = vld [vmem:[#allocation8 + $0x1f0] sm:$0xff]  ;;  %v502_v23 = vld [vmem:[#allocation8 + $0x1f8] sm:$0xff] }
 0x216   :  { %v505_v15 = vld [vmem:[#allocation8 + $0x210] sm:$0xff] }
 0x217   :  { %3701 = vmatpush1.bf16.msra.mxu0 %v5423_v35  ;;  %3865 = vmatpush1.bf16.msra.mxu1 %v5425_v63  ;;  %v4966_v35 = vcombine.high %v458_v29, %v462_v30  ;;  %v465_v63 = vld [vmem:[#allocation8 + $0xd0] sm:$0xff]  ;;  %v506_v29 = vld [vmem:[#allocation8 + $0x218] sm:$0xff] }
 0x218   :  { %3702 = vmatprep.subr.bf16.mxu0 %v5432_v37  ;;  %3866 = vmatprep.subr.bf16.mxu1 %v5434_v38  ;;  %v469_v37 = vld [vmem:[#allocation8 + $0xf0] sm:$0xff]  ;;  %v466_v38 = vld [vmem:[#allocation8 + $0xd8] sm:$0xff] }
 0x219   :  { %v4972_v42 = vcombine.high %v465_v63, %v469_v37  ;;  %v509_v28 = vld [vmem:[#allocation8 + $0x230] sm:$0xff]  ;;  %v510_v30 = vld [vmem:[#allocation8 + $0x238] sm:$0xff] }
 0x21b   :  { %3703 = vmatpush1.bf16.msra.mxu0 %v5431_v43  ;;  %3867 = vmatpush1.bf16.msra.mxu1 %v5433_v50  ;;  %v4974_v43 = vcombine.high %v466_v38, %v470_v39  ;;  %v473_v50 = vld [vmem:[#allocation8 + $0x110] sm:$0xff] }
 0x21c   :  { %3704 = vmatprep.subr.bf16.mxu0 %v5440_v53  ;;  %3868 = vmatprep.subr.bf16.mxu1 %v5442_v54  ;;  %v4971_v53 = vcombine.low %v465_v63, %v469_v37  ;;  %v4973_v54 = vcombine.low %v466_v38, %v470_v39  ;;  %v4980_v55 = vcombine.high %v473_v50, %v477_v52  ;;  %v513_v63 = vld [vmem:[#allocation8 + $0x250] sm:$0xff]  ;;  %v514_v38 = vld [vmem:[#allocation8 + $0x258] sm:$0xff] }
 0x21d   :  { %v4979_v3 = vcombine.low %v473_v50, %v477_v52  ;;  %v517_v37 = vld [vmem:[#allocation8 + $0x270] sm:$0xff]  ;;  %v518_v39 = vld [vmem:[#allocation8 + $0x278] sm:$0xff] }
 0x21e   :  { %v521_v50 = vld [vmem:[#allocation8 + $0x290] sm:$0xff] }
 0x21f   :  { %3705 = vmatpush1.bf16.msra.mxu0 %v5439_v0  ;;  %3869 = vmatpush1.bf16.msra.mxu1 %v5441_v1  ;;  %v482_v0 = vld [vmem:[#allocation8 + $0x158] sm:$0xff]  ;;  %v525_v52 = vld [vmem:[#allocation8 + $0x2b0] sm:$0xff] }
 0x220   :  { %3706 = vmatprep.subr.bf16.mxu0 %v5448_v4  ;;  %3870 = vmatprep.subr.bf16.mxu1 %v5450_v6  ;;  %v486_v1 = vld [vmem:[#allocation8 + $0x178] sm:$0xff]  ;;  %v4988_v6 = vcombine.high %v481_v58, %v485_v62 }
 0x221   :  { %v4990_v8 = vcombine.high %v482_v0, %v486_v1  ;;  %v4989_v18 = vcombine.low %v482_v0, %v486_v1  ;;  %v530_v0 = vld [vmem:[#allocation8 + $0x2d8] sm:$0xff] }
 0x222   :  { %v534_v1 = vld [vmem:[#allocation8 + $0x2f8] sm:$0xff] }
 0x223   :  { %3707 = vmatpush1.bf16.msra.mxu0 %v5447_v12  ;;  %3871 = vmatpush1.bf16.msra.mxu1 %v5449_v17  ;;  %v494_v12 = vld [vmem:[#allocation8 + $0x1b8] sm:$0xff]  ;;  %v4987_v17 = vcombine.low %v481_v58, %v485_v62  ;;  %v529_v58 = vld [vmem:[#allocation8 + $0x2d0] sm:$0xff] }
 0x224   :  { %3881 = vmatprep.subr.bf16.mxu0 %v4948_v19  ;;  %4045 = vmatprep.subr.bf16.mxu1 %v4950_v20  ;;  %v4996_v19 = vcombine.high %v489_v9, %v493_v10  ;;  %v4998_v20 = vcombine.high %v490_v11, %v494_v12  ;;  %v533_v62 = vld [vmem:[#allocation8 + $0x2f0] sm:$0xff] }
 0x226   :  { %3709 = vmatmul.mubr.bf16.vlgmr.msra.gmra.mrb[8].mxu0 %v6147_v25  ;;  %3873 = vmatmul.mubr.bf16.vlgmr.msra.gmra.mrb[8].mxu1 %v6147_v25 }
 0x227   :  { %3882 = vmatpush1.bf16.msra.mxu0 %v4947_v24  ;;  %3913 = vmatprep.mubr.bf16.mxu0 %v6087_v5  ;;  %v4995_v24 = vcombine.low %v489_v9, %v493_v10  ;;  %v537_v9 = vld [vmem:[#allocation8 + $0x310] sm:$0xff] }
 0x228   :  { %4046 = vmatpush1.bf16.msra.mxu1 %v4949_v26  ;;  %4077 = vmatprep.mubr.bf16.mxu1 %v6087_v5  ;;  %v474_v5 = vld [vmem:[#allocation8 + $0x118] sm:$0xff]  ;;  %v4997_v26 = vcombine.low %v490_v11, %v494_v12  ;;  %v541_v10 = vld [vmem:[#allocation8 + $0x330] sm:$0xff] }
 0x229   :  { %3883 = vmatprep.subr.bf16.mxu0 %v4956_v46  ;;  %4047 = vmatprep.subr.bf16.mxu1 %v4958_v27  ;;  %v4982_v56 = vcombine.high %v474_v5, %v478_v16  ;;  %v4981_v4 = vcombine.low %v474_v5, %v478_v16  ;;  %v5004_v46 = vcombine.high %v497_v21, %v501_v22  ;;  %v522_v5 = vld [vmem:[#allocation8 + $0x298] sm:$0xff] }
 0x22a   :  { %v5006_v27 = vcombine.high %v498_v59, %v502_v23  ;;  %v526_v16 = vld [vmem:[#allocation8 + $0x2b8] sm:$0xff] }
 0x22b   :  { %3884 = vmatpush1.bf16.msra.mxu0 %v4955_v31  ;;  %v5003_v31 = vcombine.low %v497_v21, %v501_v22  ;;  %v538_v11 = vld [vmem:[#allocation8 + $0x318] sm:$0xff]  ;;  %v545_v21 = vld [vmem:[#allocation8 + $0x350] sm:$0xff] }
 0x22c   :  { %4048 = vmatpush1.bf16.msra.mxu1 %v4957_v32  ;;  %3885 = vmatprep.subr.bf16.mxu0 %v4964_v33  ;;  %v5005_v32 = vcombine.low %v498_v59, %v502_v23  ;;  %v5012_v33 = vcombine.high %v505_v15, %v509_v28  ;;  %v542_v12 = vld [vmem:[#allocation8 + $0x338] sm:$0xff]  ;;  %v549_v22 = vld [vmem:[#allocation8 + $0x370] sm:$0xff] }
 0x22d   :  { %4049 = vmatprep.subr.bf16.mxu1 %v4966_v35  ;;  %v5014_v35 = vcombine.high %v506_v29, %v510_v30  ;;  %v546_v59 = vld [vmem:[#allocation8 + $0x358] sm:$0xff] }
 0x22e   :  { %v550_v23 = vld [vmem:[#allocation8 + $0x378] sm:$0xff] }
 0x22f   :  { %3886 = vmatpush1.bf16.msra.mxu0 %v4963_v57  ;;  %v5011_v57 = vcombine.low %v505_v15, %v509_v28  ;;  %v553_v15 = vld [vmem:[#allocation8 + $0x390] sm:$0xff] }
 0x230   :  { %4050 = vmatpush1.bf16.msra.mxu1 %v4965_v40  ;;  %3887 = vmatprep.subr.bf16.mxu0 %v4972_v42  ;;  %v5013_v40 = vcombine.low %v506_v29, %v510_v30  ;;  %v5020_v42 = vcombine.high %v513_v63, %v517_v37  ;;  %v557_v28 = vld [vmem:[#allocation8 + $0x3b0] sm:$0xff]  ;;  %v554_v29 = vld [vmem:[#allocation8 + $0x398] sm:$0xff] }
 0x231   :  { %4051 = vmatprep.subr.bf16.mxu1 %v4974_v43  ;;  %v5022_v43 = vcombine.high %v514_v38, %v518_v39  ;;  %v558_v30 = vld [vmem:[#allocation8 + $0x3b8] sm:$0xff] }
 0x233   :  { %3888 = vmatpush1.bf16.msra.mxu0 %v4971_v53  ;;  %v5019_v53 = vcombine.low %v513_v63, %v517_v37  ;;  %v561_v63 = vld [vmem:[#allocation8 + $0x3d0] sm:$0xff] }
 0x234   :  { %4052 = vmatpush1.bf16.msra.mxu1 %v4973_v54  ;;  %3889 = vmatprep.subr.bf16.mxu0 %v4980_v55  ;;  %v5021_v54 = vcombine.low %v514_v38, %v518_v39  ;;  %v5028_v55 = vcombine.high %v521_v50, %v525_v52  ;;  %v565_v37 = vld [vmem:[#allocation8 + $0x3f0] sm:$0xff]  ;;  %v562_v38 = vld [vmem:[#allocation8 + $0x3d8] sm:$0xff] }
 0x235   :  { %4053 = vmatprep.subr.bf16.mxu1 %v4982_v56  ;;  %v5030_v56 = vcombine.high %v522_v5, %v526_v16  ;;  %v566_v39 = vld [vmem:[#allocation8 + $0x3f8] sm:$0xff] }
 0x237   :  { %3890 = vmatpush1.bf16.msra.mxu0 %v4979_v3  ;;  %v5027_v3 = vcombine.low %v521_v50, %v525_v52  ;;  %v569_v50 = vld [vmem:[#allocation8 + $0x410] sm:$0xff] }
 0x238   :  { %4054 = vmatpush1.bf16.msra.mxu1 %v4981_v4  ;;  %3891 = vmatprep.subr.bf16.mxu0 %v4988_v6  ;;  %v5029_v4 = vcombine.low %v522_v5, %v526_v16  ;;  %v5036_v6 = vcombine.high %v529_v58, %v533_v62  ;;  %v573_v52 = vld [vmem:[#allocation8 + $0x430] sm:$0xff]  ;;  %v570_v5 = vld [vmem:[#allocation8 + $0x418] sm:$0xff] }
 0x239   :  { %4055 = vmatprep.subr.bf16.mxu1 %v4990_v8  ;;  %v5038_v8 = vcombine.high %v530_v0, %v534_v1  ;;  %v574_v16 = vld [vmem:[#allocation8 + $0x438] sm:$0xff] }
 0x23b   :  { %3892 = vmatpush1.bf16.msra.mxu0 %v4987_v17  ;;  %v5035_v17 = vcombine.low %v529_v58, %v533_v62  ;;  %v577_v58 = vld [vmem:[#allocation8 + $0x450] sm:$0xff] }
 0x23c   :  { %4056 = vmatpush1.bf16.msra.mxu1 %v4989_v18  ;;  %3893 = vmatprep.subr.bf16.mxu0 %v4996_v19  ;;  %v5037_v18 = vcombine.low %v530_v0, %v534_v1  ;;  %v5044_v19 = vcombine.high %v537_v9, %v541_v10  ;;  %v581_v62 = vld [vmem:[#allocation8 + $0x470] sm:$0xff]  ;;  %v5075_v0 = vcombine.low %v569_v50, %v573_v52  ;;  %v578_v1 = vld [vmem:[#allocation8 + $0x458] sm:$0xff] }
 0x23d   :  { %4057 = vmatprep.subr.bf16.mxu1 %v4998_v20  ;;  %v5046_v20 = vcombine.high %v538_v11, %v542_v12 }
 0x23f   :  { %3894 = vmatpush1.bf16.msra.mxu0 %v4995_v24  ;;  %v5043_v24 = vcombine.low %v537_v9, %v541_v10  ;;  %v589_v9 = vld [vmem:[#allocation8 + $0x4b0] sm:$0xff] }
 0x240   :  { %4058 = vmatpush1.bf16.msra.mxu1 %v4997_v26  ;;  %3895 = vmatprep.subr.bf16.mxu0 %v5004_v46  ;;  %v5045_v26 = vcombine.low %v538_v11, %v542_v12  ;;  %v5052_v46 = vcombine.high %v545_v21, %v549_v22  ;;  %v586_v11 = vld [vmem:[#allocation8 + $0x498] sm:$0xff] }
 0x241   :  { %4059 = vmatprep.subr.bf16.mxu1 %v5006_v27  ;;  %v5054_v27 = vcombine.high %v546_v59, %v550_v23  ;;  %v590_v12 = vld [vmem:[#allocation8 + $0x4b8] sm:$0xff] }
 0x243   :  { %3896 = vmatpush1.bf16.msra.mxu0 %v5003_v31  ;;  %v5051_v31 = vcombine.low %v545_v21, %v549_v22  ;;  %v593_v21 = vld [vmem:[#allocation8 + $0x4d0] sm:$0xff] }
 0x244   :  { %4060 = vmatpush1.bf16.msra.mxu1 %v5005_v32  ;;  %3897 = vmatprep.subr.bf16.mxu0 %v5012_v33  ;;  %v5053_v32 = vcombine.low %v546_v59, %v550_v23  ;;  %v5060_v33 = vcombine.high %v553_v15, %v557_v28  ;;  %v597_v22 = vld [vmem:[#allocation8 + $0x4f0] sm:$0xff]  ;;  %v594_v59 = vld [vmem:[#allocation8 + $0x4d8] sm:$0xff] }
 0x245   :  { %4061 = vmatprep.subr.bf16.mxu1 %v5014_v35  ;;  %v5062_v35 = vcombine.high %v554_v29, %v558_v30  ;;  %v598_v23 = vld [vmem:[#allocation8 + $0x4f8] sm:$0xff] }
 0x247   :  { %3898 = vmatpush1.bf16.msra.mxu0 %v5011_v57  ;;  %v5059_v57 = vcombine.low %v553_v15, %v557_v28  ;;  %v605_v15 = vld [vmem:[#allocation8 + $0x530] sm:$0xff]  ;;  %v602_v28 = vld [vmem:[#allocation8 + $0x518] sm:$0xff] }
 0x248   :  { %4062 = vmatpush1.bf16.msra.mxu1 %v5013_v40  ;;  %3899 = vmatprep.subr.bf16.mxu0 %v5020_v42  ;;  %v5061_v40 = vcombine.low %v554_v29, %v558_v30  ;;  %v5068_v42 = vcombine.high %v561_v63, %v565_v37  ;;  %v606_v29 = vld [vmem:[#allocation8 + $0x538] sm:$0xff]  ;;  %v5101_v30 = vcombine.low %v594_v59, %v598_v23 }
 0x249   :  { %4063 = vmatprep.subr.bf16.mxu1 %v5022_v43  ;;  %v5070_v43 = vcombine.high %v562_v38, %v566_v39 }
 0x24b   :  { %3900 = vmatpush1.bf16.msra.mxu0 %v5019_v53  ;;  %v5067_v53 = vcombine.low %v561_v63, %v565_v37  ;;  %v610_v63 = vld [vmem:[#allocation8 + $0x558] sm:$0xff] }
 0x24c   :  { %4064 = vmatpush1.bf16.msra.mxu1 %v5021_v54  ;;  %3901 = vmatprep.subr.bf16.mxu0 %v5028_v55  ;;  %v5069_v54 = vcombine.low %v562_v38, %v566_v39  ;;  %v5076_v55 = vcombine.high %v569_v50, %v573_v52  ;;  %v614_v37 = vld [vmem:[#allocation8 + $0x578] sm:$0xff]  ;;  %v5109_v39 = vcombine.low %v602_v28, %v606_v29 }
 0x24d   :  { %4065 = vmatprep.subr.bf16.mxu1 %v5030_v56  ;;  %v5078_v56 = vcombine.high %v570_v5, %v574_v16  ;;  %v618_v50 = vld [vmem:[#allocation8 + $0x598] sm:$0xff] }
 0x24e   :  { %v622_v52 = vld [vmem:[#allocation8 + $0x5b8] sm:$0xff] }
 0x24f   :  { %3902 = vmatpush1.bf16.msra.mxu0 %v5027_v3  ;;  %v582_v3 = vld [vmem:[#allocation8 + $0x478] sm:$0xff] }
 0x250   :  { %4066 = vmatpush1.bf16.msra.mxu1 %v5029_v4  ;;  %3903 = vmatprep.subr.bf16.mxu0 %v5036_v6  ;;  %v5077_v4 = vcombine.low %v570_v5, %v574_v16  ;;  %v5084_v6 = vcombine.high %v577_v58, %v581_v62  ;;  %v5086_v10 = vcombine.high %v578_v1, %v582_v3 }
 0x251   :  { %4067 = vmatprep.subr.bf16.mxu1 %v5038_v8  ;;  %v585_v8 = vld [vmem:[#allocation8 + $0x490] sm:$0xff]  ;;  %v5117_v16 = vcombine.low %v610_v63, %v614_v37 }
 0x253   :  { %3904 = vmatpush1.bf16.msra.mxu0 %v5035_v17  ;;  %v5083_v17 = vcombine.low %v577_v58, %v581_v62  ;;  %v626_v58 = vld [vmem:[#allocation8 + $0x5d8] sm:$0xff] }
 0x254   :  { %4068 = vmatpush1.bf16.msra.mxu1 %v5037_v18  ;;  %3905 = vmatprep.subr.bf16.mxu0 %v5044_v19  ;;  %v5085_v18 = vcombine.low %v578_v1, %v582_v3  ;;  %v5092_v19 = vcombine.high %v585_v8, %v589_v9  ;;  %v630_v62 = vld [vmem:[#allocation8 + $0x5f8] sm:$0xff]  ;;  %v5125_v1 = vcombine.low %v618_v50, %v622_v52 }
 0x255   :  { %4069 = vmatprep.subr.bf16.mxu1 %v5046_v20  ;;  %v5094_v20 = vcombine.high %v586_v11, %v590_v12 }
 0x257   :  { %3906 = vmatpush1.bf16.msra.mxu0 %v5043_v24  ;;  %v5091_v24 = vcombine.low %v585_v8, %v589_v9  ;;  %v637_v8 = vld [vmem:[#allocation8 + $0x630] sm:$0xff]  ;;  %v634_v9 = vld [vmem:[#allocation8 + $0x618] sm:$0xff] }
 0x258   :  { %4070 = vmatpush1.bf16.msra.mxu1 %v5045_v26  ;;  %3907 = vmatprep.subr.bf16.mxu0 %v5052_v46  ;;  %v5100_v26 = vcombine.high %v593_v21, %v597_v22  ;;  %v5102_v46 = vcombine.high %v594_v59, %v598_v23 }
 0x259   :  { %4071 = vmatprep.subr.bf16.mxu1 %v5054_v27  ;;  %v601_v27 = vld [vmem:[#allocation8 + $0x510] sm:$0xff] }
 0x25a   :  { %v5107_v38 = vcombine.low %v601_v27, %v605_v15 }
 0x25b   :  { %3908 = vmatpush1.bf16.msra.mxu0 %v5051_v31  ;;  %v5108_v31 = vcombine.high %v601_v27, %v605_v15  ;;  %v650_v27 = vld [vmem:[#allocation8 + $0x698] sm:$0xff] }
 0x25c   :  { %4072 = vmatpush1.bf16.msra.mxu1 %v5053_v32  ;;  %3909 = vmatprep.subr.bf16.mxu0 %v5060_v33  ;;  %v5110_v32 = vcombine.high %v602_v28, %v606_v29  ;;  %v609_v33 = vld [vmem:[#allocation8 + $0x550] sm:$0xff]  ;;  %v654_v15 = vld [vmem:[#allocation8 + $0x6b8] sm:$0xff] }
 0x25d   :  { %4073 = vmatprep.subr.bf16.mxu1 %v5062_v35  ;;  %v613_v35 = vld [vmem:[#allocation8 + $0x570] sm:$0xff] }
 0x25e   :  { %v5115_v5 = vcombine.low %v609_v33, %v613_v35 }
 0x25f   :  { %3910 = vmatpush1.bf16.msra.mxu0 %v5059_v57  ;;  %v5116_v57 = vcombine.high %v609_v33, %v613_v35  ;;  %v658_v33 = vld [vmem:[#allocation8 + $0x6d8] sm:$0xff] }
 0x260   :  { %4074 = vmatpush1.bf16.msra.mxu1 %v5061_v40  ;;  %3911 = vmatprep.subr.bf16.mxu0 %v5068_v42  ;;  %v5118_v40 = vcombine.high %v610_v63, %v614_v37  ;;  %v617_v42 = vld [vmem:[#allocation8 + $0x590] sm:$0xff]  ;;  %v662_v35 = vld [vmem:[#allocation8 + $0x6f8] sm:$0xff]  ;;  %v5157_v37 = vcombine.low %v650_v27, %v654_v15 }
 0x261   :  { %4075 = vmatprep.subr.bf16.mxu1 %v5070_v43  ;;  %v621_v43 = vld [vmem:[#allocation8 + $0x5b0] sm:$0xff] }
 0x263   :  { %3912 = vmatpush1.bf16.msra.mxu0 %v5067_v53  ;;  %v5124_v53 = vcombine.high %v617_v42, %v621_v43 }
 0x264   :  { %4076 = vmatpush1.bf16.msra.mxu1 %v5069_v54  ;;  %3922 = vmatprep.subr.bf16.mxu0 %v5076_v55  ;;  %v5126_v54 = vcombine.high %v618_v50, %v622_v52  ;;  %v625_v55 = vld [vmem:[#allocation8 + $0x5d0] sm:$0xff]  ;;  %v5165_v52 = vcombine.low %v658_v33, %v662_v35 }
 0x265   :  { %4086 = vmatprep.subr.bf16.mxu1 %v5078_v56  ;;  %v629_v56 = vld [vmem:[#allocation8 + $0x5f0] sm:$0xff] }
 0x266   :  { %3914 = vmatmul.mubr.bf16.vlgmr.msra.gmra.mrb[12].mxu0 %v6089_v7  ;;  %v5132_v3 = vcombine.high %v625_v55, %v629_v56 }
 0x267   :  { %4078 = vmatmul.mubr.bf16.vlgmr.msra.gmra.mrb[12].mxu1 %v6089_v7  ;;  %3923 = vmatpush1.bf16.msra.mxu0 %v5075_v0  ;;  %v5093_v7 = vcombine.low %v586_v11, %v590_v12  ;;  %v5123_v0 = vcombine.low %v617_v42, %v621_v43  ;;  %v5131_v11 = vcombine.low %v625_v55, %v629_v56  ;;  %v666_v42 = vld [vmem:[#allocation8 + $0x718] sm:$0xff] }
 0x268   :  { %3954 = vmatprep.mubr.bf16.mxu0 %v6093_v14  ;;  %4087 = vmatpush1.bf16.msra.mxu1 %v5077_v4  ;;  %v5134_v4 = vcombine.high %v626_v58, %v630_v62  ;;  %v5133_v12 = vcombine.low %v626_v58, %v630_v62  ;;  %v670_v43 = vld [vmem:[#allocation8 + $0x738] sm:$0xff] }
 0x269   :  { %4118 = vmatprep.mubr.bf16.mxu1 %v6093_v14  ;;  %3924 = vmatprep.subr.bf16.mxu0 %v5084_v6  ;;  %v5099_v14 = vcombine.low %v593_v21, %v597_v22  ;;  %v633_v6 = vld [vmem:[#allocation8 + $0x610] sm:$0xff]  ;;  %v642_v21 = vld [vmem:[#allocation8 + $0x658] sm:$0xff]  ;;  %v5173_v62 = vcombine.low %v666_v42, %v670_v43 }
 0x26a   :  { %4088 = vmatprep.subr.bf16.mxu1 %v5086_v10  ;;  %v638_v10 = vld [vmem:[#allocation8 + $0x638] sm:$0xff]  ;;  %v5139_v59 = vcombine.low %v633_v6, %v637_v8 }
 0x26b   :  { %3925 = vmatpush1.bf16.msra.mxu0 %v5083_v17  ;;  %v5140_v17 = vcombine.high %v633_v6, %v637_v8  ;;  %v646_v22 = vld [vmem:[#allocation8 + $0x678] sm:$0xff]  ;;  %v5141_v23 = vcombine.low %v634_v9, %v638_v10 }
 0x26c   :  { %4089 = vmatpush1.bf16.msra.mxu1 %v5085_v18  ;;  %3926 = vmatprep.subr.bf16.mxu0 %v5092_v19  ;;  %v5142_v18 = vcombine.high %v634_v9, %v638_v10  ;;  %v641_v19 = vld [vmem:[#allocation8 + $0x650] sm:$0xff]  ;;  %v5149_v29 = vcombine.low %v642_v21, %v646_v22  ;;  %v674_v55 = vld [vmem:[#allocation8 + $0x758] sm:$0xff] }
 0x26d   :  { %4090 = vmatprep.subr.bf16.mxu1 %v5094_v20  ;;  %v645_v20 = vld [vmem:[#allocation8 + $0x670] sm:$0xff]  ;;  %v678_v56 = vld [vmem:[#allocation8 + $0x778] sm:$0xff] }
 0x26e   :  { %v5147_v28 = vcombine.low %v641_v19, %v645_v20  ;;  %v682_v6 = vld [vmem:[#allocation8 + $0x798] sm:$0xff]  ;;  %v5181_v10 = vcombine.low %v674_v55, %v678_v56 }
 0x26f   :  { %3927 = vmatpush1.bf16.msra.mxu0 %v5091_v24  ;;  %v5148_v24 = vcombine.high %v641_v19, %v645_v20  ;;  %v686_v8 = vld [vmem:[#allocation8 + $0x7b8] sm:$0xff] }
 0x270   :  { %4091 = vmatpush1.bf16.msra.mxu1 %v5093_v7  ;;  %3928 = vmatprep.subr.bf16.mxu0 %v5100_v26  ;;  %v5150_v7 = vcombine.high %v642_v21, %v646_v22  ;;  %v649_v26 = vld [vmem:[#allocation8 + $0x690] sm:$0xff]  ;;  %v690_v19 = vld [vmem:[#allocation8 + $0x7d8] sm:$0xff]  ;;  %v5189_v22 = vcombine.low %v682_v6, %v686_v8 }
 0x271   :  { %4092 = vmatprep.subr.bf16.mxu1 %v5102_v46  ;;  %v653_v46 = vld [vmem:[#allocation8 + $0x6b0] sm:$0xff]  ;;  %v694_v20 = vld [vmem:[#allocation8 + $0x7f8] sm:$0xff] }
 0x272   :  { %v5155_v63 = vcombine.low %v649_v26, %v653_v46 }
 0x273   :  { %3929 = vmatpush1.bf16.msra.mxu0 %v5099_v14  ;;  %v5156_v14 = vcombine.high %v649_v26, %v653_v46  ;;  %v698_v26 = vld [vmem:[#allocation8 + $0x818] sm:$0xff] }
 0x274   :  { %4093 = vmatpush1.bf16.msra.mxu1 %v5101_v30  ;;  %3930 = vmatprep.subr.bf16.mxu0 %v5108_v31  ;;  %v5158_v30 = vcombine.high %v650_v27, %v654_v15  ;;  %v657_v31 = vld [vmem:[#allocation8 + $0x6d0] sm:$0xff]  ;;  %v702_v46 = vld [vmem:[#allocation8 + $0x838] sm:$0xff]  ;;  %v5197_v15 = vcombine.low %v690_v19, %v694_v20 }
 0x275   :  { %4094 = vmatprep.subr.bf16.mxu1 %v5110_v32  ;;  %v661_v32 = vld [vmem:[#allocation8 + $0x6f0] sm:$0xff] }
 0x276   :  { %v5163_v50 = vcombine.low %v657_v31, %v661_v32 }
 0x277   :  { %3931 = vmatpush1.bf16.msra.mxu0 %v5107_v38  ;;  %v5164_v38 = vcombine.high %v657_v31, %v661_v32  ;;  %v706_v32 = vld [vmem:[#allocation8 + $0x858] sm:$0xff] }
 0x278   :  { %4095 = vmatpush1.bf16.msra.mxu1 %v5109_v39  ;;  %3932 = vmatprep.subr.bf16.mxu0 %v5116_v57  ;;  %v5166_v39 = vcombine.high %v658_v33, %v662_v35  ;;  %v665_v57 = vld [vmem:[#allocation8 + $0x710] sm:$0xff]  ;;  %v710_v33 = vld [vmem:[#allocation8 + $0x878] sm:$0xff]  ;;  %v5205_v35 = vcombine.low %v698_v26, %v702_v46 }
 0x279   :  { %4096 = vmatprep.subr.bf16.mxu1 %v5118_v40  ;;  %v669_v40 = vld [vmem:[#allocation8 + $0x730] sm:$0xff] }
 0x27a   :  { %v5171_v58 = vcombine.low %v665_v57, %v669_v40 }
 0x27b   :  { %3933 = vmatpush1.bf16.msra.mxu0 %v5115_v5  ;;  %v5172_v5 = vcombine.high %v665_v57, %v669_v40  ;;  %v714_v57 = vld [vmem:[#allocation8 + $0x898] sm:$0xff] }
 0x27c   :  { %4097 = vmatpush1.bf16.msra.mxu1 %v5117_v16  ;;  %3934 = vmatprep.subr.bf16.mxu0 %v5124_v53  ;;  %v5174_v16 = vcombine.high %v666_v42, %v670_v43  ;;  %v673_v53 = vld [vmem:[#allocation8 + $0x750] sm:$0xff]  ;;  %v718_v40 = vld [vmem:[#allocation8 + $0x8b8] sm:$0xff]  ;;  %v5213_v43 = vcombine.low %v706_v32, %v710_v33 }
 0x27d   :  { %4098 = vmatprep.subr.bf16.mxu1 %v5126_v54  ;;  %v677_v54 = vld [vmem:[#allocation8 + $0x770] sm:$0xff] }
 0x27e   :  { %v5179_v9 = vcombine.low %v673_v53, %v677_v54 }
 0x27f   :  { %3935 = vmatpush1.bf16.msra.mxu0 %v5123_v0  ;;  %v5180_v0 = vcombine.high %v673_v53, %v677_v54  ;;  %v722_v53 = vld [vmem:[#allocation8 + $0x8d8] sm:$0xff] }
 0x280   :  { %4099 = vmatpush1.bf16.msra.mxu1 %v5125_v1  ;;  %3936 = vmatprep.subr.bf16.mxu0 %v5132_v3  ;;  %v5182_v1 = vcombine.high %v674_v55, %v678_v56  ;;  %v681_v3 = vld [vmem:[#allocation8 + $0x790] sm:$0xff]  ;;  %v726_v54 = vld [vmem:[#allocation8 + $0x8f8] sm:$0xff] }
 0x281   :  { %4100 = vmatprep.subr.bf16.mxu1 %v5134_v4  ;;  %v685_v4 = vld [vmem:[#allocation8 + $0x7b0] sm:$0xff] }
 0x282   :  { %v5187_v21 = vcombine.low %v681_v3, %v685_v4 }
 0x283   :  { %3937 = vmatpush1.bf16.msra.mxu0 %v5131_v11  ;;  %v5188_v11 = vcombine.high %v681_v3, %v685_v4  ;;  %v734_v3 = vld [vmem:[#allocation8 + $0x938] sm:$0xff]  ;;  %v5229_v4 = vcombine.low %v722_v53, %v726_v54 }
 0x284   :  { %4101 = vmatpush1.bf16.msra.mxu1 %v5133_v12  ;;  %3938 = vmatprep.subr.bf16.mxu0 %v5140_v17  ;;  %v5190_v12 = vcombine.high %v682_v6, %v686_v8  ;;  %v689_v17 = vld [vmem:[#allocation8 + $0x7d0] sm:$0xff] }
 0x285   :  { %4102 = vmatprep.subr.bf16.mxu1 %v5142_v18  ;;  %v693_v18 = vld [vmem:[#allocation8 + $0x7f0] sm:$0xff] }
 0x286   :  { %v5195_v27 = vcombine.low %v689_v17, %v693_v18 }
 0x287   :  { %3939 = vmatpush1.bf16.msra.mxu0 %v5139_v59  ;;  %v5196_v59 = vcombine.high %v689_v17, %v693_v18 }
 0x288   :  { %4103 = vmatpush1.bf16.msra.mxu1 %v5141_v23  ;;  %3940 = vmatprep.subr.bf16.mxu0 %v5148_v24  ;;  %v5198_v23 = vcombine.high %v690_v19, %v694_v20  ;;  %v697_v24 = vld [vmem:[#allocation8 + $0x810] sm:$0xff] }
 0x289   :  { %4104 = vmatprep.subr.bf16.mxu1 %v5150_v7  ;;  %v701_v7 = vld [vmem:[#allocation8 + $0x830] sm:$0xff] }
 0x28a   :  { %v5203_v31 = vcombine.low %v697_v24, %v701_v7 }
 0x28b   :  { %3941 = vmatpush1.bf16.msra.mxu0 %v5147_v28  ;;  %v5204_v28 = vcombine.high %v697_v24, %v701_v7 }
 0x28c   :  { %4105 = vmatpush1.bf16.msra.mxu1 %v5149_v29  ;;  %3942 = vmatprep.subr.bf16.mxu0 %v5156_v14  ;;  %v5206_v29 = vcombine.high %v698_v26, %v702_v46  ;;  %v705_v14 = vld [vmem:[#allocation8 + $0x850] sm:$0xff] }
 0x28d   :  { %4106 = vmatprep.subr.bf16.mxu1 %v5158_v30  ;;  %v709_v30 = vld [vmem:[#allocation8 + $0x870] sm:$0xff] }
 0x28e   :  { %v5211_v42 = vcombine.low %v705_v14, %v709_v30 }
 0x28f   :  { %3943 = vmatpush1.bf16.msra.mxu0 %v5155_v63  ;;  %v5212_v63 = vcombine.high %v705_v14, %v709_v30 }
 0x290   :  { %4107 = vmatpush1.bf16.msra.mxu1 %v5157_v37  ;;  %3944 = vmatprep.subr.bf16.mxu0 %v5164_v38  ;;  %v713_v37 = vld [vmem:[#allocation8 + $0x890] sm:$0xff] }
 0x291   :  { %4108 = vmatprep.subr.bf16.mxu1 %v5166_v39  ;;  %v717_v38 = vld [vmem:[#allocation8 + $0x8b0] sm:$0xff]  ;;  %v5214_v39 = vcombine.high %v706_v32, %v710_v33 }
 0x292   :  { %v5219_v55 = vcombine.low %v713_v37, %v717_v38  ;;  %v761_v33 = vld [vmem:[#allocation8 + $0xa10] sm:$0xff] }
 0x293   :  { %3945 = vmatpush1.bf16.msra.mxu0 %v5163_v50  ;;  %v5220_v50 = vcombine.high %v713_v37, %v717_v38  ;;  %v766_v37 = vld [vmem:[#allocation8 + $0xa38] sm:$0xff] }
 0x294   :  { %4109 = vmatpush1.bf16.msra.mxu1 %v5165_v52  ;;  %3946 = vmatprep.subr.bf16.mxu0 %v5172_v5  ;;  %v5222_v52 = vcombine.high %v714_v57, %v718_v40  ;;  %v721_v5 = vld [vmem:[#allocation8 + $0x8d0] sm:$0xff] }
 0x295   :  { %4110 = vmatprep.subr.bf16.mxu1 %v5174_v16  ;;  %v725_v16 = vld [vmem:[#allocation8 + $0x8f0] sm:$0xff] }
 0x296   :  { %v5228_v56 = vcombine.high %v721_v5, %v725_v16 }
 0x297   :  { %3947 = vmatpush1.bf16.msra.mxu0 %v5171_v58  ;;  %v5230_v58 = vcombine.high %v722_v53, %v726_v54 }
 0x298   :  { %4111 = vmatpush1.bf16.msra.mxu1 %v5173_v62  ;;  %3948 = vmatprep.subr.bf16.mxu0 %v5180_v0  ;;  %v729_v62 = vld [vmem:[#allocation8 + $0x910] sm:$0xff] }
 0x299   :  { %4112 = vmatprep.subr.bf16.mxu1 %v5182_v1  ;;  %v733_v0 = vld [vmem:[#allocation8 + $0x930] sm:$0xff]  ;;  %v730_v1 = vld [vmem:[#allocation8 + $0x918] sm:$0xff] }
 0x29a   :  { %v5236_v6 = vcombine.high %v729_v62, %v733_v0  ;;  %v5238_v8 = vcombine.high %v730_v1, %v734_v3  ;;  %v5235_v17 = vcombine.low %v729_v62, %v733_v0  ;;  %v5237_v18 = vcombine.low %v730_v1, %v734_v3 }
 0x29b   :  { %3949 = vmatpush1.bf16.msra.mxu0 %v5179_v9  ;;  %v737_v9 = vld [vmem:[#allocation8 + $0x950] sm:$0xff] }
 0x29c   :  { %4113 = vmatpush1.bf16.msra.mxu1 %v5181_v10  ;;  %3950 = vmatprep.subr.bf16.mxu0 %v5188_v11  ;;  %v741_v10 = vld [vmem:[#allocation8 + $0x970] sm:$0xff]  ;;  %v738_v11 = vld [vmem:[#allocation8 + $0x958] sm:$0xff] }
 0x29d   :  { %4114 = vmatprep.subr.bf16.mxu1 %v5190_v12  ;;  %v742_v12 = vld [vmem:[#allocation8 + $0x978] sm:$0xff]  ;;  %v5244_v19 = vcombine.high %v737_v9, %v741_v10  ;;  %v5243_v24 = vcombine.low %v737_v9, %v741_v10 }
 0x29e   :  { %v5246_v20 = vcombine.high %v738_v11, %v742_v12  ;;  %v5245_v7 = vcombine.low %v738_v11, %v742_v12 }
 0x29f   :  { %3951 = vmatpush1.bf16.msra.mxu0 %v5187_v21  ;;  %v745_v21 = vld [vmem:[#allocation8 + $0x990] sm:$0xff] }
 0x2a0   :  { %4115 = vmatpush1.bf16.msra.mxu1 %v5189_v22  ;;  %3952 = vmatprep.subr.bf16.mxu0 %v5196_v59  ;;  %v749_v22 = vld [vmem:[#allocation8 + $0x9b0] sm:$0xff]  ;;  %v746_v59 = vld [vmem:[#allocation8 + $0x998] sm:$0xff] }
 0x2a1   :  { %4116 = vmatprep.subr.bf16.mxu1 %v5198_v23  ;;  %v750_v23 = vld [vmem:[#allocation8 + $0x9b8] sm:$0xff]  ;;  %v5252_v26 = vcombine.high %v745_v21, %v749_v22  ;;  %v5251_v14 = vcombine.low %v745_v21, %v749_v22 }
 0x2a2   :  { %v5254_v46 = vcombine.high %v746_v59, %v750_v23  ;;  %v5253_v30 = vcombine.low %v746_v59, %v750_v23 }
 0x2a3   :  { %3953 = vmatpush1.bf16.msra.mxu0 %v5195_v27  ;;  %v753_v27 = vld [vmem:[#allocation8 + $0x9d0] sm:$0xff] }
 0x2a4   :  { %4117 = vmatpush1.bf16.msra.mxu1 %v5197_v15  ;;  %3963 = vmatprep.subr.bf16.mxu0 %v5204_v28  ;;  %v757_v15 = vld [vmem:[#allocation8 + $0x9f0] sm:$0xff]  ;;  %v754_v28 = vld [vmem:[#allocation8 + $0x9d8] sm:$0xff] }
 0x2a5   :  { %4127 = vmatprep.subr.bf16.mxu1 %v5206_v29  ;;  %v758_v29 = vld [vmem:[#allocation8 + $0x9f8] sm:$0xff]  ;;  %v5259_v38 = vcombine.low %v753_v27, %v757_v15 }
 0x2a6   :  { %3955 = vmatmul.mubr.bf16.vlgmr.msra.gmra.mrb[12].mxu0 %v6117_v51  ;;  %v5262_v32 = vcombine.high %v754_v28, %v758_v29 }
 0x2a7   :  { %4119 = vmatmul.mubr.bf16.vlgmr.msra.gmra.mrb[12].mxu1 %v6117_v51  ;;  %3964 = vmatpush1.bf16.msra.mxu0 %v5203_v31  ;;  %v5221_v51 = vcombine.low %v714_v57, %v718_v40  ;;  %v5260_v31 = vcombine.high %v753_v27, %v757_v15 }
 0x2a8   :  { %3995 = vmatprep.mubr.bf16.mxu0 %v6119_v61  ;;  %4128 = vmatpush1.bf16.msra.mxu1 %v5205_v35  ;;  %v765_v35 = vld [vmem:[#allocation8 + $0xa30] sm:$0xff] }
 0x2a9   :  { %4159 = vmatprep.mubr.bf16.mxu1 %v6119_v61  ;;  %3965 = vmatprep.subr.bf16.mxu0 %v5212_v63  ;;  %v5227_v61 = vcombine.low %v721_v5, %v725_v16  ;;  %v762_v63 = vld [vmem:[#allocation8 + $0xa18] sm:$0xff]  ;;  %v5268_v57 = vcombine.high %v761_v33, %v765_v35  ;;  %v5267_v5 = vcombine.low %v761_v33, %v765_v35 }
 0x2aa   :  { %4129 = vmatprep.subr.bf16.mxu1 %v5214_v39  ;;  %v5261_v39 = vcombine.low %v754_v28, %v758_v29  ;;  %v5270_v40 = vcombine.high %v762_v63, %v766_v37  ;;  %v5269_v16 = vcombine.low %v762_v63, %v766_v37 }
 0x2ab   :  { %3966 = vmatpush1.bf16.msra.mxu0 %v5211_v42  ;;  %v769_v42 = vld [vmem:[#allocation8 + $0xa50] sm:$0xff] }
 0x2ac   :  { %4130 = vmatpush1.bf16.msra.mxu1 %v5213_v43  ;;  %3967 = vmatprep.subr.bf16.mxu0 %v5220_v50  ;;  %v773_v43 = vld [vmem:[#allocation8 + $0xa70] sm:$0xff]  ;;  %v770_v50 = vld [vmem:[#allocation8 + $0xa58] sm:$0xff] }
 0x2ad   :  { %4131 = vmatprep.subr.bf16.mxu1 %v5222_v52  ;;  %v774_v52 = vld [vmem:[#allocation8 + $0xa78] sm:$0xff]  ;;  %v5276_v53 = vcombine.high %v769_v42, %v773_v43  ;;  %v5275_v62 = vcombine.low %v769_v42, %v773_v43 }
 0x2ae   :  { %v5278_v54 = vcombine.high %v770_v50, %v774_v52  ;;  %v5277_v0 = vcombine.low %v770_v50, %v774_v52 }
 0x2af   :  { %3968 = vmatpush1.bf16.msra.mxu0 %v5219_v55  ;;  %v777_v55 = vld [vmem:[#allocation8 + $0xa90] sm:$0xff] }
 0x2b0   :  { %4132 = vmatpush1.bf16.msra.mxu1 %v5221_v51  ;;  %3969 = vmatprep.subr.bf16.mxu0 %v5228_v56  ;;  %v781_v51 = vld [vmem:[#allocation8 + $0xab0] sm:$0xff]  ;;  %v778_v56 = vld [vmem:[#allocation8 + $0xa98] sm:$0xff] }
 0x2b1   :  { %4133 = vmatprep.subr.bf16.mxu1 %v5230_v58  ;;  %v782_v58 = vld [vmem:[#allocation8 + $0xab8] sm:$0xff]  ;;  %v5284_v1 = vcombine.high %v777_v55, %v781_v51  ;;  %v5283_v9 = vcombine.low %v777_v55, %v781_v51 }
 0x2b2   :  { %v5286_v3 = vcombine.high %v778_v56, %v782_v58  ;;  %v5285_v10 = vcombine.low %v778_v56, %v782_v58 }
 0x2b3   :  { %3970 = vmatpush1.bf16.msra.mxu0 %v5227_v61  ;;  %v785_v61 = vld [vmem:[#allocation8 + $0xad0] sm:$0xff] }
 0x2b4   :  { %4134 = vmatpush1.bf16.msra.mxu1 %v5229_v4  ;;  %3971 = vmatprep.subr.bf16.mxu0 %v5236_v6  ;;  %v789_v4 = vld [vmem:[#allocation8 + $0xaf0] sm:$0xff]  ;;  %v786_v6 = vld [vmem:[#allocation8 + $0xad8] sm:$0xff] }
 0x2b5   :  { %4135 = vmatprep.subr.bf16.mxu1 %v5238_v8  ;;  %v790_v8 = vld [vmem:[#allocation8 + $0xaf8] sm:$0xff]  ;;  %v5292_v11 = vcombine.high %v785_v61, %v789_v4  ;;  %v5291_v21 = vcombine.low %v785_v61, %v789_v4 }
 0x2b6   :  { %v5294_v12 = vcombine.high %v786_v6, %v790_v8  ;;  %v5293_v22 = vcombine.low %v786_v6, %v790_v8  ;;  %v838_v61 = vld [vmem:[#allocation8 + $0xc78] sm:$0xff]  ;;  %v841_v8 = vld [vmem:[#allocation8 + $0xc90] sm:$0xff] }
 0x2b7   :  { %3972 = vmatpush1.bf16.msra.mxu0 %v5235_v17  ;;  %v793_v17 = vld [vmem:[#allocation8 + $0xb10] sm:$0xff] }
 0x2b8   :  { %4136 = vmatpush1.bf16.msra.mxu1 %v5237_v18  ;;  %3973 = vmatprep.subr.bf16.mxu0 %v5244_v19  ;;  %v797_v18 = vld [vmem:[#allocation8 + $0xb30] sm:$0xff]  ;;  %v794_v19 = vld [vmem:[#allocation8 + $0xb18] sm:$0xff] }
 0x2b9   :  { %4137 = vmatprep.subr.bf16.mxu1 %v5246_v20  ;;  %v798_v20 = vld [vmem:[#allocation8 + $0xb38] sm:$0xff]  ;;  %v5300_v59 = vcombine.high %v793_v17, %v797_v18  ;;  %v5299_v27 = vcombine.low %v793_v17, %v797_v18 }
 0x2ba   :  { %v5302_v23 = vcombine.high %v794_v19, %v798_v20  ;;  %v5301_v15 = vcombine.low %v794_v19, %v798_v20 }
 0x2bb   :  { %3974 = vmatpush1.bf16.msra.mxu0 %v5243_v24  ;;  %v801_v24 = vld [vmem:[#allocation8 + $0xb50] sm:$0xff] }
 0x2bc   :  { %4138 = vmatpush1.bf16.msra.mxu1 %v5245_v7  ;;  %3975 = vmatprep.subr.bf16.mxu0 %v5252_v26  ;;  %v805_v7 = vld [vmem:[#allocation8 + $0xb70] sm:$0xff]  ;;  %v802_v26 = vld [vmem:[#allocation8 + $0xb58] sm:$0xff] }
 0x2bd   :  { %4139 = vmatprep.subr.bf16.mxu1 %v5254_v46  ;;  %v806_v46 = vld [vmem:[#allocation8 + $0xb78] sm:$0xff]  ;;  %v5308_v28 = vcombine.high %v801_v24, %v805_v7  ;;  %v5307_v33 = vcombine.low %v801_v24, %v805_v7 }
 0x2be   :  { %v5310_v29 = vcombine.high %v802_v26, %v806_v46  ;;  %v5309_v35 = vcombine.low %v802_v26, %v806_v46  ;;  %v857_v46 = vld [vmem:[#allocation8 + $0xd10] sm:$0xff] }
 0x2bf   :  { %3976 = vmatpush1.bf16.msra.mxu0 %v5251_v14  ;;  %v809_v14 = vld [vmem:[#allocation8 + $0xb90] sm:$0xff] }
 0x2c0   :  { %4140 = vmatpush1.bf16.msra.mxu1 %v5253_v30  ;;  %3977 = vmatprep.subr.bf16.mxu0 %v5260_v31  ;;  %v813_v30 = vld [vmem:[#allocation8 + $0xbb0] sm:$0xff]  ;;  %v810_v31 = vld [vmem:[#allocation8 + $0xb98] sm:$0xff] }
 0x2c1   :  { %4141 = vmatprep.subr.bf16.mxu1 %v5262_v32  ;;  %v814_v32 = vld [vmem:[#allocation8 + $0xbb8] sm:$0xff]  ;;  %v5316_v63 = vcombine.high %v809_v14, %v813_v30  ;;  %v5315_v42 = vcombine.low %v809_v14, %v813_v30 }
 0x2c2   :  { %v5318_v37 = vcombine.high %v810_v31, %v814_v32  ;;  %v5317_v43 = vcombine.low %v810_v31, %v814_v32  ;;  %v865_v31 = vld [vmem:[#allocation8 + $0xd50] sm:$0xff] }
 0x2c3   :  { %3978 = vmatpush1.bf16.msra.mxu0 %v5259_v38  ;;  %v817_v38 = vld [vmem:[#allocation8 + $0xbd0] sm:$0xff] }
 0x2c4   :  { %4142 = vmatpush1.bf16.msra.mxu1 %v5261_v39  ;;  %3979 = vmatprep.subr.bf16.mxu0 %v5268_v57  ;;  %v821_v39 = vld [vmem:[#allocation8 + $0xbf0] sm:$0xff]  ;;  %v818_v57 = vld [vmem:[#allocation8 + $0xbd8] sm:$0xff] }
 0x2c5   :  { %4143 = vmatprep.subr.bf16.mxu1 %v5270_v40  ;;  %v822_v40 = vld [vmem:[#allocation8 + $0xbf8] sm:$0xff]  ;;  %v5324_v50 = vcombine.high %v817_v38, %v821_v39  ;;  %v5323_v55 = vcombine.low %v817_v38, %v821_v39  ;;  %v869_v32 = vld [vmem:[#allocation8 + $0xd70] sm:$0xff] }
 0x2c6   :  { %v5326_v52 = vcombine.high %v818_v57, %v822_v40  ;;  %v5325_v51 = vcombine.low %v818_v57, %v822_v40  ;;  %v5372_v38 = vcombine.high %v865_v31, %v869_v32  ;;  %v873_v57 = vld [vmem:[#allocation8 + $0xd90] sm:$0xff] }
 0x2c7   :  { %3980 = vmatpush1.bf16.msra.mxu0 %v5267_v5  ;;  %v825_v5 = vld [vmem:[#allocation8 + $0xc10] sm:$0xff] }
 0x2c8   :  { %4144 = vmatpush1.bf16.msra.mxu1 %v5269_v16  ;;  %3981 = vmatprep.subr.bf16.mxu0 %v5276_v53  ;;  %v829_v16 = vld [vmem:[#allocation8 + $0xc30] sm:$0xff]  ;;  %v826_v53 = vld [vmem:[#allocation8 + $0xc18] sm:$0xff] }
 0x2c9   :  { %4145 = vmatprep.subr.bf16.mxu1 %v5278_v54  ;;  %v830_v54 = vld [vmem:[#allocation8 + $0xc38] sm:$0xff]  ;;  %v5332_v56 = vcombine.high %v825_v5, %v829_v16  ;;  %v877_v40 = vld [vmem:[#allocation8 + $0xdb0] sm:$0xff] }
 0x2ca   :  { %v5334_v58 = vcombine.high %v826_v53, %v830_v54  ;;  %v5333_v4 = vcombine.low %v826_v53, %v830_v54 }
 0x2cb   :  { %3982 = vmatpush1.bf16.msra.mxu0 %v5275_v62  ;;  %v833_v62 = vld [vmem:[#allocation8 + $0xc50] sm:$0xff] }
 0x2cc   :  { %4146 = vmatpush1.bf16.msra.mxu1 %v5277_v0  ;;  %3983 = vmatprep.subr.bf16.mxu0 %v5284_v1  ;;  %v837_v0 = vld [vmem:[#allocation8 + $0xc70] sm:$0xff]  ;;  %v5331_v1 = vcombine.low %v825_v5, %v829_v16  ;;  %v5380_v5 = vcombine.high %v873_v57, %v877_v40 }
 0x2cd   :  { %4147 = vmatprep.subr.bf16.mxu1 %v5286_v3  ;;  %v834_v3 = vld [vmem:[#allocation8 + $0xc58] sm:$0xff]  ;;  %v5340_v6 = vcombine.high %v833_v62, %v837_v0  ;;  %v5339_v17 = vcombine.low %v833_v62, %v837_v0 }
 0x2ce   :  { %v5341_v18 = vcombine.low %v834_v3, %v838_v61  ;;  %v882_v62 = vld [vmem:[#allocation8 + $0xdd8] sm:$0xff] }
 0x2cf   :  { %3984 = vmatpush1.bf16.msra.mxu0 %v5283_v9  ;;  %v845_v9 = vld [vmem:[#allocation8 + $0xcb0] sm:$0xff]  ;;  %v886_v0 = vld [vmem:[#allocation8 + $0xdf8] sm:$0xff] }
 0x2d0   :  { %4148 = vmatpush1.bf16.msra.mxu1 %v5285_v10  ;;  %3985 = vmatprep.subr.bf16.mxu0 %v5292_v11  ;;  %v5342_v10 = vcombine.high %v834_v3, %v838_v61  ;;  %v842_v11 = vld [vmem:[#allocation8 + $0xc98] sm:$0xff]  ;;  %v5348_v19 = vcombine.high %v841_v8, %v845_v9  ;;  %v5347_v24 = vcombine.low %v841_v8, %v845_v9 }
 0x2d1   :  { %4149 = vmatprep.subr.bf16.mxu1 %v5294_v12  ;;  %v846_v12 = vld [vmem:[#allocation8 + $0xcb8] sm:$0xff]  ;;  %v5379_v61 = vcombine.low %v873_v57, %v877_v40 }
 0x2d2   :  { %v5350_v20 = vcombine.high %v842_v11, %v846_v12 }
 0x2d3   :  { %3986 = vmatpush1.bf16.msra.mxu0 %v5291_v21  ;;  %v849_v21 = vld [vmem:[#allocation8 + $0xcd0] sm:$0xff] }
 0x2d4   :  { %4150 = vmatpush1.bf16.msra.mxu1 %v5293_v22  ;;  %3987 = vmatprep.subr.bf16.mxu0 %v5300_v59  ;;  %v853_v22 = vld [vmem:[#allocation8 + $0xcf0] sm:$0xff]  ;;  %v850_v59 = vld [vmem:[#allocation8 + $0xcd8] sm:$0xff] }
 0x2d5   :  { %4151 = vmatprep.subr.bf16.mxu1 %v5302_v23  ;;  %v854_v23 = vld [vmem:[#allocation8 + $0xcf8] sm:$0xff]  ;;  %v5356_v7 = vcombine.high %v849_v21, %v853_v22 }
 0x2d6   :  { %v5358_v26 = vcombine.high %v850_v59, %v854_v23 }
 0x2d7   :  { %3988 = vmatpush1.bf16.msra.mxu0 %v5299_v27  ;;  %v861_v27 = vld [vmem:[#allocation8 + $0xd30] sm:$0xff] }
 0x2d8   :  { %4152 = vmatpush1.bf16.msra.mxu1 %v5301_v15  ;;  %3989 = vmatprep.subr.bf16.mxu0 %v5308_v28  ;;  %v858_v15 = vld [vmem:[#allocation8 + $0xd18] sm:$0xff]  ;;  %v5364_v14 = vcombine.high %v857_v46, %v861_v27 }
 0x2d9   :  { %4153 = vmatprep.subr.bf16.mxu1 %v5310_v29  ;;  %v862_v28 = vld [vmem:[#allocation8 + $0xd38] sm:$0xff]  ;;  %v5357_v29 = vcombine.low %v850_v59, %v854_v23  ;;  %v897_v59 = vld [vmem:[#allocation8 + $0xe50] sm:$0xff] }
 0x2da   :  { %v5366_v30 = vcombine.high %v858_v15, %v862_v28  ;;  %v901_v23 = vld [vmem:[#allocation8 + $0xe70] sm:$0xff] }
 0x2db   :  { %3990 = vmatpush1.bf16.msra.mxu0 %v5307_v33  ;;  %v866_v33 = vld [vmem:[#allocation8 + $0xd58] sm:$0xff] }
 0x2dc   :  { %4154 = vmatpush1.bf16.msra.mxu1 %v5309_v35  ;;  %3991 = vmatprep.subr.bf16.mxu0 %v5316_v63  ;;  %v870_v35 = vld [vmem:[#allocation8 + $0xd78] sm:$0xff]  ;;  %v5363_v63 = vcombine.low %v857_v46, %v861_v27  ;;  %v5404_v46 = vcombine.high %v897_v59, %v901_v23 }
 0x2dd   :  { %4155 = vmatprep.subr.bf16.mxu1 %v5318_v37  ;;  %v5365_v37 = vcombine.low %v858_v15, %v862_v28  ;;  %v5374_v39 = vcombine.high %v866_v33, %v870_v35  ;;  %v905_v15 = vld [vmem:[#allocation8 + $0xe90] sm:$0xff] }
 0x2de   :  { %v909_v28 = vld [vmem:[#allocation8 + $0xeb0] sm:$0xff] }
 0x2df   :  { %3992 = vmatpush1.bf16.msra.mxu0 %v5315_v42  ;;  %v874_v42 = vld [vmem:[#allocation8 + $0xd98] sm:$0xff] }
 0x2e0   :  { %4156 = vmatpush1.bf16.msra.mxu1 %v5317_v43  ;;  %3993 = vmatprep.subr.bf16.mxu0 %v5324_v50  ;;  %v878_v43 = vld [vmem:[#allocation8 + $0xdb8] sm:$0xff]  ;;  %v5371_v50 = vcombine.low %v865_v31, %v869_v32  ;;  %v5412_v31 = vcombine.high %v905_v15, %v909_v28 }
 0x2e1   :  { %4157 = vmatprep.subr.bf16.mxu1 %v5326_v52  ;;  %v5373_v52 = vcombine.low %v866_v33, %v870_v35  ;;  %v5382_v54 = vcombine.high %v874_v42, %v878_v43  ;;  %v5381_v8 = vcombine.low %v874_v42, %v878_v43  ;;  %v913_v33 = vld [vmem:[#allocation8 + $0xed0] sm:$0xff] }
 0x2e2   :  { %v917_v35 = vld [vmem:[#allocation8 + $0xef0] sm:$0xff] }
 0x2e3   :  { %3994 = vmatpush1.bf16.msra.mxu0 %v5323_v55  ;;  %v881_v55 = vld [vmem:[#allocation8 + $0xdd0] sm:$0xff]  ;;  %v5420_v57 = vcombine.high %v913_v33, %v917_v35 }
 0x2e4   :  { %4158 = vmatpush1.bf16.msra.mxu1 %v5325_v51  ;;  %4004 = vmatprep.subr.bf16.mxu0 %v5332_v56  ;;  %v885_v51 = vld [vmem:[#allocation8 + $0xdf0] sm:$0xff] }
 0x2e5   :  { %4168 = vmatprep.subr.bf16.mxu1 %v5334_v58  ;;  %v5388_v9 = vcombine.high %v881_v55, %v885_v51  ;;  %v921_v42 = vld [vmem:[#allocation8 + $0xf10] sm:$0xff] }
 0x2e6   :  { %3996 = vmatmul.mubr.bf16.vlgmr.msra.gmra.mrb[12].mxu0 %v6135_v34  ;;  %v925_v43 = vld [vmem:[#allocation8 + $0xf30] sm:$0xff] }
 0x2e7   :  { %4160 = vmatmul.mubr.bf16.vlgmr.msra.gmra.mrb[12].mxu1 %v6135_v34  ;;  %4005 = vmatpush1.bf16.msra.mxu0 %v5331_v1  ;;  %v5349_v34 = vcombine.low %v842_v11, %v846_v12  ;;  %v889_v11 = vld [vmem:[#allocation8 + $0xe10] sm:$0xff] }
 0x2e8   :  { %4036 = vmatprep.mubr.bf16.mxu0 %v6137_v41  ;;  %4169 = vmatpush1.bf16.msra.mxu1 %v5333_v4  ;;  %v893_v12 = vld [vmem:[#allocation8 + $0xe30] sm:$0xff] }
 0x2e9   :  { %4200 = vmatprep.mubr.bf16.mxu1 %v6137_v41  ;;  %4006 = vmatprep.subr.bf16.mxu0 %v5340_v6  ;;  %v5355_v41 = vcombine.low %v849_v21, %v853_v22  ;;  %v5396_v21 = vcombine.high %v889_v11, %v893_v12 }
 0x2ea   :  { %4170 = vmatprep.subr.bf16.mxu1 %v5342_v10  ;;  %v5390_v10 = vcombine.high %v882_v62, %v886_v0 }
 0x2eb   :  { %4007 = vmatpush1.bf16.msra.mxu0 %v5339_v17  ;;  %v890_v17 = vld [vmem:[#allocation8 + $0xe18] sm:$0xff] }
 0x2ec   :  { %4171 = vmatpush1.bf16.msra.mxu1 %v5341_v18  ;;  %4008 = vmatprep.subr.bf16.mxu0 %v5348_v19  ;;  %v894_v18 = vld [vmem:[#allocation8 + $0xe38] sm:$0xff]  ;;  %v5387_v19 = vcombine.low %v881_v55, %v885_v51  ;;  %v5428_v55 = vcombine.high %v921_v42, %v925_v43 }
 0x2ed   :  { %4172 = vmatprep.subr.bf16.mxu1 %v5350_v20  ;;  %v5389_v20 = vcombine.low %v882_v62, %v886_v0  ;;  %v5398_v22 = vcombine.high %v890_v17, %v894_v18  ;;  %v929_v62 = vld [vmem:[#allocation8 + $0xf50] sm:$0xff] }
 0x2ee   :  { %v933_v0 = vld [vmem:[#allocation8 + $0xf70] sm:$0xff] }
 0x2ef   :  { %4009 = vmatpush1.bf16.msra.mxu0 %v5347_v24  ;;  %v898_v24 = vld [vmem:[#allocation8 + $0xe58] sm:$0xff] }
 0x2f0   :  { %4173 = vmatpush1.bf16.msra.mxu1 %v5349_v34  ;;  %4010 = vmatprep.subr.bf16.mxu0 %v5356_v7  ;;  %v902_v34 = vld [vmem:[#allocation8 + $0xe78] sm:$0xff]  ;;  %v5395_v7 = vcombine.low %v889_v11, %v893_v12 }
 0x2f1   :  { %4174 = vmatprep.subr.bf16.mxu1 %v5358_v26  ;;  %v5397_v26 = vcombine.low %v890_v17, %v894_v18  ;;  %v5406_v27 = vcombine.high %v898_v24, %v902_v34  ;;  %v938_v11 = vld [vmem:[#allocation8 + $0xf98] sm:$0xff]  ;;  %v6173_v17 = vld [vmem:[#allocation10] sm:$0xff]  ;;  %v5435_v18 = vcombine.low %v929_v62, %v933_v0 }
 0x2f2   :  { %v942_v12 = vld [vmem:[#allocation8 + $0xfb8] sm:$0xff] }
 0x2f3   :  { %4011 = vmatpush1.bf16.msra.mxu0 %v5355_v41  ;;  %v906_v41 = vld [vmem:[#allocation8 + $0xe98] sm:$0xff] }
 0x2f4   :  { %4175 = vmatpush1.bf16.msra.mxu1 %v5357_v29  ;;  %4012 = vmatprep.subr.bf16.mxu0 %v5364_v14  ;;  %v910_v29 = vld [vmem:[#allocation8 + $0xeb8] sm:$0xff]  ;;  %v5403_v14 = vcombine.low %v897_v59, %v901_v23  ;;  %v949_v59 = vld [vmem:[#allocation8 + $0xff0] sm:$0xff]  ;;  %v960_v23 = vrot.slane %v6173_v17, %v141_v47 }
 0x2f5   :  { %4176 = vmatprep.subr.bf16.mxu1 %v5366_v30  ;;  %v5405_v30 = vcombine.low %v898_v24, %v902_v34  ;;  %v5414_v32 = vcombine.high %v906_v41, %v910_v29  ;;  %v946_v24 = vld [vmem:[#allocation8 + $0xfd8] sm:$0xff] }
 0x2f6   :  { %v950_v34 = vld [vmem:[#allocation8 + $0xff8] sm:$0xff] }
 0x2f7   :  { %4013 = vmatpush1.bf16.msra.mxu0 %v5363_v63  ;;  %v914_v63 = vld [vmem:[#allocation8 + $0xed8] sm:$0xff] }
 0x2f8   :  { %4177 = vmatpush1.bf16.msra.mxu1 %v5365_v37  ;;  %4014 = vmatprep.subr.bf16.mxu0 %v5372_v38  ;;  %v918_v37 = vld [vmem:[#allocation8 + $0xef8] sm:$0xff]  ;;  %v5411_v38 = vcombine.low %v905_v15, %v909_v28  ;;  %v5454_v15 = vcombine.high %v946_v24, %v950_v34 }
 0x2f9   :  { %v6165_v16 = vpop.f32.mrb[8].mxu0  ;;  %v6167_v53 = vpop.f32.mrb[8].mxu1  ;;  %4178 = vmatprep.subr.bf16.mxu1 %v5374_v39  ;;  %v5413_v39 = vcombine.low %v906_v41, %v910_v29  ;;  %v5422_v40 = vcombine.high %v914_v63, %v918_v37  ;;  %v5453_v29 = vcombine.low %v946_v24, %v950_v34  ;;  %v5712_v24 = vld [vmem:[#allocation11 + $0x180] sm:$0xff]   ;;  %v5713_v34 = vld [vmem:[#allocation11 + $0x148] sm:$0xff]  }
 0x2fa   :  { %v6169_v56 = vpop.f32.mrb[9].mxu0  ;;  %v6171_v58 = vpop.f32.mrb[9].mxu1 }
 0x2fb   :  { %v3714_v1 = vpop.f32.mrb[10].mxu0  ;;  %v3878_v3 = vpop.f32.mrb[10].mxu1  ;;  %4015 = vmatpush1.bf16.msra.mxu0 %v5371_v50  ;;  %v922_v50 = vld [vmem:[#allocation8 + $0xf18] sm:$0xff]  ;;  %v5609_v28 = vadd.f32 %v6169_v56, %v960_v23 }
 0x2fc   :  { %4179 = vmatpush1.bf16.msra.mxu1 %v5373_v52  ;;  %v3715_v4 = vpop.f32.mrb[11].mxu0  ;;  %v3879_v6 = vpop.f32.mrb[11].mxu1  ;;  %4016 = vmatprep.subr.bf16.mxu0 %v5380_v5  ;;  %v926_v52 = vld [vmem:[#allocation8 + $0xf38] sm:$0xff]  ;;  %v5419_v5 = vcombine.low %v913_v33, %v917_v35  ;;  %v5680_v33 = vld [vmem:[#allocation11 + $0x80] sm:$0xff]   ;;  %v5681_v35 = vld [vmem:[#allocation11 + $0x48] sm:$0xff]  }
 0x2fd   :  { %4180 = vmatprep.subr.bf16.mxu1 %v5382_v54  ;;  %v5421_v54 = vcombine.low %v914_v63, %v918_v37  ;;  %v5430_v51 = vcombine.high %v922_v50, %v926_v52  ;;  %v930_v1 = vld [vmem:[#allocation8 + $0xf58] sm:$0xff]  ;;  %v5429_v4 = vcombine.low %v922_v50, %v926_v52  ;;  %v5436_v6 = vcombine.high %v929_v62, %v933_v0  ;;  %v5683_v37 = vld [vmem:[#allocation11 + $0x8] sm:$0xff]   ;;  %v5690_v50 = vld [vmem:[#allocation11 + $0xd8] sm:$0xff]  }
 0x2fe   :  { %v934_v3 = vld [vmem:[#allocation8 + $0xf78] sm:$0xff]  ;;  %v5692_v52 = vld [vmem:[#allocation11 + $0x98] sm:$0xff]   ;;  %v5697_v62 = vld [vmem:[#allocation11 + $0x68] sm:$0xff]  }
 0x2ff   :  { %4017 = vmatpush1.bf16.msra.mxu0 %v5379_v61  ;;  %v5427_v61 = vcombine.low %v921_v42, %v925_v43  ;;  %v5688_v42 = vld [vmem:[#allocation11 + $0x90] sm:$0xff]   ;;  %v5689_v43 = vld [vmem:[#allocation11 + $0x58] sm:$0xff]   ;;  %v5698_v0 = vld [vmem:[#allocation11 + $0xe8] sm:$0xff]  }
 0x300   :  { %4181 = vmatpush1.bf16.msra.mxu1 %v5381_v8  ;;  %4018 = vmatprep.subr.bf16.mxu0 %v5388_v9  ;;  %v5438_v8 = vcombine.high %v930_v1, %v934_v3  ;;  %v937_v9 = vld [vmem:[#allocation8 + $0xf90] sm:$0xff] }
 0x301   :  { %4182 = vmatprep.subr.bf16.mxu1 %v5390_v10  ;;  %v941_v10 = vld [vmem:[#allocation8 + $0xfb0] sm:$0xff] }
 0x303   :  { %4019 = vmatpush1.bf16.msra.mxu0 %v5387_v19  ;;  %v5437_v19 = vcombine.low %v930_v1, %v934_v3  ;;  %v5699_v1 = vld [vmem:[#allocation11 + $0x28] sm:$0xff]   ;;  %v956_v3 = vrot.slane %v6173_v17, %v137_v45 }
 0x304   :  { %4183 = vmatpush1.bf16.msra.mxu1 %v5389_v20  ;;  %4020 = vmatprep.subr.bf16.mxu0 %v5396_v21  ;;  %v5444_v20 = vcombine.high %v937_v9, %v941_v10  ;;  %v5446_v21 = vcombine.high %v938_v11, %v942_v12 }
 0x305   :  { %4184 = vmatprep.subr.bf16.mxu1 %v5398_v22  ;;  %v945_v22 = vld [vmem:[#allocation8 + $0xfd0] sm:$0xff] }
 0x306   :  { %v5451_v47 = vcombine.low %v945_v22, %v949_v59 }
 0x307   :  { %4021 = vmatpush1.bf16.msra.mxu0 %v5395_v7  ;;  %v968_v7 = vrot.slane %v6173_v17, %v149_v48  ;;  %v5678_v48 = vld [vmem:[#allocation11 + $0xc0] sm:$0xff]  }
 0x308   :  { %4185 = vmatpush1.bf16.msra.mxu1 %v5397_v26  ;;  %4022 = vmatprep.subr.bf16.mxu0 %v5404_v46  ;;  %v5443_v26 = vcombine.low %v937_v9, %v941_v10  ;;  %v5445_v46 = vcombine.low %v938_v11, %v942_v12  ;;  %v5703_v9 = vld [vmem:[#allocation11 + $0x30] sm:$0xff]   ;;  %v5608_v10 = vadd.f32 %v6165_v16, %v956_v3  ;;  %v5705_v12 = vld [vmem:[#allocation11 + $0x78] sm:$0xff]   ;;  %v5711_v16 = vld [vmem:[#allocation11 + $0x100] sm:$0xff]  }
 0x309   :  { %4186 = vmatprep.subr.bf16.mxu1 %v5406_v27  ;;  %v5452_v27 = vcombine.high %v945_v22, %v949_v59  ;;  %v5611_v41 = vadd.f32 %v6171_v58, %v968_v7  ;;  %v5682_v58 = vld [vmem:[#allocation11 + $0xc8] sm:$0xff]   ;;  %v5704_v11 = vld [vmem:[#allocation11 + $0xb0] sm:$0xff]   ;;  %v5710_v59 = vld [vmem:[#allocation11 + $0x1c0] sm:$0xff]  }
 0x30a   :  { %v5714_v7 = vld [vmem:[#allocation11 + $0x1c8] sm:$0xff]  }
 0x30b   :  { %4023 = vmatpush1.bf16.msra.mxu0 %v5403_v14  ;;  %v5677_v14 = vld [vmem:[#allocation11 + $0x40] sm:$0xff]  }
 0x30c   :  { %4187 = vmatpush1.bf16.msra.mxu1 %v5405_v30  ;;  %4024 = vmatprep.subr.bf16.mxu0 %v5412_v31  ;;  %v4210_v30 = vmax.f32 %v5609_v28, 0.0  ;;  %v4212_v31 = vmax.f32 %v5611_v41, 0.0  ;;  %v5719_v28 = vld [vmem:[#allocation11 + $0x110] sm:$0xff]  }
 0x30d   :  { %4188 = vmatprep.subr.bf16.mxu1 %v5414_v32  ;;  %v5679_v32 = vld [vmem:[#allocation11] sm:$0xff]   ;;  %v5720_v41 = vld [vmem:[#allocation11 + $0x190] sm:$0xff]  }
 0x30e   :  { %v4218_v56 = vpack.c.bf16 %v4210_v30, %v4210_v30  ;;  %v4220_v63 = vpack.c.bf16 %v4212_v31, %v4212_v31  ;;  %v5725_v30 = vld [vmem:[#allocation11 + $0x160] sm:$0xff]  }
 0x30f   :  { %4025 = vmatpush1.bf16.msra.mxu0 %v5411_v38  ;;  %v5684_v38 = vld [vmem:[#allocation11 + $0x88] sm:$0xff]   ;;  %v5726_v31 = vld [vmem:[#allocation11 + $0x1e0] sm:$0xff]  }
 0x310   :  { %4189 = vmatpush1.bf16.msra.mxu1 %v5413_v39  ;;  %4026 = vmatprep.subr.bf16.mxu0 %v5420_v57  ;;  %v5685_v39 = vld [vmem:[#allocation11 + $0x50] sm:$0xff]  }
 0x311   :  { %4190 = vmatprep.subr.bf16.mxu1 %v5422_v40  ;;  %v5686_v57 = vld [vmem:[#allocation11 + $0xd0] sm:$0xff]  }
 0x312   :  { %v5687_v40 = vld [vmem:[#allocation11 + $0x10] sm:$0xff]  }
 0x313   :  { %4027 = vmatpush1.bf16.msra.mxu0 %v5419_v5  ;;  %v5693_v5 = vld [vmem:[#allocation11 + $0x60] sm:$0xff]  }
 0x314   :  { %4191 = vmatpush1.bf16.msra.mxu1 %v5421_v54  ;;  %4028 = vmatprep.subr.bf16.mxu0 %v5428_v55  ;;  %v5694_v54 = vld [vmem:[#allocation11 + $0xe0] sm:$0xff]  }
 0x315   :  { %4192 = vmatprep.subr.bf16.mxu1 %v5430_v51  ;;  %v5695_v55 = vld [vmem:[#allocation11 + $0x20] sm:$0xff]  }
 0x316   :  { %v5696_v51 = vld [vmem:[#allocation11 + $0xa0] sm:$0xff]  }
 0x317   :  { %4029 = vmatpush1.bf16.msra.mxu0 %v5427_v61  ;;  %v5700_v61 = vld [vmem:[#allocation11 + $0xa8] sm:$0xff]  }
 0x318   :  { %4193 = vmatpush1.bf16.msra.mxu1 %v5429_v4  ;;  %4030 = vmatprep.subr.bf16.mxu0 %v5436_v6  ;;  %v5701_v4 = vld [vmem:[#allocation11 + $0x70] sm:$0xff]   ;;  %v964_v6 = vrot.slane %v6173_v17, %v145_v2  ;;  %v5708_v2 = vld [vmem:[#allocation11 + $0xb8] sm:$0xff]  }
 0x319   :  { %4194 = vmatprep.subr.bf16.mxu1 %v5438_v8  ;;  %v5702_v8 = vld [vmem:[#allocation11 + $0xf0] sm:$0xff]  }
 0x31a   :  { %v5610_v45 = vadd.f32 %v6167_v53, %v964_v6 }
 0x31b   :  { %4031 = vmatpush1.bf16.msra.mxu0 %v5435_v18  ;;  %v5706_v18 = vld [vmem:[#allocation11 + $0xf8] sm:$0xff]  }
 0x31c   :  { %4195 = vmatpush1.bf16.msra.mxu1 %v5437_v19  ;;  %4032 = vmatprep.subr.bf16.mxu0 %v5444_v20  ;;  %v5707_v19 = vld [vmem:[#allocation11 + $0x38] sm:$0xff]   ;;  %v4209_v20 = vmax.f32 %v5608_v10, 0.0  ;;  %v4211_v22 = vmax.f32 %v5610_v45, 0.0 }
 0x31d   :  { %4196 = vmatprep.subr.bf16.mxu1 %v5446_v21  ;;  %v5709_v21 = vld [vmem:[#allocation11 + $0x140] sm:$0xff]  }
 0x31e   :  { %v4217_v23 = vpack.c.bf16 %v4209_v20, %v4209_v20  ;;  %v4219_v53 = vpack.c.bf16 %v4211_v22, %v4211_v22 }
 0x31f   :  { %4033 = vmatpush1.bf16.msra.mxu0 %v5443_v26  ;;  %v5715_v26 = vld [vmem:[#allocation11 + $0x108] sm:$0xff]  }
 0x320   :  { %4197 = vmatpush1.bf16.msra.mxu1 %v5445_v46  ;;  %4034 = vmatprep.subr.bf16.mxu0 %v5452_v27  ;;  %v5716_v46 = vld [vmem:[#allocation11 + $0x188] sm:$0xff]   ;;  %v5717_v27 = vld [vmem:[#allocation11 + $0x150] sm:$0xff]  }
 0x321   :  { %4198 = vmatprep.subr.bf16.mxu1 %v5454_v15  ;;  %v5718_v15 = vld [vmem:[#allocation11 + $0x1d0] sm:$0xff]  }
 0x323   :  { %4035 = vmatpush1.bf16.msra.mxu0 %v5451_v47  ;;  %v5721_v47 = vld [vmem:[#allocation11 + $0x158] sm:$0xff]  }
 0x324   :  { %4199 = vmatpush1.bf16.msra.mxu1 %v5453_v29  ;;  %5520 = vmatprep.subr.bf16.mxu0 %v5677_v14  ;;  %v5722_v29 = vld [vmem:[#allocation11 + $0x1d8] sm:$0xff]  }
 0x325   :  { %5542 = vmatprep.subr.bf16.mxu1 %v5678_v48  ;;  %v5723_v14 = vld [vmem:[#allocation11 + $0x118] sm:$0xff]  }
 0x326   :  { %4037 = vmatmul.mubr.bf16.vlgmr.msra.gmra.mrb[12].mxu0 %v6147_v25  ;;  %v5724_v48 = vld [vmem:[#allocation11 + $0x198] sm:$0xff]  }
 0x327   :  { %4201 = vmatmul.mubr.bf16.vlgmr.msra.gmra.mrb[12].mxu1 %v6147_v25  ;;  %5521 = vmatpush3.bf16.msra.mxu0 %v5679_v32  ;;  %v5691_v25 = vld [vmem:[#allocation11 + $0x18] sm:$0xff]   ;;  %v5727_v32 = vld [vmem:[#allocation11 + $0x120] sm:$0xff]  }
 0x328   :  { %4776 = vmatprep.mubr.bf16.mxu0 %v4218_v56  ;;  %5543 = vmatpush3.bf16.msra.mxu1 %v5680_v33  ;;  %v5728_v33 = vld [vmem:[#allocation11 + $0x1a0] sm:$0xff]   ;;  %v5730_v56 = vld [vmem:[#allocation11 + $0x1e8] sm:$0xff]  }
 0x329   :  { %4816 = vmatprep.mubr.bf16.mxu1 %v4220_v63  ;;  %5522 = vmatprep.subr.bf16.mxu0 %v5681_v35  ;;  %v5729_v35 = vld [vmem:[#allocation11 + $0x168] sm:$0xff]  }
 0x32a   :  { %5544 = vmatprep.subr.bf16.mxu1 %v5682_v58  ;;  %v5731_v58 = vld [vmem:[#allocation11 + $0x128] sm:$0xff]  }
 0x32b   :  { %5523 = vmatpush3.bf16.msra.mxu0 %v5683_v37  ;;  %v5732_v63 = vld [vmem:[#allocation11 + $0x1a8] sm:$0xff]   ;;  %v5733_v37 = vld [vmem:[#allocation11 + $0x170] sm:$0xff]  }
 0x32c   :  { %5545 = vmatpush3.bf16.msra.mxu1 %v5684_v38  ;;  %5524 = vmatprep.subr.bf16.mxu0 %v5685_v39  ;;  %v5734_v38 = vld [vmem:[#allocation11 + $0x1f0] sm:$0xff]  }
 0x32d   :  { %5546 = vmatprep.subr.bf16.mxu1 %v5686_v57  ;;  %v5735_v39 = vld [vmem:[#allocation11 + $0x130] sm:$0xff]  }
 0x32e   :  { %v5736_v57 = vld [vmem:[#allocation11 + $0x1b0] sm:$0xff]  }
 0x32f   :  { %5525 = vmatpush3.bf16.msra.mxu0 %v5687_v40  ;;  %v5737_v40 = vld [vmem:[#allocation11 + $0x178] sm:$0xff]  }
 0x330   :  { %5547 = vmatpush3.bf16.msra.mxu1 %v5688_v42  ;;  %5526 = vmatprep.subr.bf16.mxu0 %v5689_v43  ;;  %v5738_v42 = vld [vmem:[#allocation11 + $0x1f8] sm:$0xff]  }
 0x331   :  { %5548 = vmatprep.subr.bf16.mxu1 %v5690_v50  ;;  %v5739_v43 = vld [vmem:[#allocation11 + $0x138] sm:$0xff]  }
 0x332   :  { %v5740_v50 = vld [vmem:[#allocation11 + $0x1b8] sm:$0xff]  }
 0x333   :  { %5527 = vmatpush3.bf16.msra.mxu0 %v5691_v25  ;;  %v972_v25 = vrot.slane %v6173_v17, %v153_v49 }
 0x334   :  { %5549 = vmatpush3.bf16.msra.mxu1 %v5692_v52  ;;  %5528 = vmatprep.subr.bf16.mxu0 %v5693_v5  ;;  %v980_v52 = vrot.slane %v6173_v17, %v161_v36  ;;  %v976_v5 = vrot.slane %v6173_v17, %v157_v13 }
 0x335   :  { %5550 = vmatprep.subr.bf16.mxu1 %v5694_v54  ;;  %v984_v54 = vrot.slane %v6173_v17, %v165_v60 }
 0x337   :  { %5529 = vmatpush3.bf16.msra.mxu0 %v5695_v55 }
 0x338   :  { %5551 = vmatpush3.bf16.msra.mxu1 %v5696_v51  ;;  %5530 = vmatprep.subr.bf16.mxu0 %v5697_v62 }
 0x339   :  { %5552 = vmatprep.subr.bf16.mxu1 %v5698_v0 }
 0x33b   :  { %5531 = vmatpush3.bf16.msra.mxu0 %v5699_v1 }
 0x33c   :  { %5553 = vmatpush3.bf16.msra.mxu1 %v5700_v61  ;;  %5532 = vmatprep.subr.bf16.mxu0 %v5701_v4 }
 0x33d   :  { %5554 = vmatprep.subr.bf16.mxu1 %v5702_v8 }
 0x33f   :  { %5533 = vmatpush3.bf16.msra.mxu0 %v5703_v9 }
 0x340   :  { %5555 = vmatpush3.bf16.msra.mxu1 %v5704_v11  ;;  %5534 = vmatprep.subr.bf16.mxu0 %v5705_v12 }
 0x341   :  { %5556 = vmatprep.subr.bf16.mxu1 %v5706_v18 }
 0x343   :  { %5535 = vmatpush3.bf16.msra.mxu0 %v5707_v19  ;;  %v5455_v19 = vld [vmem:[#allocation13] ss:$0 sm:$0xff] }
 0x344   :  { %5557 = vmatpush3.bf16.msra.mxu1 %v5708_v2  ;;  %5564 = vmatprep.subr.bf16.mxu0 %v5709_v21 }
 0x345   :  { %5586 = vmatprep.subr.bf16.mxu1 %v5710_v59 }
 0x346   :  { %4777 = vmatmul.mubr.bf16.vlgmr.msra.gmra.mrb[16].mxu0 %v4217_v23 }
 0x347   :  { %4817 = vmatmul.mubr.bf16.vlgmr.msra.gmra.mrb[16].mxu1 %v4219_v53  ;;  %5565 = vmatpush3.bf16.msra.mxu0 %v5711_v16 }
 0x348   :  { %5587 = vmatpush3.bf16.msra.mxu1 %v5712_v24  ;;  %5566 = vmatprep.subr.bf16.mxu0 %v5713_v34 }
 0x349   :  { %5588 = vmatprep.subr.bf16.mxu1 %v5714_v7 }
 0x34b   :  { %5567 = vmatpush3.bf16.msra.mxu0 %v5715_v26 }
 0x34c   :  { %5589 = vmatpush3.bf16.msra.mxu1 %v5716_v46  ;;  %5568 = vmatprep.subr.bf16.mxu0 %v5717_v27 }
 0x34d   :  { %5590 = vmatprep.subr.bf16.mxu1 %v5718_v15 }
 0x34f   :  { %5569 = vmatpush3.bf16.msra.mxu0 %v5719_v28 }
 0x350   :  { %5591 = vmatpush3.bf16.msra.mxu1 %v5720_v41  ;;  %5570 = vmatprep.subr.bf16.mxu0 %v5721_v47 }
 0x351   :  { %5592 = vmatprep.subr.bf16.mxu1 %v5722_v29 }
 0x353   :  { %5571 = vmatpush3.bf16.msra.mxu0 %v5723_v14 }
 0x354   :  { %5593 = vmatpush3.bf16.msra.mxu1 %v5724_v48  ;;  %5572 = vmatprep.subr.bf16.mxu0 %v5725_v30 }
 0x355   :  { %5594 = vmatprep.subr.bf16.mxu1 %v5726_v31 }
 0x357   :  { %5573 = vmatpush3.bf16.msra.mxu0 %v5727_v32 }
 0x358   :  { %5595 = vmatpush3.bf16.msra.mxu1 %v5728_v33  ;;  %5574 = vmatprep.subr.bf16.mxu0 %v5729_v35 }
 0x359   :  { %5596 = vmatprep.subr.bf16.mxu1 %v5730_v56 }
 0x35b   :  { %5575 = vmatpush3.bf16.msra.mxu0 %v5731_v58 }
 0x35c   :  { %5597 = vmatpush3.bf16.msra.mxu1 %v5732_v63  ;;  %5576 = vmatprep.subr.bf16.mxu0 %v5733_v37 }
 0x35d   :  { %5598 = vmatprep.subr.bf16.mxu1 %v5734_v38 }
 0x35f   :  { %5577 = vmatpush3.bf16.msra.mxu0 %v5735_v39 }
 0x360   :  { %5599 = vmatpush3.bf16.msra.mxu1 %v5736_v57  ;;  %5578 = vmatprep.subr.bf16.mxu0 %v5737_v40 }
 0x361   :  { %5600 = vmatprep.subr.bf16.mxu1 %v5738_v42 }
 0x363   :  { %5579 = vmatpush3.bf16.msra.mxu0 %v5739_v43 }
 0x364   :  { %5601 = vmatpush3.bf16.msra.mxu1 %v5740_v50 }
 0x3f9   :  { %v4038_v55 = vpop.f32.mrb[12].mxu0 }
 0x3fa   :  { %v5612_v51 = vadd.f32 %v4038_v55, %v972_v25  ;;  %v4202_v62 = vpop.f32.mrb[12].mxu1  ;;  %v4040_v0 = vpop.f32.mrb[13].mxu0 }
 0x3fb   :  { %v5614_v1 = vadd.f32 %v4202_v62, %v980_v52  ;;  %v5613_v3 = vadd.f32 %v4040_v0, %v976_v5  ;;  %v4204_v61 = vpop.f32.mrb[13].mxu1  ;;  %v4042_v49 = vpop.f32.mrb[14].mxu0 }
 0x3fc   :  { %v4213_v4 = vmax.f32 %v5612_v51, 0.0  ;;  %v5615_v6 = vadd.f32 %v4204_v61, %v984_v54  ;;  %v4206_v8 = vpop.f32.mrb[14].mxu1  ;;  %v4043_v36 = vpop.f32.mrb[15].mxu0 }
 0x3fd   :  { %v4215_v9 = vmax.f32 %v5614_v1, 0.0  ;;  %v4214_v10 = vmax.f32 %v5613_v3, 0.0  ;;  %v4207_v11 = vpop.f32.mrb[15].mxu1 }
 0x3fe   :  { %v4216_v13 = vmax.f32 %v5615_v6, 0.0  ;;  %v4221_v44 = vpack.c.bf16 %v4213_v4, %v4213_v4 }
 0x3ff   :  { %v4222_v12 = vpack.c.bf16 %v4214_v10, %v4214_v10  ;;  %v4223_v60 = vpack.c.bf16 %v4215_v9, %v4215_v9 }
 0x400   :  { %v4224_v45 = vpack.c.bf16 %v4216_v13, %v4216_v13 }
 0x401   :  { %4856 = vmatprep.mubr.bf16.mxu0 %v4222_v12 }
 0x402   :  { %4896 = vmatprep.mubr.bf16.mxu1 %v4224_v45  ;;  %4857 = vmatmul.mubr.bf16.vlgmr.msra.gmra.mrb[20].mxu0 %v4221_v44 }
 0x403   :  { %4897 = vmatmul.mubr.bf16.vlgmr.msra.gmra.mrb[20].mxu1 %v4223_v60 }
 0x419   :  { %v5536_v17 = vpop.f32.mrb[16].mxu0 }
 0x41a   :  { %v5558_v18 = vpop.f32.mrb[16].mxu1  ;;  %v5537_v20 = vpop.f32.mrb[17].mxu0 }
 0x41b   :  { %v5538_v2 = vadd.f32 %v5537_v20, %v5536_v17  ;;  %v5559_v21 = vpop.f32.mrb[17].mxu1  ;;  %v5539_v22 = vpop.f32.mrb[18].mxu0 }
 0x41c   :  { %v5560_v59 = vadd.f32 %v5559_v21, %v5558_v18  ;;  %v5561_v16 = vpop.f32.mrb[18].mxu1  ;;  %v5540_v23 = vpop.f32.mrb[19].mxu0 }
 0x41d   :  { %v4779_v24 = vadd.f32 %v5538_v2, %v5455_v19  ;;  %v5562_v34 = vpop.f32.mrb[19].mxu1 }
 0x41f   :  { %v4819_v53 = vadd.f32 %v5560_v59, %v4779_v24 }
 0x4d5   :  { %v5580_v7 = vpop.f32.mrb[20].mxu0 }
 0x4d6   :  { %v5602_v26 = vpop.f32.mrb[20].mxu1  ;;  %v5581_v46 = vpop.f32.mrb[21].mxu0 }
 0x4d7   :  { %v5582_v27 = vadd.f32 %v5581_v46, %v5580_v7  ;;  %v5603_v15 = vpop.f32.mrb[21].mxu1  ;;  %v5583_v28 = vpop.f32.mrb[22].mxu0 }
 0x4d8   :  { %v5604_v41 = vadd.f32 %v5603_v15, %v5602_v26  ;;  %v5605_v47 = vpop.f32.mrb[22].mxu1  ;;  %v5584_v29 = vpop.f32.mrb[23].mxu0 }
 0x4d9   :  { %v4859_v14 = vadd.f32 %v5582_v27, %v4819_v53  ;;  %v5606_v48 = vpop.f32.mrb[23].mxu1 }
 0x4db   :  { %v4899_v30 = vadd.f32 %v5604_v41, %v4859_v14 }
 0x4dd   :  { %4904 = vst [vmem:[#allocation14] sm:$0xff] %v4899_v30 }
 0x4de   :  { %5907 = shalt.err (!%p5904_p4)
}
 0x4df   :  { %s5908_s11 = scalar_lea.hbm %s6224_s7, 128 }
 0x4e0   :  { %p5909_p5 = scmp.ne.s32.totalorder %s6224_s7, %s5908_s11  ;;  %p5912_p6 = scmp.lt.u32.totalorder %s5908_s11, %s6224_s7 }
 0x4e2   :  { %p5914_p7 = pnand %p5912_p6, %p5909_p5 }
 0x4e4   :  { %5917 = shalt.err (!%p5914_p7)
}
 0x4e5   :  { %4914 = dma.vmem_to_hbm [thread:$0]  %s4912_s13, 128, %s6224_s7, [#allocation4]  }
 0x4e6   :  { %5926 = dma.done.wait [#allocation4], 128  }
 0x4e7   :  { %5927 = vsyncadd [#allocation4], 4294967168 }
 0x4e8   :  { %4918 = vsyncpa [#allocation3], 1 }
 0x4e9   :  { %4919 = vsyncpa [#allocation6], 1 }
 0x4ea   :  { %4920 = vsyncpa [#allocation9], 1 }
 0x4eb   :  { %4921 = vsyncpa [#allocation12], 1 }
 0x4ec   :  { %4922 = vsyncpa [#allocation4], 1 }

</bundles_post_ra>
